<compile_context>
chip_gen: v7x
topology: tpu7x:2x2x1
jax: 0.10.0
libtpu: 0.0.40
codegen_flags: <defaults>
</compile_context>

<pallas_src>
import functools

import jax
import jax.numpy as jnp
from jax import lax
from jax.experimental import pallas as pl
from jax.experimental.pallas import tpu as pltpu

KH = KW = 3
STRIDE = 2


def _pick_batch_block(n):
    # Amortize per-grid-step overhead over several images, but keep grid extent >= 2 so both
    # v7x TensorCores stay busy; cap so the (lane-padded) per-step block stays small in VMEM.
    b = max(1, min(8, n // 2))
    while n % b:
        b -= 1
    return b


def _downsample_kernel(x_ref, w_ref, bias_ref, out_ref, x_hwc_s, rowpar_s, pmat_s, *, h, w):
    # x_ref:    (BB, Cin, H*W)    BB images per grid step, NCHW spatial flattened (free reshape)
    # w_ref:    (Cout, KH*KW*Cin) BN-scale-folded conv weights, K ordered (kh, kw, ci)
    # bias_ref: (Cout, 1)         folded conv-bias + BatchNorm(eval) bias
    # out_ref:  (BB, Cout+Cin, P) conv rows [0:Cout], pool rows [Cout:Cout+Cin]; P = pad(OH*OW,128)
    # x_hwc_s:  (H, W, Cin)       channels-last staging (Cin on lanes -> strides never on lanes)
    # rowpar_s: (OH+1, W, Cin)    row-parity staging (stride-2 over H done 2x, not 9x)
    # pmat_s:   (P, K)            im2col scratch (flattened spatial x K)
    bb, cin, _ = x_ref.shape
    cout, kdim = w_ref.shape
    p = out_ref.shape[2]
    oh = (h - KH) // STRIDE + 1
    ow = (w - KW) // STRIDE + 1
    ohow = oh * ow

    if p > ohow:
        # Rows >= OH*OW of the im2col scratch are never written below; zero them so the
        # lane-padding columns of the (later sliced-off) output stay deterministic.
        pmat_s[ohow:p, :] = jnp.zeros((p - ohow, kdim), jnp.float32)

    wmat = w_ref[...]      # (Cout, K)  -- hoisted out of the per-image loop
    bias = bias_ref[...]   # (Cout, 1)

    for b in range(bb):  # static unroll: bb images share one grid step / one set of DMAs
        # NCHW -> channels-last on the VMEM block: one small 2-D transpose puts Cin on the
        # 128-lane axis; the (H*W, Cin) -> (H, W, Cin) split keeps the minor dim (cheap).
        x_hwc_s[...] = x_ref[b].T.reshape(h, w, cin)

        # im2col: row-parity planes staged once per parity, every tap read then strides only on
        # the sublane (W) axis; taps go to static column offsets in the scratch (bounded live
        # ranges, no 9-way lane concat).
        for r in range(2):
            nrow = oh + 1 - r
            rowpar_s[0:nrow, :, :] = x_hwc_s[pl.ds(r, nrow, stride=STRIDE), :, :]
            for kh in range(r, KH, 2):
                for kw in range(KW):
                    tap = rowpar_s[pl.ds(kh // 2, oh),
                                   pl.ds(kw, ow, stride=STRIDE), :]      # (OH, OW, Cin)
                    k0 = (kh * KW + kw) * cin
                    pmat_s[0:ohow, k0:k0 + cin] = tap.reshape(ohow, cin)

        # One transpose puts flattened spatial on lanes for BOTH branches.
        pmat_t = pmat_s[...].T                                            # (K, P)

        # Conv + folded BN + ReLU: (Cout, K) x (K, P) -> result lanes = P (lane-dense store).
        conv = jnp.dot(wmat, pmat_t, preferred_element_type=jnp.float32)  # (Cout, P)
        conv = jnp.maximum(conv + bias, 0.0)
        out_ref[b, 0:cout, :] = conv.astype(out_ref.dtype)

        # MaxPool 3x3 s2: per-channel max over the 9 row-groups of the same matrix.
        pool = pmat_t[0:cin, :]
        for t in range(1, KH * KW):
            pool = jnp.maximum(pool, pmat_t[t * cin:(t + 1) * cin, :])
        out_ref[b, cout:cout + cin, :] = pool.astype(out_ref.dtype)


def downsample_module(x_nchw, w_hwio, conv_bias, gamma, beta, run_mean, run_var, eps=1e-5):
    """x_nchw: (N, Cin, H, W) float32 -> (N, Cout+Cin, OH, OW) float32 (NCHW), like PyTorch."""
    n, cin, h, w = x_nchw.shape
    cout = w_hwio.shape[-1]
    oh = (h - KH) // STRIDE + 1
    ow = (w - KW) // STRIDE + 1
    ohow = oh * ow
    p = ((ohow + 127) // 128) * 128          # lane-padded flattened spatial (unmasked stores)
    kdim = KH * KW * cin

    # Fold conv bias + BatchNorm (inference / running stats) into the weights and one bias.
    # TODO(synk): training-mode BatchNorm (batch statistics + running-stat update) not implemented.
    scale = gamma / jnp.sqrt(run_var + eps)                              # (Cout,)
    bias = (beta + scale * (conv_bias - run_mean)).reshape(cout, 1)      # (Cout, 1)
    w_mat = (w_hwio.reshape(kdim, cout) * scale[None, :]).T              # (Cout, K), K = (kh,kw,ci)

    bb = _pick_batch_block(n)
    kernel = functools.partial(_downsample_kernel, h=h, w=w)

    # Input stays NCHW in HBM; this reshape is a free metadata view (row-major contiguous).
    x_flat = x_nchw.reshape(n, cin, h * w).astype(jnp.float32)

    # TODO(synk): for large H/W add an OH-row grid axis with a 1-row halo so the per-step
    # (lane-padded) block stays well inside v7x's 64 MiB VMEM; at these shapes it is tiny.
    out = pl.pallas_call(
        kernel,
        out_shape=jax.ShapeDtypeStruct((n, cout + cin, p), jnp.float32),
        grid_spec=pltpu.PrefetchScalarGridSpec(
            num_scalar_prefetch=0,
            grid=(n // bb,),
            in_specs=[
                pl.BlockSpec((bb, cin, h * w), lambda i: (i, 0, 0)),
                pl.BlockSpec((cout, kdim), lambda i: (0, 0)),
                pl.BlockSpec((cout, 1), lambda i: (0, 0)),
            ],
            out_specs=pl.BlockSpec((bb, cout + cin, p), lambda i: (i, 0, 0)),
            scratch_shapes=[
                pltpu.VMEM((h, w, cin), jnp.float32),
                pltpu.VMEM((oh + 1, w, cin), jnp.float32),
                pltpu.VMEM((p, kdim), jnp.float32),
            ],
        ),
        compiler_params=pltpu.CompilerParams(
            dimension_semantics=("parallel",),
            vmem_limit_bytes=32 * 1024 * 1024,
        ),
    )(x_flat, w_mat.astype(jnp.float32), bias.astype(jnp.float32))

    # Drop the lane padding (single cheap slice) and restore NCHW spatial; both branches are
    # already concatenated on channels inside the kernel.
    return out[:, :, :ohow].reshape(n, cout + cin, oh, ow)


def _reference(x_nchw, w_hwio, conv_bias, gamma, beta, run_mean, run_var, eps=1e-5):
    w_oihw = jnp.transpose(w_hwio, (3, 2, 0, 1))
    conv = lax.conv_general_dilated(
        x_nchw, w_oihw, window_strides=(STRIDE, STRIDE), padding="VALID",
        dimension_numbers=("NCHW", "OIHW", "NCHW"),
        precision=lax.Precision.HIGHEST,
    ) + conv_bias[None, :, None, None]
    bn = (conv - run_mean[None, :, None, None]) / jnp.sqrt(run_var[None, :, None, None] + eps)
    bn = bn * gamma[None, :, None, None] + beta[None, :, None, None]
    b1 = jnp.maximum(bn, 0.0)
    b2 = lax.reduce_window(
        x_nchw, -jnp.inf, lax.max, (1, 1, KH, KW), (1, 1, STRIDE, STRIDE), "VALID"
    )
    return jnp.concatenate([b1, b2], axis=1)


if __name__ == "__main__":
    key = jax.random.PRNGKey(0)
    in_channels, f_3x3 = 4, 8
    N, H, W = 2, 16, 16

    k = jax.random.split(key, 6)
    x = jax.random.normal(k[0], (N, in_channels, H, W), jnp.float32)          # NCHW, like PyTorch
    w_hwio = jax.random.normal(k[1], (KH, KW, in_channels, f_3x3), jnp.float32) * 0.1
    conv_bias = jax.random.normal(k[2], (f_3x3,), jnp.float32) * 0.1
    gamma = 1.0 + 0.1 * jax.random.normal(k[3], (f_3x3,), jnp.float32)
    beta = 0.1 * jax.random.normal(k[4], (f_3x3,), jnp.float32)
    run_mean = 0.1 * jax.random.normal(k[5], (f_3x3,), jnp.float32)
    run_var = jnp.ones((f_3x3,), jnp.float32)

    fwd = jax.jit(downsample_module)
    out = jax.block_until_ready(fwd(x, w_hwio, conv_bias, gamma, beta, run_mean, run_var))

    ref = _reference(x, w_hwio, conv_bias, gamma, beta, run_mean, run_var)
    assert out.shape == (N, f_3x3 + in_channels, (H - 3) // 2 + 1, (W - 3) // 2 + 1)
    # Tolerance leaves headroom for MXU f32 pass-count differences between the Pallas matmul
    # and the XLA reference convolution; a semantic bug would show up as O(0.1-1) errors.
    assert jnp.allclose(out, ref, atol=5e-3, rtol=5e-3), float(jnp.max(jnp.abs(out - ref)))

    print("KERNEL_OK")
</pallas_src>

<mosaic_0001>
module attributes {stable_mosaic.version = 11 : i64} {
  func.func @_downsample_kernel(%arg0: i32, %arg1: memref<1x4x256xf32, #tpu.memory_space<vmem>>, %arg2: memref<8x36xf32, #tpu.memory_space<vmem>>, %arg3: memref<8x1xf32, #tpu.memory_space<vmem>>, %arg4: memref<1x12x128xf32, #tpu.memory_space<vmem>>, %arg5: memref<16x16x4xf32, #tpu.memory_space<vmem>>, %arg6: memref<8x16x4xf32, #tpu.memory_space<vmem>>, %arg7: memref<128x36xf32, #tpu.memory_space<vmem>>) attributes {dimension_semantics = [#tpu.dimension_semantics<parallel>], iteration_bounds = array<i64: 2>, scalar_prefetch = 0 : i64, scratch_operands = 3 : i64, tpu.core_type = #tpu.core_type<tc>, window_params = [{transform_indices = @transform_0, window_bounds = array<i64: 1, 4, 256>}, {pipeline_mode = #tpu.pipeline_mode<synchronous>, transform_indices = @transform_1, window_bounds = array<i64: 8, 36>}, {pipeline_mode = #tpu.pipeline_mode<synchronous>, transform_indices = @transform_2, window_bounds = array<i64: 8, 1>}, {transform_indices = @transform_3, window_bounds = array<i64: 1, 12, 128>}]} {
    %cst = arith.constant 0.000000e+00 : f32
    %0 = vector.broadcast %cst : f32 to vector<79x36xf32>
    %c49 = arith.constant 49 : index
    %c0 = arith.constant 0 : index
    %1 = vector.load %arg7[%c49, %c0] : memref<128x36xf32, #tpu.memory_space<vmem>>, vector<79x36xf32>
    tpu.vector_store %arg7[%c49, %c0], %0 {strides = array<i32>} : memref<128x36xf32, #tpu.memory_space<vmem>>, vector<79x36xf32>,
    %c0_0 = arith.constant 0 : index
    %c0_1 = arith.constant 0 : index
    %2 = vector.load %arg2[%c0_0, %c0_1] : memref<8x36xf32, #tpu.memory_space<vmem>>, vector<8x36xf32>
    %c0_2 = arith.constant 0 : index
    %c0_3 = arith.constant 0 : index
    %3 = vector.load %arg3[%c0_2, %c0_3] : memref<8x1xf32, #tpu.memory_space<vmem>>, vector<8x1xf32>
    %c0_4 = arith.constant 0 : index
    %c0_5 = arith.constant 0 : index
    %c0_6 = arith.constant 0 : index
    %4 = vector.load %arg1[%c0_4, %c0_5, %c0_6] : memref<1x4x256xf32, #tpu.memory_space<vmem>>, vector<1x4x256xf32>
    %5 = vector.shape_cast %4 : vector<1x4x256xf32> to vector<4x256xf32>
    %6 = tpu.transpose %5, [1, 0] : vector<4x256xf32> -> vector<256x4xf32>
    %7 = vector.shape_cast %6 : vector<256x4xf32> to vector<16x16x4xf32>
    %c0_7 = arith.constant 0 : index
    %c0_8 = arith.constant 0 : index
    %c0_9 = arith.constant 0 : index
    %8 = vector.load %arg5[%c0_7, %c0_8, %c0_9] : memref<16x16x4xf32, #tpu.memory_space<vmem>>, vector<16x16x4xf32>
    tpu.vector_store %arg5[%c0_7, %c0_8, %c0_9], %7 {strides = array<i32>} : memref<16x16x4xf32, #tpu.memory_space<vmem>>, vector<16x16x4xf32>,
    %c0_10 = arith.constant 0 : index
    %c0_11 = arith.constant 0 : index
    %c0_12 = arith.constant 0 : index
    %9 = tpu.strided_load %arg5[%c0_10, %c0_11, %c0_12] {strides = array<i32: 2, 1, 1>} : memref<16x16x4xf32, #tpu.memory_space<vmem>>, vector<8x16x4xf32>
    %c0_13 = arith.constant 0 : index
    %c0_14 = arith.constant 0 : index
    %c0_15 = arith.constant 0 : index
    %10 = vector.load %arg6[%c0_13, %c0_14, %c0_15] : memref<8x16x4xf32, #tpu.memory_space<vmem>>, vector<8x16x4xf32>
    tpu.vector_store %arg6[%c0_13, %c0_14, %c0_15], %9 {strides = array<i32>} : memref<8x16x4xf32, #tpu.memory_space<vmem>>, vector<8x16x4xf32>,
    %c0_16 = arith.constant 0 : index
    %c0_17 = arith.constant 0 : index
    %c0_18 = arith.constant 0 : index
    %11 = tpu.strided_load %arg6[%c0_16, %c0_17, %c0_18] {strides = array<i32: 1, 2, 1>} : memref<8x16x4xf32, #tpu.memory_space<vmem>>, vector<7x7x4xf32>
    %12 = vector.shape_cast %11 : vector<7x7x4xf32> to vector<49x4xf32>
    %c0_19 = arith.constant 0 : index
    %c0_20 = arith.constant 0 : index
    %13 = vector.load %arg7[%c0_19, %c0_20] : memref<128x36xf32, #tpu.memory_space<vmem>>, vector<49x4xf32>
    tpu.vector_store %arg7[%c0_19, %c0_20], %12 {strides = array<i32>} : memref<128x36xf32, #tpu.memory_space<vmem>>, vector<49x4xf32>,
    %c0_21 = arith.constant 0 : index
    %c1 = arith.constant 1 : index
    %c0_22 = arith.constant 0 : index
    %14 = tpu.strided_load %arg6[%c0_21, %c1, %c0_22] {strides = array<i32: 1, 2, 1>} : memref<8x16x4xf32, #tpu.memory_space<vmem>>, vector<7x7x4xf32>
    %15 = vector.shape_cast %14 : vector<7x7x4xf32> to vector<49x4xf32>
    %c0_23 = arith.constant 0 : index
    %c4 = arith.constant 4 : index
    %16 = vector.load %arg7[%c0_23, %c4] : memref<128x36xf32, #tpu.memory_space<vmem>>, vector<49x4xf32>
    tpu.vector_store %arg7[%c0_23, %c4], %15 {strides = array<i32>} : memref<128x36xf32, #tpu.memory_space<vmem>>, vector<49x4xf32>,
    %c0_24 = arith.constant 0 : index
    %c2 = arith.constant 2 : index
    %c0_25 = arith.constant 0 : index
    %17 = tpu.strided_load %arg6[%c0_24, %c2, %c0_25] {strides = array<i32: 1, 2, 1>} : memref<8x16x4xf32, #tpu.memory_space<vmem>>, vector<7x7x4xf32>
    %18 = vector.shape_cast %17 : vector<7x7x4xf32> to vector<49x4xf32>
    %c0_26 = arith.constant 0 : index
    %c8 = arith.constant 8 : index
    %19 = vector.load %arg7[%c0_26, %c8] : memref<128x36xf32, #tpu.memory_space<vmem>>, vector<49x4xf32>
    tpu.vector_store %arg7[%c0_26, %c8], %18 {strides = array<i32>} : memref<128x36xf32, #tpu.memory_space<vmem>>, vector<49x4xf32>,
    %c1_27 = arith.constant 1 : index
    %c0_28 = arith.constant 0 : index
    %c0_29 = arith.constant 0 : index
    %20 = tpu.strided_load %arg6[%c1_27, %c0_28, %c0_29] {strides = array<i32: 1, 2, 1>} : memref<8x16x4xf32, #tpu.memory_space<vmem>>, vector<7x7x4xf32>
    %21 = vector.shape_cast %20 : vector<7x7x4xf32> to vector<49x4xf32>
    %c0_30 = arith.constant 0 : index
    %c24 = arith.constant 24 : index
    %22 = vector.load %arg7[%c0_30, %c24] : memref<128x36xf32, #tpu.memory_space<vmem>>, vector<49x4xf32>
    tpu.vector_store %arg7[%c0_30, %c24], %21 {strides = array<i32>} : memref<128x36xf32, #tpu.memory_space<vmem>>, vector<49x4xf32>,
    %c1_31 = arith.constant 1 : index
    %c1_32 = arith.constant 1 : index
    %c0_33 = arith.constant 0 : index
    %23 = tpu.strided_load %arg6[%c1_31, %c1_32, %c0_33] {strides = array<i32: 1, 2, 1>} : memref<8x16x4xf32, #tpu.memory_space<vmem>>, vector<7x7x4xf32>
    %24 = vector.shape_cast %23 : vector<7x7x4xf32> to vector<49x4xf32>
    %c0_34 = arith.constant 0 : index
    %c28 = arith.constant 28 : index
    %25 = vector.load %arg7[%c0_34, %c28] : memref<128x36xf32, #tpu.memory_space<vmem>>, vector<49x4xf32>
    tpu.vector_store %arg7[%c0_34, %c28], %24 {strides = array<i32>} : memref<128x36xf32, #tpu.memory_space<vmem>>, vector<49x4xf32>,
    %c1_35 = arith.constant 1 : index
    %c2_36 = arith.constant 2 : index
    %c0_37 = arith.constant 0 : index
    %26 = tpu.strided_load %arg6[%c1_35, %c2_36, %c0_37] {strides = array<i32: 1, 2, 1>} : memref<8x16x4xf32, #tpu.memory_space<vmem>>, vector<7x7x4xf32>
    %27 = vector.shape_cast %26 : vector<7x7x4xf32> to vector<49x4xf32>
    %c0_38 = arith.constant 0 : index
    %c32 = arith.constant 32 : index
    %28 = vector.load %arg7[%c0_38, %c32] : memref<128x36xf32, #tpu.memory_space<vmem>>, vector<49x4xf32>
    tpu.vector_store %arg7[%c0_38, %c32], %27 {strides = array<i32>} : memref<128x36xf32, #tpu.memory_space<vmem>>, vector<49x4xf32>,
    %c1_39 = arith.constant 1 : index
    %c0_40 = arith.constant 0 : index
    %c0_41 = arith.constant 0 : index
    %29 = tpu.strided_load %arg5[%c1_39, %c0_40, %c0_41] {strides = array<i32: 2, 1, 1>} : memref<16x16x4xf32, #tpu.memory_space<vmem>>, vector<7x16x4xf32>
    %c0_42 = arith.constant 0 : index
    %c0_43 = arith.constant 0 : index
    %c0_44 = arith.constant 0 : index
    %30 = vector.load %arg6[%c0_42, %c0_43, %c0_44] : memref<8x16x4xf32, #tpu.memory_space<vmem>>, vector<7x16x4xf32>
    tpu.vector_store %arg6[%c0_42, %c0_43, %c0_44], %29 {strides = array<i32>} : memref<8x16x4xf32, #tpu.memory_space<vmem>>, vector<7x16x4xf32>,
    %c0_45 = arith.constant 0 : index
    %c0_46 = arith.constant 0 : index
    %c0_47 = arith.constant 0 : index
    %31 = tpu.strided_load %arg6[%c0_45, %c0_46, %c0_47] {strides = array<i32: 1, 2, 1>} : memref<8x16x4xf32, #tpu.memory_space<vmem>>, vector<7x7x4xf32>
    %32 = vector.shape_cast %31 : vector<7x7x4xf32> to vector<49x4xf32>
    %c0_48 = arith.constant 0 : index
    %c12 = arith.constant 12 : index
    %33 = vector.load %arg7[%c0_48, %c12] : memref<128x36xf32, #tpu.memory_space<vmem>>, vector<49x4xf32>
    tpu.vector_store %arg7[%c0_48, %c12], %32 {strides = array<i32>} : memref<128x36xf32, #tpu.memory_space<vmem>>, vector<49x4xf32>,
    %c0_49 = arith.constant 0 : index
    %c1_50 = arith.constant 1 : index
    %c0_51 = arith.constant 0 : index
    %34 = tpu.strided_load %arg6[%c0_49, %c1_50, %c0_51] {strides = array<i32: 1, 2, 1>} : memref<8x16x4xf32, #tpu.memory_space<vmem>>, vector<7x7x4xf32>
    %35 = vector.shape_cast %34 : vector<7x7x4xf32> to vector<49x4xf32>
    %c0_52 = arith.constant 0 : index
    %c16 = arith.constant 16 : index
    %36 = vector.load %arg7[%c0_52, %c16] : memref<128x36xf32, #tpu.memory_space<vmem>>, vector<49x4xf32>
    tpu.vector_store %arg7[%c0_52, %c16], %35 {strides = array<i32>} : memref<128x36xf32, #tpu.memory_space<vmem>>, vector<49x4xf32>,
    %c0_53 = arith.constant 0 : index
    %c2_54 = arith.constant 2 : index
    %c0_55 = arith.constant 0 : index
    %37 = tpu.strided_load %arg6[%c0_53, %c2_54, %c0_55] {strides = array<i32: 1, 2, 1>} : memref<8x16x4xf32, #tpu.memory_space<vmem>>, vector<7x7x4xf32>
    %38 = vector.shape_cast %37 : vector<7x7x4xf32> to vector<49x4xf32>
    %c0_56 = arith.constant 0 : index
    %c20 = arith.constant 20 : index
    %39 = vector.load %arg7[%c0_56, %c20] : memref<128x36xf32, #tpu.memory_space<vmem>>, vector<49x4xf32>
    tpu.vector_store %arg7[%c0_56, %c20], %38 {strides = array<i32>} : memref<128x36xf32, #tpu.memory_space<vmem>>, vector<49x4xf32>,
    %c0_57 = arith.constant 0 : index
    %c0_58 = arith.constant 0 : index
    %40 = vector.load %arg7[%c0_57, %c0_58] : memref<128x36xf32, #tpu.memory_space<vmem>>, vector<128x36xf32>
    %41 = tpu.transpose %40, [1, 0] : vector<128x36xf32> -> vector<36x128xf32>
    %cst_59 = arith.constant dense<0.000000e+00> : vector<8x128xf32>
    %42 = tpu.matmul %2, %41, %cst_59 {dimension_numbers = #tpu.dot_dimension_numbers<[1], [0], [0], [1], [0, 0, 1, 1], [], []>} : vector<8x36xf32>, vector<36x128xf32>, vector<8x128xf32> -> vector<8x128xf32>
    %43 = vector.broadcast %3 : vector<8x1xf32> to vector<8x128xf32>
    %44 = arith.addf %42, %43 : vector<8x128xf32>
    %cst_60 = arith.constant 0.000000e+00 : f32
    %45 = vector.broadcast %cst_60 : f32 to vector<8x128xf32>
    %46 = arith.maximumf %44, %45 : vector<8x128xf32>
    %c0_61 = arith.constant 0 : index
    %c0_62 = arith.constant 0 : index
    %c0_63 = arith.constant 0 : index
    %47 = vector.load %arg4[%c0_61, %c0_62, %c0_63] : memref<1x12x128xf32, #tpu.memory_space<vmem>>, vector<1x8x128xf32>
    %48 = vector.shape_cast %47 : vector<1x8x128xf32> to vector<8x128xf32>
    %49 = vector.shape_cast %46 : vector<8x128xf32> to vector<1x8x128xf32>
    tpu.vector_store %arg4[%c0_61, %c0_62, %c0_63], %49 {strides = array<i32>} : memref<1x12x128xf32, #tpu.memory_space<vmem>>, vector<1x8x128xf32>,
    %50 = vector.extract_strided_slice %41 {offsets = [0, 0], sizes = [4, 128], strides = [1, 1]} : vector<36x128xf32> to vector<4x128xf32>
    %51 = vector.extract_strided_slice %41 {offsets = [4, 0], sizes = [4, 128], strides = [1, 1]} : vector<36x128xf32> to vector<4x128xf32>
    %52 = arith.maximumf %50, %51 : vector<4x128xf32>
    %53 = vector.extract_strided_slice %41 {offsets = [8, 0], sizes = [4, 128], strides = [1, 1]} : vector<36x128xf32> to vector<4x128xf32>
    %54 = arith.maximumf %52, %53 : vector<4x128xf32>
    %55 = vector.extract_strided_slice %41 {offsets = [12, 0], sizes = [4, 128], strides = [1, 1]} : vector<36x128xf32> to vector<4x128xf32>
    %56 = arith.maximumf %54, %55 : vector<4x128xf32>
    %57 = vector.extract_strided_slice %41 {offsets = [16, 0], sizes = [4, 128], strides = [1, 1]} : vector<36x128xf32> to vector<4x128xf32>
    %58 = arith.maximumf %56, %57 : vector<4x128xf32>
    %59 = vector.extract_strided_slice %41 {offsets = [20, 0], sizes = [4, 128], strides = [1, 1]} : vector<36x128xf32> to vector<4x128xf32>
    %60 = arith.maximumf %58, %59 : vector<4x128xf32>
    %61 = vector.extract_strided_slice %41 {offsets = [24, 0], sizes = [4, 128], strides = [1, 1]} : vector<36x128xf32> to vector<4x128xf32>
    %62 = arith.maximumf %60, %61 : vector<4x128xf32>
    %63 = vector.extract_strided_slice %41 {offsets = [28, 0], sizes = [4, 128], strides = [1, 1]} : vector<36x128xf32> to vector<4x128xf32>
    %64 = arith.maximumf %62, %63 : vector<4x128xf32>
    %65 = vector.extract_strided_slice %41 {offsets = [32, 0], sizes = [4, 128], strides = [1, 1]} : vector<36x128xf32> to vector<4x128xf32>
    %66 = arith.maximumf %64, %65 : vector<4x128xf32>
    %c0_64 = arith.constant 0 : index
    %c8_65 = arith.constant 8 : index
    %c0_66 = arith.constant 0 : index
    %67 = vector.load %arg4[%c0_64, %c8_65, %c0_66] : memref<1x12x128xf32, #tpu.memory_space<vmem>>, vector<1x4x128xf32>
    %68 = vector.shape_cast %67 : vector<1x4x128xf32> to vector<4x128xf32>
    %69 = vector.shape_cast %66 : vector<4x128xf32> to vector<1x4x128xf32>
    tpu.vector_store %arg4[%c0_64, %c8_65, %c0_66], %69 {strides = array<i32>} : memref<1x12x128xf32, #tpu.memory_space<vmem>>, vector<1x4x128xf32>,
    return
  }
  func.func @transform_0(%arg0: i32) -> (i32, i32, i32) {
    %c0_i32 = arith.constant 0 : i32
    %c0_i32_0 = arith.constant 0 : i32
    %c0_i32_1 = arith.constant 0 : i32
    return %arg0, %c0_i32, %c0_i32_0 : i32, i32, i32
  }
  func.func @transform_1(%arg0: i32) -> (i32, i32) {
    %c0_i32 = arith.constant 0 : i32
    %c0_i32_0 = arith.constant 0 : i32
    %c0_i32_1 = arith.constant 0 : i32
    return %c0_i32, %c0_i32_0 : i32, i32
  }
  func.func @transform_2(%arg0: i32) -> (i32, i32) {
    %c0_i32 = arith.constant 0 : i32
    %c0_i32_0 = arith.constant 0 : i32
    %c0_i32_1 = arith.constant 0 : i32
    return %c0_i32, %c0_i32_0 : i32, i32
  }
  func.func @transform_3(%arg0: i32) -> (i32, i32, i32) {
    %c0_i32 = arith.constant 0 : i32
    %c0_i32_0 = arith.constant 0 : i32
    %c0_i32_1 = arith.constant 0 : i32
    return %arg0, %c0_i32, %c0_i32_0 : i32, i32, i32
  }
}

</mosaic_0001>

<bundles_post_ra>
// kernel: downsample_module.1
= control target key start
LH: loop header
LB: loop body
LE: loop exit
PB: predicated region body
PF: predicated region fallthrough
CT: control target
= control target key end

     0   :  { %s6939_s12 = smov 0   ;;  %s8714_s0 = inlined_call_operand.vmem [shape: f32[2,4,256], index: 0, kind: input, shape index: {}]   ;;  %s8715_s1 = inlined_call_operand.vmem [shape: f32[8,36], index: 1, kind: input, shape index: {}]   ;;  %s8716_s2 = inlined_call_operand.vmem [shape: f32[8,1], index: 2, kind: input, shape index: {}]   ;;  %s8717_s3 = inlined_call_operand.vmem [shape: f32[2,12,128], index: 3, kind: output, shape index: {}]  }
   0x1 LB: > { %s6793_s13 = sadd.s32 4294967295, %s6904_s12   ;;  %p6797_p0 = scmp.ge.s32.totalorder %s6904_s12, 1  ;;  %s6904_s12 = sphi %s6939_s12, %s13_s12  }
   0x2   : > { %p137_p1 = scmp.lt.s32.totalorder %s6904_s12, 3 }
   0x4   : > { %p138_p2 = pnand %p6797_p0, %p137_p1 }
   0x6   : > { %141 = sbr.rel (%p138_p2) target bundleno = 988 (0x3dc), region = 32 }
   0xd   : > { %p161_p3 = scmp.lt.s32.totalorder %s6793_s13, 1  ;;  %vm253_vm0 = vcmask 31744   ;;  %v6906_v6 = vmov 1966171168   ;;  %v342_v8 = vlaneseq  ;;  %s6907_s18 = smov 4   ;;  %vm1683_vm1 = vcmask 64544  }
   0xe   : > { %v340_v7 = vunpack.c.l.s4 %v6906_v6  ;;  %s6908_s19 = smov 8   ;;  %s6909_s20 = smov 28   ;;  %vm2378_vm2 = vcmask 97344   ;;  %vm3073_vm3 = vcmask 228544   ;;  %vm3768_vm4 = vcmask 261344  }
   0xf   : > { %s8833_s13 = smov (!%p161_p3, %s6793_s13), 1  ;;  %v343_v12 = vshrl.u32 %v342_v8, 7  ;;  %s6910_s21 = smov 24   ;;  %vm4463_vm5 = vcmask 294144   ;;  %vm5180_vm6 = vcmask 130144   ;;  %vm5868_vm7 = vcmask 162944  }
  0x10   : > { %s6842_s14 = sshll.u32 %s8833_s13, 3  ;;  %v341_v11 = vunpack.c.0.s8 %v340_v7  ;;  %s6911_s22 = smov 32   ;;  %vm6556_vm8 = vcmask 195744   ;;  %vm995_vm9 = vcmask 24576   ;;  %vm1690_vm10 = vcmask 57376  }
  0x11   : > { %s165_s17 = scalar_lea.vmem %s8714_s0, %s6842_s14  ;;  %s6912_s23 = smov 12   ;;  %vm2385_vm11 = vcmask 90176   ;;  %vm3080_vm12 = vcmask 221376   ;;  %vm3775_vm13 = vcmask 254176   ;;  %vm171_vm14 = vcmask 293888  }
  0x12   : > { %v185_v0 = vld [vmem:[%s165_s17] sm:$0xff]  ;;  %v6960_v14 = vsub.s32 %v341_v11, %v343_v12  ;;  %s6913_s24 = smov 16   ;;  %s6914_s25 = smov 20   ;;  %vm181_vm15 = vcmask 292864  }
  0x13   : > { %189 = vxpose.xlu0.b32.start.end [1/1] (short) %v185_v0, 128  ;;  %v187_v1 = vcombine.high %v185_v0, %v185_v0  ;;  %s6843_s28 = sshll.u32 %s8833_s13, 4 }
  0x14   : > { %s170_s4 = scalar_lea.vmem %s8717_s3, %s6843_s28 }
  0x50   : > { %221 = vxpose.xlu0.b32.start.end [1/1] (short) %v187_v1, 128 }
  0x93   : > { %v205_v2 = vpop.trf.xlu0 }
  0x94   : > { %254 = vst.msk [vmem:[#allocation2] sm:$0xff] %vm253_vm0, %v205_v2 }
  0x97   : > { %v206_v3 = vpop.trf.xlu0 }
  0x98   : > { %255 = vst.msk [vmem:[#allocation2 + $0x8] sm:$0xff] %vm253_vm0, %v206_v3 }
  0x9b   : > { %v286_v4 = vld [vmem:[#allocation2] sm:$0xff]  ;;  %v207_v5 = vpop.trf.xlu0 }
  0x9c   : > { %302 = vst.msk [vmem:[#allocation3] sm:$0xff] %vm253_vm0, %v286_v4  ;;  %256 = vst.msk [vmem:[#allocation2 + $0x10] sm:$0xff] %vm253_vm0, %v207_v5 }
  0x9f   : > { %v287_v9 = vld [vmem:[#allocation2 + $0x8] sm:$0xff]  ;;  %v208_v10 = vpop.trf.xlu0 }
  0xa0   : > { %303 = vst.msk [vmem:[#allocation3 + $0x8] sm:$0xff] %vm253_vm0, %v287_v9  ;;  %257 = vst.msk [vmem:[#allocation2 + $0x18] sm:$0xff] %vm253_vm0, %v208_v10 }
  0xa3   : > { %v209_v13 = vpop.trf.xlu0  ;;  %v4473_v15 = vld [vmem:[#allocation2 + $0x10] sm:$0xff] }
  0xa4   : > { %258 = vst.msk [vmem:[#allocation2 + $0x20] sm:$0xff] %vm253_vm0, %v209_v13 }
  0xa7   : > { %v4474_v16 = vld [vmem:[#allocation2 + $0x18] sm:$0xff]  ;;  %v210_v17 = vpop.trf.xlu0  ;;  %v998_v18 = vld [vmem:[#allocation3 + $0x1] ss:$2 sm:$0x7f] }
  0xa8   : > { %259 = vst.msk [vmem:[#allocation2 + $0x28] sm:$0xff] %vm253_vm0, %v210_v17  ;;  %v1018_v19 = vcombine.high %v998_v18, %v998_v18  ;;  %v1025_v20 = vrot.slane %v998_v18, %v6960_v14  ;;  %v318_v21 = vld [vmem:[#allocation3] ss:$2 sm:$0x7f] }
  0xa9   : > { %v1693_v22 = vld [vmem:[#allocation3 + $0x2] ss:$2 sm:$0x7f]  ;;  %v338_v25 = vcombine.high %v318_v21, %v318_v21  ;;  %v6968_v26 = vrot.slane %v318_v21, %v6960_v14 }
  0xaa   : > { %v1713_v23 = vcombine.high %v1693_v22, %v1693_v22  ;;  %v1720_v24 = vrot.slane %v1693_v22, %v6960_v14  ;;  %4487 = vst.msk [vmem:[#allocation3] sm:$0xff] %vm253_vm0, %v4473_v15  ;;  %4488 = vst.msk [vmem:[#allocation3 + $0x8] sm:$0xff] %vm253_vm0, %v4474_v16  ;;  %v1032_v27 = vrot.slane %v1018_v19, %v6960_v14 }
  0xab   : > { %v1033_v28 = vcombine.high %v1025_v20, %v1025_v20  ;;  %v288_v29 = vld [vmem:[#allocation2 + $0x20] sm:$0xff]  ;;  %v211_v30 = vpop.trf.xlu0  ;;  %v6973_v33 = vrot.slane %v338_v25, %v6960_v14  ;;  %v1041_v35 = vrot.slane %v1025_v20, %v6960_v14  ;;  %v353_v41 = vcombine.high %v6968_v26, %v6968_v26 }
  0xac   : > { %v1727_v31 = vrot.slane %v1713_v23, %v6960_v14  ;;  %v1728_v32 = vcombine.high %v1720_v24, %v1720_v24  ;;  %304 = vst.msk [vmem:[#allocation3 + $0x10] sm:$0xff] %vm253_vm0, %v288_v29  ;;  %260 = vst.msk [vmem:[#allocation2 + $0x30] sm:$0xff] %vm253_vm0, %v211_v30  ;;  %v1034_v34 = vcombine.high %v1032_v27, %v1032_v27 }
  0xad   : > { %v6979_v36 = vrot.slane %v1032_v27, %v6960_v14  ;;  %v1055_v37 = vrot.slane %v1033_v28, %v6960_v14  ;;  %v1736_v39 = vrot.slane %v1720_v24, %v6960_v14  ;;  %v354_v51 = vcombine.high %v6973_v33, %v6973_v33 }
  0xae   : > { %v1729_v38 = vcombine.high %v1727_v31, %v1727_v31  ;;  %v1750_v40 = vrot.slane %v1728_v32, %v6960_v14  ;;  %v1062_v42 = vrot.slane %v1034_v34, %v6960_v14  ;;  %v6988_v45 = vrot.slane %v1727_v31, %v6960_v14 }
  0xaf   : > { %v1354_v43 = vcombine.low %v1041_v35, %v1055_v37  ;;  %v6806_v44 = vcombine.high %v1041_v35, %v1055_v37  ;;  %v289_v46 = vld [vmem:[#allocation2 + $0x28] sm:$0xff]  ;;  %v212_v47 = vpop.trf.xlu0  ;;  %v1064_v52 = vcombine.high %v6979_v36, %v6979_v36  ;;  %v7010_v6 = vrot.slane %v6968_v26, %v6960_v14 }
  0xb0   : > { %v1757_v48 = vrot.slane %v1729_v38, %v6960_v14  ;;  %v2049_v49 = vcombine.low %v1736_v39, %v1750_v40  ;;  %v6810_v50 = vcombine.high %v1736_v39, %v1750_v40  ;;  %305 = vst.msk [vmem:[#allocation3 + $0x18] sm:$0xff] %vm253_vm0, %v289_v46  ;;  %261 = vst.msk [vmem:[#allocation2 + $0x38] sm:$0xff] %vm253_vm0, %v212_v47 }
  0xb1   : > { %v1356_v53 = vcombine.low %v6979_v36, %v1062_v42  ;;  %v1364_v54 = vrot.slane %v1354_v43, %v6960_v14  ;;  %v1371_v55 = vrot.slane %v6806_v44, %v6960_v14  ;;  %v4501_v56 = vld [vmem:[#allocation3] ss:$2 sm:$0x7f]  ;;  %v5189_v57 = vld [vmem:[#allocation3 + $0x1] ss:$2 sm:$0x7f]  ;;  %v1759_v63 = vcombine.high %v6988_v45, %v6988_v45 }
  0xb2   : > { %v2051_v58 = vcombine.low %v6988_v45, %v1757_v48  ;;  %v2059_v59 = vrot.slane %v2049_v49, %v6960_v14  ;;  %v2066_v60 = vrot.slane %v6810_v50, %v6960_v14  ;;  %v4515_v61 = vcombine.high %v4501_v56, %v4501_v56  ;;  %v5877_v20 = vld [vmem:[#allocation3 + $0x2] ss:$2 sm:$0x7f] }
  0xb3   : > { %v1386_v62 = vcombine.low %v1364_v54, %v1371_v55  ;;  %v4522_v0 = vrot.slane %v4501_v56, %v6960_v14  ;;  %v5203_v1 = vcombine.high %v5189_v57, %v5189_v57  ;;  %v213_v2 = vpop.trf.xlu0  ;;  %v5210_v5 = vrot.slane %v5189_v57, %v6960_v14  ;;  %v4475_v44 = vld [vmem:[#allocation2 + $0x30] sm:$0xff] }
  0xb4   : > { %v2081_v3 = vcombine.low %v2059_v59, %v2066_v60  ;;  %v4529_v4 = vrot.slane %v4515_v61, %v6960_v14  ;;  %262 = vst.msk [vmem:[#allocation2 + $0x40] sm:$0xff] %vm253_vm0, %v213_v2  ;;  %v7014_v7 = vrot.slane %v1356_v53, %v6960_v14  ;;  %v7017_v8 = vrot.slane %v2051_v58, %v6960_v14 }
  0xb5   : > { %v4530_v9 = vcombine.high %v4522_v0, %v4522_v0  ;;  %v5217_v10 = vrot.slane %v5203_v1, %v6960_v14  ;;  %v7021_v11 = vrot.slane %v1386_v62, %v6960_v14  ;;  %v5218_v15 = vcombine.high %v5210_v5, %v5210_v5 }
  0xb6   : > { %v4531_v12 = vcombine.high %v4529_v4, %v4529_v4  ;;  %v7024_v13 = vrot.slane %v4529_v4, %v6960_v14  ;;  %v7027_v16 = vrot.slane %v2081_v3, %v6960_v14  ;;  %v4538_v17 = vrot.slane %v4522_v0, %v6960_v14 }
  0xb7   : > { %v4552_v18 = vrot.slane %v4530_v9, %v6960_v14  ;;  %v5219_v19 = vcombine.high %v5217_v10, %v5217_v10  ;;  %v4476_v21 = vld [vmem:[#allocation2 + $0x38] sm:$0xff]  ;;  %v214_v22 = vpop.trf.xlu0  ;;  %v5226_v25 = vrot.slane %v5210_v5, %v6960_v14  ;;  %v7036_v27 = vrot.slane %v5217_v10, %v6960_v14 }
  0xb8   : > { %v7031_v23 = vld [vmem:[#allocation3 + $0x11] ss:$2 sm:$0x7f]  ;;  %v4559_v24 = vrot.slane %v4531_v12, %v6960_v14  ;;  %v5240_v28 = vrot.slane %v5218_v15, %v6960_v14  ;;  %263 = vst.msk [vmem:[#allocation2 + $0x48] sm:$0xff] %vm253_vm0, %v214_v22  ;;  %v4561_v40 = vcombine.high %v7024_v13, %v7024_v13  ;;  %v5891_v49 = vcombine.high %v5877_v20, %v5877_v20 }
  0xb9   : > { %v7042_v29 = vrot.slane %v7031_v23, %v6960_v14  ;;  %v7044_v30 = vld [vmem:[#allocation3 + $0x12] ss:$2 sm:$0x7f]  ;;  %v4851_v32 = vcombine.low %v4538_v17, %v4552_v18  ;;  %v6826_v34 = vcombine.high %v4538_v17, %v4552_v18  ;;  %v5247_v35 = vrot.slane %v5219_v19, %v6960_v14  ;;  %v7051_v38 = vld [vmem:[#allocation3 + $0x11] ss:$2 sm:$0x7f] }
  0xba   : > { %v2388_v31 = vld [vmem:[#allocation3 + $0x10] ss:$2 sm:$0x7f]  ;;  %v7049_v37 = vrot.slane %v7044_v30, %v6960_v14  ;;  %v4853_v42 = vcombine.low %v7024_v13, %v4559_v24  ;;  %v5539_v43 = vcombine.low %v5226_v25, %v5240_v28  ;;  %v5249_v55 = vcombine.high %v7036_v27, %v7036_v27 }
  0xbb   : > { %v7053_v39 = vld [vmem:[#allocation3 + $0x12] ss:$2 sm:$0x7f]  ;;  %v7060_v45 = vrot.slane %v7042_v29, %v6960_v14  ;;  %v4861_v47 = vrot.slane %v4851_v32, %v6960_v14  ;;  %v4868_v48 = vrot.slane %v6826_v34, %v6960_v14  ;;  %v290_v50 = vld [vmem:[#allocation2 + $0x40] sm:$0xff]  ;;  %v215_v53 = vpop.trf.xlu0  ;;  %v6830_v56 = vcombine.high %v5226_v25, %v5240_v28 }
  0xbc   : > { %v7062_v46 = vld [vmem:[#allocation3 + $0x10] ss:$2 sm:$0x7f]  ;;  %v7068_v54 = vrot.slane %v7049_v37, %v6960_v14  ;;  %v5541_v57 = vcombine.low %v7036_v27, %v5247_v35  ;;  %306 = vst.msk [vmem:[#allocation3 + $0x20] sm:$0xff] %vm253_vm0, %v290_v50  ;;  %264 = vst.msk [vmem:[#allocation2 + $0x50] sm:$0xff] %vm253_vm0, %v215_v53  ;;  %v1081_v59 = vcombine.high %v7042_v29, %v7042_v29 }
  0xbd   : > { %8752 = vst [vmem:[#allocation5_spill] sm:$0xff] %v7062_v46  ;;  %4489 = vst.msk [vmem:[#allocation3 + $0x10] sm:$0xff] %vm253_vm0, %v4475_v44  ;;  %v1357_v58 = vcombine.low %v1064_v52, %v7060_v45  ;;  %v4883_v60 = vcombine.low %v4861_v47, %v4868_v48  ;;  %v7084_v61 = vrot.slane %v5539_v43, %v6960_v14 }
  0xbe   : > { %4490 = vst.msk [vmem:[#allocation3 + $0x18] sm:$0xff] %vm253_vm0, %v4476_v21  ;;  %v2052_v62 = vcombine.low %v1759_v63, %v7068_v54  ;;  %v7088_v0 = vrot.slane %v4853_v42, %v6960_v14  ;;  %v7091_v1 = vrot.slane %v6830_v56, %v6960_v14  ;;  %v5898_v2 = vrot.slane %v5877_v20, %v6960_v14 }
  0xbf   : > { %v1385_v36 = vrot.slane %v1357_v58, %v6960_v14  ;;  %v5905_v3 = vrot.slane %v5891_v49, %v6960_v14  ;;  %v2408_v4 = vcombine.high %v2388_v31, %v2388_v31  ;;  %v291_v5 = vld [vmem:[#allocation2 + $0x48] sm:$0xff]  ;;  %v216_v9 = vpop.trf.xlu0  ;;  %v7100_v10 = vrot.slane %v4883_v60, %v6960_v14 }
  0xc0   : > { %v2080_v63 = vrot.slane %v2052_v62, %v6960_v14  ;;  %v7103_v12 = vrot.slane %v5541_v57, %v6960_v14  ;;  %v5906_v15 = vcombine.high %v5898_v2, %v5898_v2  ;;  %307 = vst.msk [vmem:[#allocation3 + $0x28] sm:$0xff] %vm253_vm0, %v291_v5  ;;  %265 = vst.msk [vmem:[#allocation2 + $0x58] sm:$0xff] %vm253_vm0, %v216_v9 }
  0xc1   : > { %v1387_v17 = vcombine.low %v7014_v7, %v1385_v36  ;;  %v5571_v18 = vcombine.low %v7084_v61, %v7091_v1  ;;  %v5907_v19 = vcombine.high %v5905_v3, %v5905_v3  ;;  %v2415_v20 = vrot.slane %v2388_v31, %v6960_v14 }
  0xc2   : > { %v2082_v21 = vcombine.low %v7017_v8, %v2080_v63  ;;  %v5914_v22 = vrot.slane %v5898_v2, %v6960_v14  ;;  %v5921_v24 = vrot.slane %v5905_v3, %v6960_v14  ;;  %v5928_v25 = vrot.slane %v5906_v15, %v6960_v14 }
  0xc3   : > { %v1401_v28 = vrot.slane %v1387_v17, %v6960_v14  ;;  %v5935_v7 = vrot.slane %v5907_v19, %v6960_v14  ;;  %v2422_v35 = vrot.slane %v2408_v4, %v6960_v14  ;;  %v2423_v42 = vcombine.high %v2415_v20, %v2415_v20  ;;  %v217_v43 = vpop.trf.xlu0 }
  0xc4   : > { %v2096_v31 = vrot.slane %v2082_v21, %v6960_v14  ;;  %v6227_v48 = vcombine.low %v5914_v22, %v5928_v25  ;;  %266 = vst.msk [vmem:[#allocation2 + $0x60] sm:$0xff] %vm253_vm0, %v217_v43  ;;  %v6834_v53 = vcombine.high %v5914_v22, %v5928_v25  ;;  %v5937_v60 = vcombine.high %v5921_v24, %v5921_v24 }
  0xc5   : > { %v4502_v32 = vld [vmem:[#allocation3 + $0x10] ss:$2 sm:$0x7f]  ;;  %v5190_v34 = vld [vmem:[#allocation3 + $0x11] ss:$2 sm:$0x7f]  ;;  %v1402_v49 = vcombine.low %v7021_v11, %v1401_v28  ;;  %v6229_v56 = vcombine.low %v5921_v24, %v5935_v7  ;;  %v2424_v3 = vcombine.high %v2422_v35, %v2422_v35  ;;  %v2438_v17 = vrot.slane %v2422_v35, %v6960_v14 }
  0xc6   : > { %v7120_v8 = vrot.slane %v4502_v32, %v6960_v14  ;;  %v7123_v44 = vrot.slane %v5190_v34, %v6960_v14  ;;  %v5878_v47 = vld [vmem:[#allocation3 + $0x12] ss:$2 sm:$0x7f]  ;;  %v6237_v62 = vrot.slane %v6227_v48, %v6960_v14  ;;  %v2097_v11 = vcombine.low %v7027_v16, %v2096_v31 }
  0xc7   : > { %v7128_v50 = vrot.slane %v5878_v47, %v6960_v14  ;;  %1662 = vrot.lane.b32.xlu1 %v1402_v49, %s6907_s18  ;;  %v6244_v36 = vrot.slane %v6834_v53, %v6960_v14  ;;  %v4478_v4 = vld [vmem:[#allocation2 + $0x58] sm:$0xff]  ;;  %v218_v5 = vpop.trf.xlu0  ;;  %v6251_v16 = vrot.slane %v6229_v56, %v6960_v14  ;;  %v7155_v15 = vld [vmem:[#allocation3 + $0x20] ss:$2 sm:$0x7f]  ;;  %v2431_v21 = vrot.slane %v2415_v20, %v6960_v14  ;;  %v4477_v34 = vld [vmem:[#allocation2 + $0x50] sm:$0xff] }
  0xc8   : > { %v7132_v57 = vrot.slane %v7120_v8, %v6960_v14  ;;  %v7136_v58 = vrot.slane %v7123_v44, %v6960_v14  ;;  %8754 = vst [vmem:[#allocation7_spill] sm:$0xff] %v7155_v15  ;;  %267 = vst.msk [vmem:[#allocation2 + $0x68] sm:$0xff] %vm253_vm0, %v218_v5  ;;  %v2445_v13 = vrot.slane %v2423_v42, %v6960_v14  ;;  %v7163_v22 = vld [vmem:[#allocation3 + $0x21] ss:$2 sm:$0x7f] }
  0xc9   : > { %v7143_v2 = vrot.slane %v7128_v50, %v6960_v14  ;;  %8755 = vst [vmem:[#allocation8_spill] sm:$0xff] %v7163_v22  ;;  %v7165_v27 = vld [vmem:[#allocation3 + $0x22] ss:$2 sm:$0x7f]  ;;  %v6259_v25 = vcombine.low %v6237_v62, %v6244_v36  ;;  %v7171_v28 = vrot.slane %v7155_v15, %v6960_v14  ;;  %v2454_v35 = vcombine.high %v2438_v17, %v2438_v17 }
  0xca   : > { %v4854_v9 = vcombine.low %v4561_v40, %v7132_v57  ;;  %v5542_v63 = vcombine.low %v5249_v55, %v7136_v58  ;;  %v2452_v40 = vrot.slane %v2424_v3, %v6960_v14  ;;  %8756 = vst [vmem:[#allocation9_spill] sm:$0xff] %v7165_v27  ;;  %v7173_v32 = vld [vmem:[#allocation3 + $0x21] ss:$2 sm:$0x7f]  ;;  %v2744_v42 = vcombine.low %v2431_v21, %v2445_v13 }
  0xcb   : > { %8753 = vst [vmem:[#allocation6_spill] sm:$0xff] %v7143_v2  ;;  %v6230_v19 = vcombine.low %v5937_v60, %v7143_v2  ;;  %8757 = vst [vmem:[#allocation10_spill] sm:$0xff] %v7171_v28  ;;  %v7175_v20 = vld [vmem:[#allocation3 + $0x20] ss:$2 sm:$0x7f]  ;;  %2357 = vrot.lane.b32.xlu1 %v2097_v11, %s6908_s19  ;;  %v6814_v43 = vcombine.high %v2431_v21, %v2445_v13  ;;  %v219_v48 = vpop.trf.xlu0  ;;  %v7185_v56 = vrot.slane %v7171_v28, %v6960_v14 }
  0xcc   : > { %v4882_v55 = vrot.slane %v4854_v9, %v6960_v14  ;;  %v5570_v24 = vrot.slane %v5542_v63, %v6960_v14  ;;  %8758 = vst [vmem:[#allocation11_spill] sm:$0xff] %v7173_v32  ;;  %8759 = vst [vmem:[#allocation12_spill] sm:$0xff] %v7175_v20  ;;  %v7179_v31 = vld [vmem:[#allocation3 + $0x22] ss:$2 sm:$0x7f]  ;;  %v2746_v60 = vcombine.low %v2438_v17, %v2452_v40 }
  0xcd   : > { %v6258_v7 = vrot.slane %v6230_v19, %v6960_v14  ;;  %v292_v47 = vld [vmem:[#allocation2 + $0x60] sm:$0xff]  ;;  %8760 = vst [vmem:[#allocation13_spill] sm:$0xff] %v7185_v56  ;;  %4491 = vst.msk [vmem:[#allocation3 + $0x20] sm:$0xff] %vm253_vm0, %v4477_v34  ;;  %v2754_v11 = vrot.slane %v2744_v42, %v6960_v14  ;;  %v5579_v3 = vrot.slane %v5571_v18, %v6960_v14 }
  0xce   : > { %v4884_v49 = vcombine.low %v7088_v0, %v4882_v55  ;;  %v5572_v53 = vcombine.low %v7103_v12, %v5570_v24  ;;  %4492 = vst.msk [vmem:[#allocation3 + $0x28] sm:$0xff] %vm253_vm0, %v4478_v4  ;;  %308 = vst.msk [vmem:[#allocation3 + $0x30] sm:$0xff] %vm253_vm0, %v292_v47  ;;  %v2761_v0 = vrot.slane %v6814_v43, %v6960_v14 }
  0xcf   : > { %268 = vst.msk [vmem:[#allocation2 + $0x70] sm:$0xff] %vm253_vm0, %v219_v48  ;;  %v6260_v62 = vcombine.low %v6251_v16, %v6258_v7  ;;  %v3103_v12 = vcombine.high %v7051_v38, %v7051_v38  ;;  %v2747_v5 = vcombine.low %v2454_v35, %v7185_v56  ;;  %v6267_v9 = vrot.slane %v6259_v25, %v6960_v14  ;;  %v293_v19 = vld [vmem:[#allocation2 + $0x68] sm:$0xff]  ;;  %v220_v21 = vpop.trf.xlu0 }
  0xd0   : > { %v4898_v36 = vrot.slane %v4884_v49, %v6960_v14  ;;  %v5586_v4 = vrot.slane %v5572_v53, %v6960_v14  ;;  %v2768_v63 = vrot.slane %v2746_v60, %v6960_v14  ;;  %v3110_v16 = vrot.slane %v7051_v38, %v6960_v14  ;;  %309 = vst.msk [vmem:[#allocation3 + $0x38] sm:$0xff] %vm253_vm0, %v293_v19 }
  0xd1   : > { %v3117_v17 = vrot.slane %v3103_v12, %v6960_v14  ;;  %v6274_v13 = vrot.slane %v6260_v62, %v6960_v14  ;;  %v2775_v61 = vrot.slane %v2747_v5, %v6960_v14  ;;  %v2776_v1 = vcombine.low %v2754_v11, %v2761_v0  ;;  %269 = vst.msk [vmem:[#allocation2 + $0x78] sm:$0xff] %vm253_vm0, %v220_v21 }
  0xd2   : > { %v7211_v18 = vrot.slane %v7163_v22, %v6960_v14  ;;  %v7216_v40 = vcombine.low %v7100_v10, %v4898_v36  ;;  %v7218_v38 = vcombine.low %v5579_v3, %v5586_v4  ;;  %v3118_v55 = vcombine.high %v3110_v16, %v3110_v16 }
  0xd3   : > { %v3119_v24 = vcombine.high %v3117_v17, %v3117_v17  ;;  %v7220_v25 = vcombine.low %v2768_v63, %v2775_v61  ;;  %v3126_v34 = vrot.slane %v3110_v16, %v6960_v14  ;;  %v3133_v7 = vrot.slane %v3117_v17, %v6960_v14  ;;  %v237_v48 = vpop.trf.xlu0 }
  0xd4   : > { %8761 = vst [vmem:[#allocation14_spill] sm:$0xff] %v7211_v18  ;;  %v7226_v35 = vrot.slane %v7211_v18, %v6960_v14  ;;  %v3140_v42 = vrot.slane %v3118_v55, %v6960_v14  ;;  %v3798_v10 = vcombine.high %v7053_v39, %v7053_v39  ;;  %v3805_v47 = vrot.slane %v7053_v39, %v6960_v14 }
  0xd5   : > { %v3147_v43 = vrot.slane %v3119_v24, %v6960_v14  ;;  %v7234_v49 = vcombine.low %v6267_v9, %v6274_v13  ;;  %v2784_v53 = vrot.slane %v2776_v1, %v6960_v14  ;;  %v3149_v60 = vcombine.high %v3133_v7, %v3133_v7  ;;  %270 = vst.msk [vmem:[#allocation2 + $0x80] sm:$0xff] %vm253_vm0, %v237_v48 }
  0xd6   : > { %8762 = vst [vmem:[#allocation15_spill] sm:$0xff] %v7226_v35  ;;  %v7239_v62 = vrot.slane %v7165_v27, %v6960_v14  ;;  %v3439_v11 = vcombine.low %v3126_v34, %v3140_v42  ;;  %v6818_v0 = vcombine.high %v3126_v34, %v3140_v42  ;;  %v3812_v36 = vrot.slane %v3798_v10, %v6960_v14 }
  0xd7   : > { %v3441_v12 = vcombine.low %v3133_v7, %v3147_v43  ;;  %v2791_v39 = vrot.slane %v7220_v25, %v6960_v14  ;;  %v3442_v3 = vcombine.low %v3149_v60, %v7226_v35  ;;  %v3813_v4 = vcombine.high %v3805_v47, %v3805_v47  ;;  %v238_v21 = vpop.trf.xlu0  ;;  %v7250_v13 = vld [vmem:[#allocation3 + $0x30] ss:$2 sm:$0x7f]  ;;  %v7260_v25 = vld [vmem:[#allocation3 + $0x31] ss:$2 sm:$0x7f] }
  0xd8   : > { %8763 = vst [vmem:[#allocation16_spill] sm:$0xff] %v7239_v62  ;;  %v3821_v5 = vrot.slane %v3805_v47, %v6960_v14  ;;  %v3449_v9 = vrot.slane %v3439_v11, %v6960_v14  ;;  %v3456_v63 = vrot.slane %v6818_v0, %v6960_v14  ;;  %v3814_v17 = vcombine.high %v3812_v36, %v3812_v36  ;;  %v4480_v19 = vld [vmem:[#allocation2 + $0x78] sm:$0xff] }
  0xd9   : > { %v3463_v16 = vrot.slane %v3441_v12, %v6960_v14  ;;  %8764 = vst [vmem:[#allocation17_spill] sm:$0xff] %v7250_v13  ;;  %v3470_v61 = vrot.slane %v3442_v3, %v6960_v14  ;;  %v3828_v1 = vrot.slane %v3812_v36, %v6960_v14  ;;  %v3835_v55 = vrot.slane %v3813_v4, %v6960_v14  ;;  %v7262_v34 = vld [vmem:[#allocation3 + $0x32] ss:$2 sm:$0x7f] }
  0xda   : > { %v7257_v24 = vrot.slane %v7239_v62, %v6960_v14  ;;  %271 = vst.msk [vmem:[#allocation2 + $0x88] sm:$0xff] %vm253_vm0, %v238_v21  ;;  %8766 = vst [vmem:[#allocation19_spill] sm:$0xff] %v7260_v25  ;;  %v3471_v7 = vcombine.low %v3449_v9, %v3456_v63  ;;  %v3842_v42 = vrot.slane %v3814_v17, %v6960_v14  ;;  %v7273_v47 = vld [vmem:[#allocation3 + $0x30] ss:$2 sm:$0x7f] }
  0xdb   : > { %8767 = vst [vmem:[#allocation20_spill] sm:$0xff] %v7262_v34  ;;  %v7267_v43 = vrot.slane %v6973_v33, %v6960_v14  ;;  %v375_v10 = vrot.slane %v353_v41, %v6960_v14  ;;  %8768 = vst [vmem:[#allocation21_spill] sm:$0xff] %v7273_v47  ;;  %v3087_v48 = vld [vmem:[#allocation3 + $0x31] ss:$2 sm:$0x7f]  ;;  %v3472_v60 = vcombine.low %v3463_v16, %v3470_v61  ;;  %v239_v17 = vpop.trf.xlu0 }
  0xdc   : > { %8765 = vst [vmem:[#allocation18_spill] sm:$0xff] %v7257_v24  ;;  %v3844_v11 = vcombine.high %v3828_v1, %v3828_v1  ;;  %v4134_v0 = vcombine.low %v3821_v5, %v3835_v55  ;;  %v6822_v12 = vcombine.high %v3821_v5, %v3835_v55  ;;  %v4479_v36 = vld [vmem:[#allocation2 + $0x70] sm:$0xff]  ;;  %v3199_v3 = vcombine.high %v3087_v48, %v3087_v48  ;;  %v294_v41 = vld [vmem:[#allocation2 + $0x80] sm:$0xff] }
  0xdd   : > { %v3206_v4 = vrot.slane %v3087_v48, %v6960_v14  ;;  %v7276_v9 = vld [vmem:[#allocation3 + $0x32] ss:$2 sm:$0x7f]  ;;  %v4136_v63 = vcombine.low %v3828_v1, %v3842_v42  ;;  %v382_v26 = vrot.slane %v354_v51, %v6960_v14  ;;  %v3486_v5 = vrot.slane %v3472_v60, %v6960_v14  ;;  %310 = vst.msk [vmem:[#allocation3 + $0x40] sm:$0xff] %vm253_vm0, %v294_v41 }
  0xde   : > { %8769 = vst [vmem:[#allocation22_spill] sm:$0xff] %v7276_v9  ;;  %4493 = vst.msk [vmem:[#allocation3 + $0x30] sm:$0xff] %vm253_vm0, %v4479_v36  ;;  %v4137_v16 = vcombine.low %v3844_v11, %v7257_v24  ;;  %v4144_v21 = vrot.slane %v4134_v0, %v6960_v14  ;;  %v4151_v61 = vrot.slane %v6822_v12, %v6960_v14 }
  0xdf   : > { %4494 = vst.msk [vmem:[#allocation3 + $0x38] sm:$0xff] %vm253_vm0, %v4480_v19  ;;  %272 = vst.msk [vmem:[#allocation2 + $0x90] sm:$0xff] %vm253_vm0, %v239_v17  ;;  %v3213_v33 = vrot.slane %v3199_v3, %v6960_v14  ;;  %v3214_v51 = vcombine.high %v3206_v4, %v3206_v4  ;;  %v7291_v1 = vcombine.low %v2784_v53, %v2791_v39  ;;  %v240_v36 = vpop.trf.xlu0 }
  0xe0   : > { %v3479_v55 = vrot.slane %v3471_v7, %v6960_v14  ;;  %v7295_v19 = vrot.slane %v3206_v4, %v6960_v14  ;;  %v4158_v42 = vrot.slane %v4136_v63, %v6960_v14  ;;  %v4165_v48 = vrot.slane %v4137_v16, %v6960_v14  ;;  %273 = vst.msk [vmem:[#allocation2 + $0x98] sm:$0xff] %vm253_vm0, %v240_v36 }
  0xe1   : > { %v4166_v60 = vcombine.low %v4144_v21, %v4151_v61  ;;  %v3215_v11 = vcombine.high %v3213_v33, %v3213_v33  ;;  %v7300_v0 = vrot.slane %v3213_v33, %v6960_v14  ;;  %v7303_v12 = vrot.slane %v3214_v51, %v6960_v14  ;;  %v295_v39 = vld [vmem:[#allocation2 + $0x88] sm:$0xff] }
  0xe2   : > { %8770 = vst [vmem:[#allocation23_spill] sm:$0xff] %v7295_v19  ;;  %v674_v53 = vcombine.low %v7010_v6, %v375_v10  ;;  %v7306_v7 = vcombine.low %v3479_v55, %v3486_v5  ;;  %v4167_v3 = vcombine.low %v4158_v42, %v4165_v48  ;;  %v6802_v4 = vcombine.high %v7010_v6, %v375_v10 }
  0xe3   : > { %8771 = vst [vmem:[#allocation24_spill] sm:$0xff] %v7303_v12  ;;  %v676_v63 = vcombine.low %v7267_v43, %v382_v26  ;;  %311 = vst.msk [vmem:[#allocation3 + $0x48] sm:$0xff] %vm253_vm0, %v295_v39  ;;  %v3243_v41 = vrot.slane %v3215_v11, %v6960_v14  ;;  %v6819_v17 = vcombine.high %v7295_v19, %v7303_v12  ;;  %v241_v42 = vpop.trf.xlu0 }
  0xe4   : > { %v384_v16 = vcombine.high %v7267_v43, %v7267_v43  ;;  %v684_v5 = vrot.slane %v674_v53, %v6960_v14  ;;  %v4174_v6 = vrot.slane %v4166_v60, %v6960_v14  ;;  %v4181_v10 = vrot.slane %v4167_v3, %v6960_v14  ;;  %274 = vst.msk [vmem:[#allocation2 + $0xa0] sm:$0xff] %vm253_vm0, %v241_v42 }
  0xe5   : > { %v691_v26 = vrot.slane %v6802_v4, %v6960_v14  ;;  %v3538_v61 = vcombine.low %v7300_v0, %v3243_v41  ;;  %v3547_v33 = vrot.slane %v6819_v17, %v6960_v14  ;;  %v7326_v55 = vrot.slane %v676_v63, %v6960_v14 }
  0xe6   : > { %v5880_v51 = vld [vmem:[#allocation3 + $0x32] ss:$2 sm:$0x7f]  ;;  %v7330_v43 = vrot.slane %v7062_v46, %v6960_v14  ;;  %v7335_v11 = vcombine.low %v4174_v6, %v4181_v10  ;;  %v1066_v3 = vcombine.high %v7031_v23, %v7031_v23  ;;  %v7349_v4 = vrot.slane %v1081_v59, %v6960_v14 }
  0xe7   : > { %v6035_v48 = vcombine.high %v5880_v51, %v5880_v51  ;;  %v7333_v60 = vrot.slane %v5880_v51, %v6960_v14  ;;  %v706_v53 = vcombine.low %v684_v5, %v691_v26  ;;  %v3554_v39 = vrot.slane %v3538_v61, %v6960_v14  ;;  %v4482_v10 = vld [vmem:[#allocation2 + $0x98] sm:$0xff]  ;;  %v242_v26 = vpop.trf.xlu0 }
  0xe8   : > { %8772 = vst [vmem:[#allocation25_spill] sm:$0xff] %v7330_v43  ;;  %v7341_v36 = vrot.slane %v7330_v43, %v6960_v14  ;;  %v7361_v5 = vrot.slane %v7173_v32, %v6960_v14  ;;  %v7367_v29 = vrot.slane %v1066_v3, %v6960_v14  ;;  %275 = vst.msk [vmem:[#allocation2 + $0xa8] sm:$0xff] %vm253_vm0, %v242_v26 }
  0xe9   : > { %8773 = vst [vmem:[#allocation26_spill] sm:$0xff] %v7333_v60  ;;  %v7352_v63 = vrot.slane %v6035_v48, %v6960_v14  ;;  %v6050_v41 = vcombine.high %v7333_v60, %v7333_v60  ;;  %v7357_v17 = vrot.slane %v706_v53, %v6960_v14  ;;  %v3569_v23 = vcombine.low %v3547_v33, %v3554_v39 }
  0xea   : > { %8774 = vst [vmem:[#allocation27_spill] sm:$0xff] %v7341_v36  ;;  %v7364_v6 = vcombine.low %v384_v16, %v7341_v36  ;;  %v3089_v61 = vld [vmem:[#allocation3 + $0x41] ss:$2 sm:$0x7f] }
  0xeb   : > { %v7375_v42 = vrot.slane %v7352_v63, %v6960_v14  ;;  %v7378_v33 = vrot.slane %v6050_v41, %v6960_v14  ;;  %v3254_v48 = vrot.slane %v3089_v61, %v6960_v14  ;;  %v7385_v53 = vrot.slane %v3569_v23, %v6960_v14  ;;  %v2394_v39 = vld [vmem:[#allocation3 + $0x40] ss:$2 sm:$0x7f]  ;;  %v7395_v26 = vld [vmem:[#allocation3 + $0x41] ss:$2 sm:$0x7f]  ;;  %v243_v46 = vpop.trf.xlu0 }
  0xec   : > { %v3247_v3 = vcombine.high %v3089_v61, %v3089_v61  ;;  %v3784_v59 = vld [vmem:[#allocation3 + $0x42] ss:$2 sm:$0x7f]  ;;  %v2552_v51 = vcombine.high %v2394_v39, %v2394_v39  ;;  %v7390_v41 = vrot.slane %v2394_v39, %v6960_v14  ;;  %8778 = vst [vmem:[#allocation31_spill] sm:$0xff] %v7395_v26  ;;  %v4481_v23 = vld [vmem:[#allocation2 + $0x90] sm:$0xff]  ;;  %v1210_v52 = vcombine.high %v7395_v26, %v7395_v26 }
  0xed   : > { %8775 = vst [vmem:[#allocation28_spill] sm:$0xff] %v7378_v33  ;;  %v3942_v21 = vcombine.high %v3784_v59, %v3784_v59  ;;  %v7393_v16 = vrot.slane %v3784_v59, %v6960_v14  ;;  %v7397_v13 = vld [vmem:[#allocation3 + $0x40] ss:$2 sm:$0x7f]  ;;  %v3262_v20 = vcombine.high %v3254_v48, %v3254_v48  ;;  %v3270_v61 = vrot.slane %v3254_v48, %v6960_v14 }
  0xee   : > { %8776 = vst [vmem:[#allocation29_spill] sm:$0xff] %v7390_v41  ;;  %8779 = vst [vmem:[#allocation32_spill] sm:$0xff] %v7397_v13  ;;  %v3261_v36 = vrot.slane %v3247_v3, %v6960_v14  ;;  %v7403_v43 = vld [vmem:[#allocation3 + $0x42] ss:$2 sm:$0x7f]  ;;  %v2566_v59 = vrot.slane %v2552_v51, %v6960_v14  ;;  %v2567_v60 = vcombine.high %v7390_v41, %v7390_v41 }
  0xef   : > { %8777 = vst [vmem:[#allocation30_spill] sm:$0xff] %v7393_v16  ;;  %8780 = vst [vmem:[#allocation33_spill] sm:$0xff] %v7403_v43  ;;  %v296_v39 = vld [vmem:[#allocation2 + $0xa0] sm:$0xff]  ;;  %v3956_v13 = vrot.slane %v3942_v21, %v6960_v14  ;;  %v3957_v9 = vcombine.high %v7393_v16, %v7393_v16  ;;  %v3284_v48 = vrot.slane %v3262_v20, %v6960_v14  ;;  %v297_v62 = vld [vmem:[#allocation2 + $0xa8] sm:$0xff]  ;;  %v244_v27 = vpop.trf.xlu0 }
  0xf0   : > { %4495 = vst.msk [vmem:[#allocation3 + $0x40] sm:$0xff] %vm253_vm0, %v4481_v23  ;;  %4496 = vst.msk [vmem:[#allocation3 + $0x48] sm:$0xff] %vm253_vm0, %v4482_v10  ;;  %v3292_v3 = vcombine.high %v3270_v61, %v3270_v61  ;;  %v8781_v51 = vcombine.high %v7300_v0, %v7300_v0  ;;  %v3263_v26 = vcombine.high %v3261_v36, %v3261_v36 }
  0xf1   : > { %312 = vst.msk [vmem:[#allocation3 + $0x50] sm:$0xff] %vm253_vm0, %v296_v39  ;;  %276 = vst.msk [vmem:[#allocation2 + $0xb0] sm:$0xff] %vm253_vm0, %v243_v46  ;;  %v2568_v21 = vcombine.high %v2566_v59, %v2566_v59  ;;  %v2582_v24 = vrot.slane %v2566_v59, %v6960_v14  ;;  %v7421_v16 = vrot.slane %v2567_v60, %v6960_v14 }
  0xf2   : > { %v3539_v41 = vcombine.low %v8781_v51, %v3270_v61  ;;  %v3277_v10 = vrot.slane %v3261_v36, %v6960_v14  ;;  %v3540_v23 = vcombine.low %v3284_v48, %v3292_v3  ;;  %v3291_v46 = vrot.slane %v3263_v26, %v6960_v14  ;;  %313 = vst.msk [vmem:[#allocation3 + $0x58] sm:$0xff] %vm253_vm0, %v297_v62 }
  0xf3   : > { %8782 = vst [vmem:[#allocation34_spill] sm:$0xff] %v7421_v16  ;;  %v3294_v20 = vcombine.high %v3284_v48, %v3284_v48  ;;  %v2596_v0 = vrot.slane %v2568_v21, %v6960_v14  ;;  %v2598_v61 = vcombine.high %v2582_v24, %v2582_v24  ;;  %v2599_v51 = vcombine.high %v7421_v16, %v7421_v16 }
  0xf4   : > { %v3561_v39 = vrot.slane %v3539_v41, %v6960_v14  ;;  %v3293_v59 = vcombine.high %v3277_v10, %v3277_v10  ;;  %277 = vst.msk [vmem:[#allocation2 + $0xb8] sm:$0xff] %vm253_vm0, %v244_v27  ;;  %v3568_v60 = vrot.slane %v3540_v23, %v6960_v14  ;;  %v3958_v41 = vcombine.high %v3956_v13, %v3956_v13  ;;  %v245_v27 = vpop.trf.xlu0 }
  0xf5   : > { %v3586_v36 = vcombine.low %v3294_v20, %v3277_v10  ;;  %v3972_v26 = vrot.slane %v3956_v13, %v6960_v14  ;;  %v2891_v48 = vcombine.low %v2599_v51, %v2582_v24  ;;  %v2892_v3 = vcombine.low %v2596_v0, %v2598_v61  ;;  %278 = vst.msk [vmem:[#allocation2 + $0xc0] sm:$0xff] %vm253_vm0, %v245_v27 }
  0xf6   : > { %v3587_v19 = vcombine.low %v3291_v46, %v3293_v59  ;;  %v7434_v21 = vrot.slane %v3957_v9, %v6960_v14  ;;  %v3570_v12 = vcombine.low %v3561_v39, %v3568_v60  ;;  %v3986_v35 = vrot.slane %v3958_v41, %v6960_v14 }
  0xf7   : > { %v3596_v16 = vrot.slane %v3586_v36, %v6960_v14  ;;  %v3988_v62 = vcombine.high %v3972_v26, %v3972_v26  ;;  %v4505_v18 = vld [vmem:[#allocation3 + $0x40] ss:$2 sm:$0x7f]  ;;  %v2901_v23 = vrot.slane %v2891_v48, %v6960_v14  ;;  %v2908_v10 = vrot.slane %v2892_v3, %v6960_v14 }
  0xf8   : > { %8783 = vst [vmem:[#allocation35_spill] sm:$0xff] %v7434_v21  ;;  %v3603_v13 = vrot.slane %v3587_v19, %v6960_v14  ;;  %v3989_v24 = vcombine.high %v7434_v21, %v7434_v21  ;;  %v3584_v9 = vrot.slane %v3570_v12, %v6960_v14  ;;  %v1224_v46 = vrot.slane %v1210_v52, %v6960_v14  ;;  %v246_v52 = vpop.trf.xlu0 }
  0xf9   : > { %v4282_v39 = vcombine.low %v3986_v35, %v3988_v62  ;;  %v1905_v20 = vcombine.high %v7403_v43, %v7403_v43  ;;  %v7448_v0 = vcombine.low %v2901_v23, %v2908_v10  ;;  %v4707_v59 = vcombine.high %v4505_v18, %v4505_v18  ;;  %v4483_v35 = vld [vmem:[#allocation2 + $0xb0] sm:$0xff]  ;;  %279 = vst.msk [vmem:[#allocation2 + $0xc8] sm:$0xff] %vm253_vm0, %v246_v52 }
  0xfa   : > { %v7450_v61 = vcombine.low %v3596_v16, %v3603_v13  ;;  %v4281_v51 = vcombine.low %v3989_v24, %v3972_v26  ;;  %v3585_v19 = vcombine.low %v7385_v53, %v3584_v9  ;;  %v1226_v36 = vcombine.high %v1224_v46, %v1224_v46  ;;  %v7457_v48 = vld [vmem:[#allocation3 + $0x50] ss:$2 sm:$0x7f]  ;;  %v7471_v62 = vld [vmem:[#allocation3 + $0x51] ss:$2 sm:$0x7f] }
  0xfb   : > { %v4298_v60 = vrot.slane %v4282_v39, %v6960_v14  ;;  %v7455_v41 = vrot.slane %v1224_v46, %v6960_v14  ;;  %v4484_v12 = vld [vmem:[#allocation2 + $0xb8] sm:$0xff]  ;;  %v7465_v53 = vrot.slane %v1905_v20, %v6960_v14  ;;  %v2607_v26 = vrot.slane %v7457_v48, %v6960_v14 }
  0xfc   : > { %v4291_v18 = vrot.slane %v4281_v51, %v6960_v14  ;;  %3751 = vrot.lane.b32.xlu0 %v3585_v19, %s6909_s20  ;;  %v7473_v27 = vld [vmem:[#allocation3 + $0x52] ss:$2 sm:$0x7f]  ;;  %v1254_v23 = vrot.slane %v1226_v36, %v6960_v14  ;;  %v7479_v13 = vrot.slane %v4707_v59, %v6960_v14  ;;  %v3302_v24 = vrot.slane %v7471_v62, %v6960_v14  ;;  %v1008_v46 = vld [vmem:[#allocation3 + $0x51] ss:$2 sm:$0x7f]  ;;  %v247_v21 = vpop.trf.xlu0 }
  0xfd   : > { %v1256_v10 = vcombine.high %v7455_v41, %v7455_v41  ;;  %v3997_v9 = vrot.slane %v7473_v27, %v6960_v14  ;;  %v7487_v20 = vld [vmem:[#allocation3 + $0x52] ss:$2 sm:$0x7f]  ;;  %v1921_v51 = vcombine.high %v7465_v53, %v7465_v53  ;;  %v2615_v19 = vcombine.high %v2607_v26, %v2607_v26  ;;  %v298_v3 = vld [vmem:[#allocation2 + $0xc0] sm:$0xff]  ;;  %280 = vst.msk [vmem:[#allocation2 + $0xd0] sm:$0xff] %vm253_vm0, %v247_v21 }
  0xfe   : > { %v7485_v39 = vcombine.low %v4291_v18, %v4298_v60  ;;  %v2623_v36 = vrot.slane %v2607_v26, %v6960_v14  ;;  %v1258_v52 = vcombine.high %v1008_v46, %v1008_v46  ;;  %v1265_v59 = vrot.slane %v1008_v46, %v6960_v14  ;;  %v7493_v16 = vld [vmem:[#allocation3 + $0x50] ss:$2 sm:$0x7f]  ;;  %314 = vst.msk [vmem:[#allocation3 + $0x60] sm:$0xff] %vm253_vm0, %v298_v3 }
  0xff   : > { %8784 = vst [vmem:[#allocation36_spill] sm:$0xff] %v7493_v16  ;;  %v3310_v43 = vcombine.high %v3302_v24, %v3302_v24  ;;  %v3318_v60 = vrot.slane %v3302_v24, %v6960_v14  ;;  %v4005_v18 = vcombine.high %v3997_v9, %v3997_v9  ;;  %v4013_v22 = vrot.slane %v3997_v9, %v6960_v14 }
 0x100   : > { %4497 = vst.msk [vmem:[#allocation3 + $0x50] sm:$0xff] %vm253_vm0, %v4483_v35  ;;  %4498 = vst.msk [vmem:[#allocation3 + $0x58] sm:$0xff] %vm253_vm0, %v4484_v12  ;;  %v2637_v26 = vrot.slane %v2615_v19, %v6960_v14  ;;  %v4321_v46 = vrot.slane %v7485_v39, %v6960_v14  ;;  %v7505_v16 = vrot.slane %v1258_v52, %v6960_v14  ;;  %v299_v19 = vld [vmem:[#allocation2 + $0xc8] sm:$0xff]  ;;  %v248_v52 = vpop.trf.xlu0 }
 0x101   : > { %v1273_v24 = vcombine.high %v1265_v59, %v1265_v59  ;;  %v3332_v34 = vrot.slane %v3310_v43, %v6960_v14  ;;  %v4027_v9 = vrot.slane %v4005_v18, %v6960_v14  ;;  %v1281_v35 = vrot.slane %v1265_v59, %v6960_v14  ;;  %315 = vst.msk [vmem:[#allocation3 + $0x68] sm:$0xff] %vm253_vm0, %v299_v19 }
 0x102   : > { %v1550_v12 = vcombine.low %v7455_v41, %v1254_v23  ;;  %v2893_v3 = vcombine.low %v2623_v36, %v2637_v26  ;;  %v6816_v47 = vcombine.high %v2623_v36, %v2637_v26  ;;  %v7513_v21 = vrot.slane %v7505_v16, %v6960_v14  ;;  %281 = vst.msk [vmem:[#allocation2 + $0xd8] sm:$0xff] %vm253_vm0, %v248_v52 }
 0x103   : > { %v1295_v39 = vrot.slane %v1273_v24, %v6960_v14  ;;  %v3588_v56 = vcombine.low %v3318_v60, %v3332_v34  ;;  %v6820_v28 = vcombine.high %v3318_v60, %v3332_v34  ;;  %v4283_v15 = vcombine.low %v4013_v22, %v4027_v9 }
 0x104   : > { %v6824_v43 = vcombine.high %v4013_v22, %v4027_v9  ;;  %v2915_v41 = vrot.slane %v2893_v3, %v6960_v14  ;;  %v2922_v23 = vrot.slane %v6816_v47, %v6960_v14  ;;  %v1303_v36 = vcombine.high %v1281_v35, %v1281_v35  ;;  %v249_v52 = vpop.trf.xlu0 }
 0x105   : > { %v1305_v59 = vcombine.high %v1295_v39, %v1295_v39  ;;  %v3610_v18 = vrot.slane %v3588_v56, %v6960_v14  ;;  %v3617_v26 = vrot.slane %v6820_v28, %v6960_v14  ;;  %v4305_v24 = vrot.slane %v4283_v15, %v6960_v14  ;;  %282 = vst.msk [vmem:[#allocation2 + $0xe0] sm:$0xff] %vm253_vm0, %v249_v52 }
 0x106   : > { %v4312_v34 = vrot.slane %v6824_v43, %v6960_v14  ;;  %v2924_v60 = vcombine.low %v2915_v41, %v2922_v23  ;;  %v1551_v22 = vcombine.low %v1256_v10, %v1281_v35  ;;  %v1552_v9 = vcombine.low %v1295_v39, %v1303_v36 }
 0x107   : > { %v1553_v19 = vcombine.low %v1305_v59, %v7513_v21  ;;  %v3619_v25 = vcombine.low %v3610_v18, %v3617_v26  ;;  %v1560_v47 = vrot.slane %v1550_v12, %v6960_v14  ;;  %v1935_v32 = vrot.slane %v7465_v53, %v6960_v14  ;;  %v4485_v18 = vld [vmem:[#allocation2 + $0xd0] sm:$0xff] }
 0x108   : > { %v4314_v3 = vcombine.low %v4305_v24, %v4312_v34  ;;  %v2938_v28 = vrot.slane %v2924_v60, %v6960_v14  ;;  %v1567_v15 = vrot.slane %v1551_v22, %v6960_v14  ;;  %v1574_v56 = vrot.slane %v1552_v9, %v6960_v14  ;;  %v250_v24 = vpop.trf.xlu0  ;;  %v4506_v9 = vld [vmem:[#allocation3 + $0x50] ss:$2 sm:$0x7f] }
 0x109   : > { %v1581_v10 = vrot.slane %v1553_v19, %v6960_v14  ;;  %v3633_v35 = vrot.slane %v3619_v25, %v6960_v14  ;;  %v1949_v43 = vrot.slane %v1921_v51, %v6960_v14  ;;  %v1951_v12 = vcombine.high %v1935_v32, %v1935_v32  ;;  %v4486_v26 = vld [vmem:[#allocation2 + $0xd8] sm:$0xff]  ;;  %283 = vst.msk [vmem:[#allocation2 + $0xe8] sm:$0xff] %vm253_vm0, %v250_v24 }
 0x10a   : > { %v4328_v39 = vrot.slane %v4314_v3, %v6960_v14  ;;  %v8785_v53 = vrot.slane %v7448_v0, %v6960_v14  ;;  %v1582_v23 = vcombine.low %v1560_v47, %v1567_v15  ;;  %v1953_v59 = vcombine.high %v7487_v20, %v7487_v20  ;;  %v7563_v15 = vld [vmem:[#allocation3 + $0x62] ss:$2 sm:$0x7f] }
 0x10b   : > { %v1583_v36 = vcombine.low %v1574_v56, %v1581_v10  ;;  %v8786_v25 = vrot.slane %v7450_v61, %v6960_v14  ;;  %v1960_v51 = vrot.slane %v7487_v20, %v6960_v14  ;;  %v2245_v22 = vcombine.low %v1935_v32, %v1949_v43  ;;  %v7557_v20 = vld [vmem:[#allocation3 + $0x61] ss:$2 sm:$0x7f]  ;;  %v7565_v56 = vld [vmem:[#allocation3 + $0x60] ss:$2 sm:$0x7f] }
 0x10c   : > { %v2939_v41 = vcombine.low %v8785_v53, %v2938_v28  ;;  %v4329_v60 = vcombine.low %v4321_v46, %v4328_v39  ;;  %v1590_v0 = vrot.slane %v1582_v23, %v6960_v14  ;;  %v7551_v52 = vrot.slane %v1953_v59, %v6960_v14  ;;  %v7555_v46 = vld [vmem:[#allocation3 + $0x62] ss:$2 sm:$0x7f]  ;;  %v7572_v53 = vld [vmem:[#allocation3 + $0x61] ss:$2 sm:$0x7f] }
 0x10d   : > { %v3634_v34 = vcombine.low %v8786_v25, %v3633_v35  ;;  %v1597_v19 = vrot.slane %v1583_v36, %v6960_v14  ;;  %v4723_v61 = vcombine.high %v7479_v13, %v7479_v13  ;;  %v1968_v32 = vcombine.high %v1960_v51, %v1960_v51  ;;  %v300_v23 = vld [vmem:[#allocation2 + $0xe0] sm:$0xff]  ;;  %v251_v25 = vpop.trf.xlu0 }
 0x10e   : > { %3058 = vrot.lane.b32.xlu1 %v2939_v41, %s6910_s21  ;;  %v1976_v3 = vrot.slane %v1960_v51, %v6960_v14  ;;  %v2255_v47 = vrot.slane %v2245_v22, %v6960_v14  ;;  %v4737_v28 = vrot.slane %v7479_v13, %v6960_v14  ;;  %v7569_v35 = vrot.slane %v7551_v52, %v6960_v14  ;;  %v7574_v41 = vld [vmem:[#allocation3 + $0x60] ss:$2 sm:$0x7f] }
 0x10f   : > { %v1598_v10 = vcombine.low %v1590_v0, %v1597_v19  ;;  %v4751_v39 = vrot.slane %v4723_v61, %v6960_v14  ;;  %v4755_v43 = vcombine.high %v4506_v9, %v4506_v9  ;;  %8787 = vst [vmem:[#allocation37_spill] sm:$0xff] %v7574_v41  ;;  %v1990_v36 = vrot.slane %v1968_v32, %v6960_v14 }
 0x110   : > { %v1998_v13 = vcombine.high %v1976_v3, %v1976_v3  ;;  %v2246_v59 = vcombine.low %v1951_v12, %v1976_v3  ;;  %v4753_v24 = vcombine.high %v4737_v28, %v4737_v28  ;;  %4499 = vst.msk [vmem:[#allocation3 + $0x60] sm:$0xff] %vm253_vm0, %v4485_v18  ;;  %4500 = vst.msk [vmem:[#allocation3 + $0x68] sm:$0xff] %vm253_vm0, %v4486_v26 }
 0x111   : > { %316 = vst.msk [vmem:[#allocation3 + $0x70] sm:$0xff] %vm253_vm0, %v300_v23  ;;  %v4762_v51 = vrot.slane %v4506_v9, %v6960_v14  ;;  %v7583_v22 = vrot.slane %v4755_v43, %v6960_v14  ;;  %v5047_v0 = vcombine.low %v4737_v28, %v4751_v39  ;;  %v4038_v19 = vcombine.high %v7555_v46, %v7555_v46  ;;  %v301_v39 = vld [vmem:[#allocation2 + $0xe8] sm:$0xff] }
 0x112   : > { %3753 = vrot.lane.b32.xlu1 %v3634_v34, %s6909_s20  ;;  %v2000_v12 = vcombine.high %v1990_v36, %v1990_v36  ;;  %v2247_v61 = vcombine.low %v1990_v36, %v1998_v13  ;;  %v2262_v18 = vrot.slane %v2246_v59, %v6960_v14  ;;  %v8789_v26 = vcombine.high %v7352_v63, %v7352_v63  ;;  %v252_v59 = vpop.trf.xlu0 }
 0x113   : > { %8788 = vst [vmem:[#allocation38_spill] sm:$0xff] %v7583_v22  ;;  %v4770_v3 = vcombine.high %v4762_v51, %v4762_v51  ;;  %v4778_v34 = vrot.slane %v4762_v51, %v6960_v14  ;;  %v7595_v9 = vrot.slane %v7583_v22, %v6960_v14  ;;  %v5057_v28 = vrot.slane %v5047_v0, %v6960_v14 }
 0x114   : > { %v6079_v32 = vrot.slane %v8789_v26, %v6960_v14  ;;  %v2248_v43 = vcombine.low %v2000_v12, %v7569_v35  ;;  %v2269_v23 = vrot.slane %v2247_v61, %v6960_v14  ;;  %v2277_v36 = vcombine.low %v2255_v47, %v2262_v18  ;;  %317 = vst.msk [vmem:[#allocation3 + $0x78] sm:$0xff] %vm253_vm0, %v301_v39  ;;  %v5881_v26 = vld [vmem:[#allocation3 + $0x42] ss:$2 sm:$0x7f] }
 0x115   : > { %v4052_v13 = vrot.slane %v4038_v19, %v6960_v14  ;;  %v4792_v63 = vrot.slane %v4770_v3, %v6960_v14  ;;  %v4800_v25 = vcombine.high %v4778_v34, %v4778_v34  ;;  %v5048_v51 = vcombine.low %v4753_v24, %v4778_v34 }
 0x116   : > { %4448 = vrot.lane.b32.xlu1 %v4329_v60, %s6911_s22  ;;  %v6081_v0 = vcombine.high %v7375_v42, %v7375_v42  ;;  %v2276_v12 = vrot.slane %v2248_v43, %v6960_v14  ;;  %v2285_v47 = vrot.slane %v2277_v36, %v6960_v14  ;;  %v6082_v3 = vcombine.high %v7378_v33, %v7378_v33 }
 0x117   : > { %v4054_v61 = vcombine.high %v4052_v13, %v4052_v13  ;;  %v7609_v19 = vrot.slane %v4052_v13, %v6960_v14  ;;  %v4802_v18 = vcombine.high %v4792_v63, %v4792_v63  ;;  %v5049_v39 = vcombine.low %v4792_v63, %v4800_v25 }
 0x118   : > { %v5064_v60 = vrot.slane %v5048_v51, %v6960_v14  ;;  %v2278_v24 = vcombine.low %v2269_v23, %v2276_v12  ;;  %v6090_v43 = vrot.slane %v5881_v26, %v6960_v14  ;;  %v6374_v25 = vcombine.low %v6082_v3, %v7375_v42 }
 0x119   : > { %v4082_v34 = vrot.slane %v4054_v61, %v6960_v14  ;;  %v4084_v59 = vcombine.high %v7609_v19, %v7609_v19  ;;  %v5050_v36 = vcombine.low %v4802_v18, %v7595_v9  ;;  %v5071_v13 = vrot.slane %v5049_v39, %v6960_v14 }
 0x11a   : > { %1670 = vrot.lane.b32.xlu1 %v1598_v10, %s6907_s18  ;;  %v5079_v63 = vcombine.low %v5057_v28, %v5064_v60  ;;  %v2292_v51 = vrot.slane %v2278_v24, %v6960_v14  ;;  %v6098_v23 = vcombine.high %v6090_v43, %v6090_v43  ;;  %v6106_v12 = vrot.slane %v6090_v43, %v6960_v14 }
 0x11b   : > { %v4379_v22 = vcombine.low %v4082_v34, %v4084_v59  ;;  %v5078_v61 = vrot.slane %v5050_v36, %v6960_v14  ;;  %v6375_v33 = vcombine.low %v6079_v32, %v6081_v0  ;;  %v6384_v10 = vrot.slane %v6374_v25, %v6960_v14  ;;  %v3790_v18 = vld [vmem:[#allocation3 + $0x72] ss:$2 sm:$0x7f]  ;;  %v3095_v42 = vld [vmem:[#allocation3 + $0x71] ss:$2 sm:$0x7f] }
 0x11c   : > { %v5087_v41 = vrot.slane %v5079_v63, %v6960_v14  ;;  %v2293_v2 = vcombine.low %v2285_v47, %v2292_v51  ;;  %v6120_v28 = vrot.slane %v6098_v23, %v6960_v14  ;;  %v6083_v60 = vcombine.high %v5881_v26, %v5881_v26 }
 0x11d   : > { %v4389_v39 = vrot.slane %v4379_v22, %v6960_v14  ;;  %v5080_v3 = vcombine.low %v5071_v13, %v5078_v61  ;;  %v4086_v24 = vcombine.high %v3790_v18, %v3790_v18  ;;  %v4093_v34 = vrot.slane %v3790_v18, %v6960_v14 }
 0x11e   : > { %v6391_v59 = vrot.slane %v6375_v33, %v6960_v14  ;;  %2365 = vrot.lane.b32.xlu1 %v2293_v2, %s6908_s19  ;;  %v6376_v43 = vcombine.low %v6106_v12, %v6120_v28  ;;  %v6836_v32 = vcombine.high %v6106_v12, %v6120_v28  ;;  %v3391_v0 = vcombine.high %v3095_v42, %v3095_v42 }
 0x11f   : > { %v6097_v47 = vrot.slane %v6083_v60, %v6960_v14  ;;  %v5094_v36 = vrot.slane %v5080_v3, %v6960_v14  ;;  %v4100_v22 = vrot.slane %v4086_v24, %v6960_v14  ;;  %v4101_v63 = vcombine.high %v4093_v34, %v4093_v34  ;;  %v5882_v24 = vld [vmem:[#allocation3 + $0x52] ss:$2 sm:$0x7f] }
 0x120   : > { %v4109_v26 = vrot.slane %v4093_v34, %v6960_v14  ;;  %v6398_v13 = vrot.slane %v6376_v43, %v6960_v14  ;;  %v6405_v25 = vrot.slane %v6836_v32, %v6960_v14  ;;  %v6406_v51 = vcombine.low %v6384_v10, %v6391_v59 }
 0x121   : > { %v7639_v33 = vrot.slane %v3391_v0, %v6960_v14  ;;  %v5095_v2 = vcombine.low %v5087_v41, %v5094_v36  ;;  %v4102_v23 = vcombine.high %v4100_v22, %v4100_v22  ;;  %v7642_v12 = vrot.slane %v4100_v22, %v6960_v14  ;;  %v8817_v41 = vld [vmem:[#allocation33_spill] sm:$0xff] }
 0x122   : > { %v4123_v61 = vrot.slane %v4101_v63, %v6960_v14  ;;  %5159 = vrot.lane.b32.xlu1 %v7216_v40, %s6912_s23  ;;  %v6407_v18 = vcombine.low %v6398_v13, %v6405_v25  ;;  %v6414_v28 = vrot.slane %v6406_v51, %v6960_v14  ;;  %v6099_v34 = vcombine.high %v6097_v47, %v6097_v47 }
 0x123   : > { %v7650_v10 = vrot.slane %v7639_v33, %v6960_v14  ;;  %v4130_v42 = vrot.slane %v4102_v23, %v6960_v14  ;;  %v6113_v43 = vrot.slane %v6097_v47, %v6960_v14  ;;  %v6131_v32 = vcombine.high %v5882_v24, %v5882_v24 }
 0x124   : > { %v4380_v60 = vcombine.low %v4109_v26, %v4123_v61  ;;  %v6825_v3 = vcombine.high %v4109_v26, %v4123_v61  ;;  %v6421_v59 = vrot.slane %v6407_v18, %v6960_v14  ;;  %v6127_v63 = vrot.slane %v6099_v34, %v6960_v14  ;;  %v5195_v34 = vld [vmem:[#allocation3 + $0x61] ss:$2 sm:$0x7f] }
 0x125   : > { %v3437_v40 = vcombine.high %v7650_v10, %v7650_v10  ;;  %v4382_v0 = vcombine.low %v7642_v12, %v4130_v42  ;;  %v6129_v25 = vcombine.high %v6113_v43, %v6113_v43  ;;  %v6138_v47 = vrot.slane %v5882_v24, %v6960_v14 }
 0x126   : > { %v4396_v36 = vrot.slane %v4380_v60, %v6960_v14  ;;  %v4403_v22 = vrot.slane %v6825_v3, %v6960_v14  ;;  %5847 = vrot.lane.b32.xlu1 %v7218_v38, %s6913_s24  ;;  %v6422_v26 = vcombine.low %v6414_v28, %v6421_v59  ;;  %v7671_v61 = vrot.slane %v6131_v32, %v6960_v14 }
 0x127   : > { %v7666_v13 = vrot.slane %v3437_v40, %v6960_v14  ;;  %v4410_v51 = vrot.slane %v4382_v0, %v6960_v14  ;;  %v6423_v18 = vcombine.low %v6113_v43, %v6127_v63  ;;  %v6146_v60 = vcombine.high %v6138_v47, %v6138_v47  ;;  %v5194_v0 = vld [vmem:[#allocation3 + $0x51] ss:$2 sm:$0x7f] }
 0x128   : > { %v4411_v23 = vcombine.low %v4389_v39, %v4396_v36  ;;  %v6154_v38 = vrot.slane %v6138_v47, %v6960_v14  ;;  %v8790_v28 = vrot.slane %v7364_v6, %v6960_v14  ;;  %v7683_v39 = vrot.slane %v7671_v61, %v6960_v14 }
 0x129   : > { %v3746_v42 = vrot.slane %v7666_v13, %v6960_v14  ;;  %v4412_v24 = vcombine.low %v4403_v22, %v4410_v51  ;;  %v6433_v40 = vrot.slane %v6423_v18, %v6960_v14  ;;  %v6168_v43 = vrot.slane %v6146_v60, %v6960_v14 }
 0x12a   : > { %v707_v3 = vcombine.low %v7326_v55, %v8790_v28  ;;  %v4419_v59 = vrot.slane %v4411_v23, %v6960_v14  ;;  %6535 = vrot.lane.b32.xlu1 %v7234_v49, %s6914_s25  ;;  %v6176_v32 = vcombine.high %v6154_v38, %v6154_v38  ;;  %v6424_v6 = vcombine.low %v6129_v25, %v6154_v38 }
 0x12b   : > { %v4426_v36 = vrot.slane %v4412_v24, %v6960_v14  ;;  %v1306_v22 = vcombine.high %v7557_v20, %v7557_v20  ;;  %v5443_v63 = vcombine.high %v5194_v0, %v5194_v0  ;;  %v5491_v47 = vcombine.high %v5195_v34, %v5195_v34 }
 0x12c   : > { %v721_v55 = vrot.slane %v707_v3, %v6960_v14  ;;  %v6178_v51 = vcombine.high %v6168_v43, %v6168_v43  ;;  %v6425_v23 = vcombine.low %v6168_v43, %v6176_v32  ;;  %v6440_v18 = vrot.slane %v6424_v6, %v6960_v14 }
 0x12d   : > { %v4427_v28 = vcombine.low %v4419_v59, %v4426_v36  ;;  %v7696_v60 = vrot.slane %v1306_v22, %v6960_v14  ;;  %v5457_v25 = vrot.slane %v5443_v63, %v6960_v14  ;;  %v5498_v38 = vrot.slane %v5195_v34, %v6960_v14 }
 0x12e   : > { %v722_v49 = vcombine.low %v7357_v17, %v721_v55  ;;  %5167 = vrot.lane.b32.xlu1 %v5095_v2, %s6912_s23  ;;  %v6426_v3 = vcombine.low %v6178_v51, %v7683_v39  ;;  %v6447_v24 = vrot.slane %v6425_v23, %v6960_v14  ;;  %v6455_v0 = vcombine.low %v6433_v40, %v6440_v18 }
 0x12f   : > { %v5505_v43 = vrot.slane %v5491_v47, %v6960_v14  ;;  %4452 = vrot.lane.b32.xlu0 %v4427_v28, %s6911_s22  ;;  %v7708_v17 = vrot.slane %v7696_v60, %v6960_v14  ;;  %v1322_v34 = vcombine.high %v7696_v60, %v7696_v60  ;;  %v5459_v59 = vcombine.high %v5457_v25, %v5457_v25 }
 0x130   : > { %989 = vst.msk [vmem:[#allocation4] sm:$0xff] %vm253_vm0, %v722_v49  ;;  %v7713_v2 = vrot.slane %v5457_v25, %v6960_v14  ;;  %v6454_v32 = vrot.slane %v6426_v3, %v6960_v14  ;;  %v6463_v40 = vrot.slane %v6455_v0, %v6960_v14  ;;  %v5506_v6 = vcombine.high %v5498_v38, %v5498_v38 }
 0x131   : > { %v5507_v55 = vcombine.high %v5505_v43, %v5505_v43  ;;  %v1352_v36 = vcombine.high %v7708_v17, %v7708_v17  ;;  %v5487_v22 = vrot.slane %v5459_v59, %v6960_v14  ;;  %v5514_v47 = vrot.slane %v5498_v38, %v6960_v14  ;;  %v5883_v59 = vld [vmem:[#allocation3 + $0x62] ss:$2 sm:$0x7f] }
 0x132   : > { %v5489_v63 = vcombine.high %v7713_v2, %v7713_v2  ;;  %3052 = vrot.lane.b32.xlu1 %v7291_v1, %s6910_s21  ;;  %v6456_v51 = vcombine.low %v6447_v24, %v6454_v32  ;;  %v7726_v23 = vrot.slane %v5505_v43, %v6960_v14  ;;  %v5528_v18 = vrot.slane %v5506_v6, %v6960_v14 }
 0x133   : > { %v5535_v49 = vrot.slane %v5507_v55, %v6960_v14  ;;  %6541 = vrot.lane.b32.xlu0 %v6422_v26, %s6914_s25  ;;  %v1654_v28 = vrot.slane %v1352_v36, %v6960_v14  ;;  %v2001_v38 = vcombine.high %v7563_v15, %v7563_v15  ;;  %v6147_v1 = vcombine.high %v7671_v61, %v7671_v61 }
 0x134   : > { %v5784_v25 = vcombine.low %v5487_v22, %v5489_v63  ;;  %v6470_v3 = vrot.slane %v6456_v51, %v6960_v14  ;;  %v5785_v24 = vcombine.low %v5514_v47, %v5528_v18  ;;  %v6833_v0 = vcombine.high %v5514_v47, %v5528_v18 }
 0x135   : > { %v5787_v43 = vcombine.low %v7726_v23, %v5535_v49  ;;  %v1661_v32 = vrot.slane %v1654_v28, %v6960_v14  ;;  %v7741_v6 = vrot.slane %v2001_v38, %v6960_v14  ;;  %v6175_v55 = vrot.slane %v6147_v1, %v6960_v14 }
 0x136   : > { %v5794_v26 = vrot.slane %v5784_v25, %v6960_v14  ;;  %3747 = vrot.lane.b32.xlu1 %v7306_v7, %s6909_s20  ;;  %v6471_v61 = vcombine.low %v6463_v40, %v6470_v3  ;;  %v5801_v36 = vrot.slane %v5785_v24, %v6960_v14  ;;  %v5808_v22 = vrot.slane %v6833_v0, %v6960_v14 }
 0x137   : > { %v5815_v63 = vrot.slane %v5787_v43, %v6960_v14  ;;  %3759 = vrot.lane.b32.xlu0 %v3746_v42, %s6909_s20  ;;  %v2017_v47 = vcombine.high %v7741_v6, %v7741_v6  ;;  %v7757_v51 = vrot.slane %v7741_v6, %v6960_v14  ;;  %v6177_v7 = vcombine.high %v7683_v39, %v7683_v39 }
 0x138   : > { %v6179_v40 = vcombine.high %v5883_v59, %v5883_v59  ;;  %v5816_v18 = vcombine.low %v5794_v26, %v5801_v36  ;;  %v6186_v28 = vrot.slane %v5883_v59, %v6960_v14  ;;  %v1082_v13 = vcombine.high %v7367_v29, %v7367_v29 }
 0x139   : > { %v5817_v49 = vcombine.low %v5808_v22, %v5815_v63  ;;  %v2047_v42 = vcombine.high %v7757_v51, %v7757_v51  ;;  %v6472_v38 = vcombine.low %v6175_v55, %v6177_v7  ;;  %v1096_v1 = vrot.slane %v7367_v29, %v6960_v14  ;;  %v1663_v63 = vpop.permute.xlu1 %1662 }
 0x13a   : > { %v6193_v25 = vrot.slane %v6179_v40, %v6960_v14  ;;  %4442 = vrot.lane.b32.xlu1 %v7335_v11, %s6911_s22  ;;  %v5824_v39 = vrot.slane %v5816_v18, %v6960_v14  ;;  %v6194_v24 = vcombine.high %v6186_v28, %v6186_v28  ;;  %v6202_v0 = vrot.slane %v6186_v28, %v6960_v14 }
 0x13b   : > { %v5831_v3 = vrot.slane %v5817_v49, %v6960_v14  ;;  %6543 = vrot.lane.b32.xlu0 %v6471_v61, %s6914_s25  ;;  %v2349_v43 = vrot.slane %v2047_v42, %v6960_v14  ;;  %v6482_v29 = vrot.slane %v6472_v38, %v6960_v14  ;;  %v1110_v36 = vrot.slane %v1082_v13, %v6960_v14 }
 0x13c   : > { %v6195_v59 = vcombine.high %v6193_v25, %v6193_v25  ;;  %v7777_v26 = vrot.slane %v6193_v25, %v6960_v14  ;;  %v6216_v11 = vrot.slane %v6194_v24, %v6960_v14  ;;  %v1112_v22 = vcombine.high %v1096_v1, %v1096_v1  ;;  %1684 = vst.msk [vmem:[#allocation4] sm:$0xff] %vm1683_vm1, %v1663_v63 }
 0x13d   : > { %v5832_v55 = vcombine.low %v5824_v39, %v5831_v3  ;;  %v2356_v7 = vrot.slane %v2349_v43, %v6960_v14  ;;  %v7786_v61 = vrot.slane %v7361_v5, %v6960_v14  ;;  %v8791_v18 = vcombine.high %v7361_v5, %v7361_v5 }
 0x13e   : > { %v6223_v40 = vrot.slane %v6195_v59, %v6960_v14  ;;  %1674 = vrot.lane.b32.xlu1 %v1661_v32, %s6907_s18  ;;  %v6473_v28 = vcombine.low %v6202_v0, %v6216_v11  ;;  %v6837_v13 = vcombine.high %v6202_v0, %v6216_v11  ;;  %v8792_v42 = vcombine.high %v7060_v45, %v7060_v45 }
 0x13f   : > { %v7792_v49 = vrot.slane %v8791_v18, %v6960_v14  ;;  %v8793_v38 = vcombine.high %v7349_v4, %v7349_v4  ;;  %5857 = vrot.lane.b32.xlu0 %v5832_v55, %s6913_s24  ;;  %v1405_v3 = vcombine.low %v1110_v36, %v1112_v22  ;;  %v1761_v32 = vcombine.high %v7044_v30, %v7044_v30 }
 0x140   : > { %v1403_v25 = vcombine.low %v7349_v4, %v8792_v42  ;;  %v6475_v5 = vcombine.low %v7777_v26, %v6223_v40  ;;  %v6489_v0 = vrot.slane %v6473_v28, %v6960_v14  ;;  %v6496_v45 = vrot.slane %v6837_v13, %v6960_v14 }
 0x141   : > { %v1404_v39 = vcombine.low %v8793_v38, %v1096_v1  ;;  %v1406_v24 = vcombine.low %v7786_v61, %v7792_v49  ;;  %v2358_v1 = vpop.permute.xlu1 %2357  ;;  %v1427_v55 = vrot.slane %v1405_v3, %v6960_v14  ;;  %v1775_v36 = vrot.slane %v1761_v32, %v6960_v14 }
 0x142   : > { %v1413_v43 = vrot.slane %v1403_v25, %v6960_v14  ;;  %v6503_v59 = vrot.slane %v6475_v5, %v6960_v14  ;;  %2379 = vst.msk [vmem:[#allocation4] sm:$0xff] %vm2378_vm2, %v2358_v1  ;;  %2369 = vrot.lane.b32.xlu1 %v2356_v7, %s6908_s19  ;;  %v6504_v30 = vcombine.low %v6482_v29, %v6489_v0 }
 0x143   : > { %v1420_v4 = vrot.slane %v1404_v39, %v6960_v14  ;;  %v1434_v11 = vrot.slane %v1406_v24, %v6960_v14  ;;  %v1776_v63 = vcombine.high %v7049_v37, %v7049_v37  ;;  %v1806_v40 = vcombine.high %v7068_v54, %v7068_v54 }
 0x144   : > { %v6505_v18 = vcombine.low %v6496_v45, %v6503_v59  ;;  %v1777_v13 = vcombine.high %v1775_v36, %v1775_v36  ;;  %v1791_v42 = vrot.slane %v1775_v36, %v6960_v14  ;;  %v6512_v25 = vrot.slane %v6504_v30, %v6960_v14 }
 0x145   : > { %v1435_v22 = vcombine.low %v1413_v43, %v1420_v4  ;;  %v1436_v28 = vcombine.low %v1427_v55, %v1434_v11  ;;  %v1798_v39 = vrot.slane %v1776_v63, %v6960_v14  ;;  %v1816_v29 = vrot.slane %v7179_v31, %v6960_v14 }
 0x146   : > { %v6519_v7 = vrot.slane %v6505_v18, %v6960_v14  ;;  %v1805_v54 = vrot.slane %v1777_v13, %v6960_v14  ;;  %v1807_v5 = vcombine.high %v1791_v42, %v1791_v42  ;;  %v1274_v1 = vcombine.high %v7505_v16, %v7505_v16 }
 0x147   : > { %v1443_v38 = vrot.slane %v1435_v22, %v6960_v14  ;;  %v1450_v37 = vrot.slane %v1436_v28, %v6960_v14  ;;  %v1808_v3 = vcombine.high %v1798_v39, %v1798_v39  ;;  %v1824_v24 = vcombine.high %v1816_v29, %v1816_v29 }
 0x148   : > { %v7833_v32 = vrot.slane %v1816_v29, %v6960_v14  ;;  %v2098_v0 = vcombine.low %v1798_v39, %v1806_v40  ;;  %v6520_v45 = vcombine.low %v6512_v25, %v6519_v7  ;;  %v2100_v4 = vcombine.low %v1805_v54, %v1807_v5 }
 0x149   : > { %v1451_v43 = vcombine.low %v1443_v38, %v1450_v37  ;;  %v7838_v59 = vrot.slane %v1824_v24, %v6960_v14  ;;  %v2099_v55 = vcombine.low %v1808_v3, %v1791_v42  ;;  %v1304_v36 = vcombine.high %v7513_v21, %v7513_v21 }
 0x14a   : > { %v2108_v11 = vrot.slane %v2098_v0, %v6960_v14  ;;  %6545 = vrot.lane.b32.xlu0 %v6520_v45, %s6914_s25  ;;  %v2122_v30 = vrot.slane %v2100_v4, %v6960_v14  ;;  %v1302_v22 = vrot.slane %v1274_v1, %v6960_v14  ;;  %v1313_v16 = vrot.slane %v7557_v20, %v6960_v14 }
 0x14b   : > { %1664 = vrot.lane.b32.xlu1 %v1451_v43, %s6907_s18  ;;  %v2101_v63 = vcombine.low %v7833_v32, %v7838_v59  ;;  %v2115_v40 = vrot.slane %v2099_v55, %v6960_v14  ;;  %v1350_v21 = vrot.slane %v1322_v34, %v6960_v14  ;;  %v2600_v18 = vcombine.high %v7457_v48, %v7457_v48 }
 0x14c   : > { %v1321_v28 = vcombine.high %v1313_v16, %v1313_v16  ;;  %v1329_v13 = vrot.slane %v1313_v16, %v6960_v14  ;;  %v1599_v42 = vcombine.low %v1302_v22, %v1304_v36  ;;  %v2648_v20 = vcombine.high %v7565_v56, %v7565_v56 }
 0x14d   : > { %v2129_v25 = vrot.slane %v2101_v63, %v6960_v14  ;;  %v2130_v38 = vcombine.low %v2108_v11, %v2115_v40  ;;  %v1602_v39 = vcombine.low %v7708_v17, %v1350_v21  ;;  %v2614_v29 = vrot.slane %v2600_v18, %v6960_v14 }
 0x14e   : > { %v1343_v60 = vrot.slane %v1321_v28, %v6960_v14  ;;  %v1609_v34 = vrot.slane %v1599_v42, %v6960_v14  ;;  %v2655_v48 = vrot.slane %v7565_v56, %v6960_v14  ;;  %v7869_v7 = vrot.slane %v2648_v20, %v6960_v14 }
 0x14f   : > { %v2131_v37 = vcombine.low %v2122_v30, %v2129_v25  ;;  %v2138_v54 = vrot.slane %v2130_v38, %v6960_v14  ;;  %v1630_v5 = vrot.slane %v1602_v39, %v6960_v14  ;;  %v2616_v3 = vcombine.high %v2614_v29, %v2614_v29 }
 0x150   : > { %v1600_v24 = vcombine.low %v1329_v13, %v1343_v60  ;;  %v6809_v17 = vcombine.high %v1329_v13, %v1343_v60  ;;  %v2630_v0 = vrot.slane %v2614_v29, %v6960_v14  ;;  %v2663_v45 = vcombine.high %v2655_v48, %v2655_v48 }
 0x151   : > { %v2145_v43 = vrot.slane %v2131_v37, %v6960_v14  ;;  %v2644_v4 = vrot.slane %v2616_v3, %v6960_v14  ;;  %v2671_v56 = vrot.slane %v2655_v48, %v6960_v14  ;;  %v7879_v1 = vrot.slane %v7869_v7, %v6960_v14 }
 0x152   : > { %v1616_v55 = vrot.slane %v1600_v24, %v6960_v14  ;;  %v1623_v11 = vrot.slane %v6809_v17, %v6960_v14  ;;  %v2646_v36 = vcombine.high %v2630_v0, %v2630_v0  ;;  %v2685_v30 = vrot.slane %v2663_v45, %v6960_v14 }
 0x153   : > { %v2146_v22 = vcombine.low %v2138_v54, %v2145_v43  ;;  %v2693_v16 = vcombine.high %v2671_v56, %v2671_v56  ;;  %v2940_v63 = vcombine.low %v2630_v0, %v2644_v4  ;;  %v1969_v40 = vcombine.high %v7551_v52, %v7551_v52 }
 0x154   : > { %v1631_v21 = vcombine.low %v1609_v34, %v1616_v55  ;;  %v1632_v18 = vcombine.low %v1623_v11, %v1630_v5  ;;  %v2695_v28 = vcombine.high %v2685_v30, %v2685_v30  ;;  %v2941_v13 = vcombine.low %v2646_v36, %v2671_v56 }
 0x155   : > { %2359 = vrot.lane.b32.xlu1 %v2146_v22, %s6908_s19  ;;  %v2942_v42 = vcombine.low %v2685_v30, %v2693_v16  ;;  %v2950_v20 = vrot.slane %v2940_v63, %v6960_v14  ;;  %v1997_v25 = vrot.slane %v1969_v40, %v6960_v14  ;;  %v1999_v38 = vcombine.high %v7569_v35, %v7569_v35 }
 0x156   : > { %v1639_v39 = vrot.slane %v1631_v21, %v6960_v14  ;;  %v1646_v29 = vrot.slane %v1632_v18, %v6960_v14  ;;  %v2943_v52 = vcombine.low %v2695_v28, %v7879_v1  ;;  %v2957_v60 = vrot.slane %v2941_v13, %v6960_v14 }
 0x157   : > { %v2964_v34 = vrot.slane %v2942_v42, %v6960_v14  ;;  %v2008_v48 = vrot.slane %v7563_v15, %v6960_v14  ;;  %v2045_v37 = vrot.slane %v2017_v47, %v6960_v14  ;;  %v2294_v54 = vcombine.low %v1997_v25, %v1999_v38 }
 0x158   : > { %v1647_v35 = vcombine.low %v1639_v39, %v1646_v29  ;;  %v2971_v5 = vrot.slane %v2943_v52, %v6960_v14  ;;  %v2972_v3 = vcombine.low %v2950_v20, %v2957_v60  ;;  %v3295_v24 = vcombine.high %v7471_v62, %v7471_v62 }
 0x159   : > { %v2016_v17 = vcombine.high %v2008_v48, %v2008_v48  ;;  %v2024_v0 = vrot.slane %v2008_v48, %v6960_v14  ;;  %v2297_v45 = vcombine.low %v7757_v51, %v2045_v37  ;;  %v2304_v15 = vrot.slane %v2294_v54, %v6960_v14 }
 0x15a   : > { %1672 = vrot.lane.b32.xlu1 %v1647_v35, %s6907_s18  ;;  %v2973_v43 = vcombine.low %v2964_v34, %v2971_v5  ;;  %v2980_v6 = vrot.slane %v2972_v3, %v6960_v14  ;;  %v3309_v47 = vrot.slane %v3295_v24, %v6960_v14  ;;  %v3343_v4 = vcombine.high %v7572_v53, %v7572_v53 }
 0x15b   : > { %v2038_v56 = vrot.slane %v2016_v17, %v6960_v14  ;;  %v2325_v62 = vrot.slane %v2297_v45, %v6960_v14  ;;  %v3350_v55 = vrot.slane %v7572_v53, %v6960_v14  ;;  %v3990_v51 = vcombine.high %v7473_v27, %v7473_v27 }
 0x15c   : > { %v2987_v11 = vrot.slane %v2973_v43, %v6960_v14  ;;  %v3311_v36 = vcombine.high %v3309_v47, %v3309_v47  ;;  %v3325_v30 = vrot.slane %v3309_v47, %v6960_v14  ;;  %v7922_v22 = vrot.slane %v3343_v4, %v6960_v14 }
 0x15d   : > { %v2295_v16 = vcombine.low %v2024_v0, %v2038_v56  ;;  %v6813_v63 = vcombine.high %v2024_v0, %v2038_v56  ;;  %v3358_v40 = vcombine.high %v3350_v55, %v3350_v55  ;;  %v3366_v21 = vrot.slane %v3350_v55, %v6960_v14 }
 0x15e   : > { %v2988_v18 = vcombine.low %v2980_v6, %v2987_v11  ;;  %v3339_v28 = vrot.slane %v3311_v36, %v6960_v14  ;;  %v3341_v53 = vcombine.high %v3325_v30, %v3325_v30  ;;  %v7928_v27 = vrot.slane %v7922_v22, %v6960_v14 }
 0x15f   : > { %v2311_v13 = vrot.slane %v2295_v16, %v6960_v14  ;;  %v2318_v42 = vrot.slane %v6813_v63, %v6960_v14  ;;  %v3380_v20 = vrot.slane %v3358_v40, %v6960_v14  ;;  %v3388_v25 = vcombine.high %v3366_v21, %v3366_v21 }
 0x160   : > { %3060 = vrot.lane.b32.xlu1 %v2988_v18, %s6910_s21  ;;  %v3635_v38 = vcombine.low %v3325_v30, %v3339_v28  ;;  %v3636_v39 = vcombine.low %v3341_v53, %v3366_v21  ;;  %v4004_v29 = vrot.slane %v3990_v51, %v6960_v14  ;;  %v4045_v52 = vrot.slane %v7555_v46, %v6960_v14  ;;  %v7952_v21 = vld [vmem:[#allocation3 + $0x20] ss:$2 sm:$0x7f] }
 0x161   : > { %v2326_v60 = vcombine.low %v2304_v15, %v2311_v13  ;;  %v2327_v34 = vcombine.low %v2318_v42, %v2325_v62  ;;  %v3390_v48 = vcombine.high %v3380_v20, %v3380_v20  ;;  %v3637_v37 = vcombine.low %v3380_v20, %v3388_v25  ;;  %v6892_v62 = vld [vmem:[#allocation3 + $0x10] ss:$2 sm:$0x7f] }
 0x162   : > { %v3645_v54 = vrot.slane %v3635_v38, %v6960_v14  ;;  %v3652_v35 = vrot.slane %v3636_v39, %v6960_v14  ;;  %v4006_v5 = vcombine.high %v4004_v29, %v4004_v29  ;;  %v4020_v3 = vrot.slane %v4004_v29, %v6960_v14 }
 0x163   : > { %v2334_v24 = vrot.slane %v2326_v60, %v6960_v14  ;;  %v2341_v17 = vrot.slane %v2327_v34, %v6960_v14  ;;  %v3638_v0 = vcombine.low %v3390_v48, %v7928_v27  ;;  %v3659_v45 = vrot.slane %v3637_v37, %v6960_v14 }
 0x164   : > { %v3667_v46 = vcombine.low %v3645_v54, %v3652_v35  ;;  %v4034_v15 = vrot.slane %v4006_v5, %v6960_v14  ;;  %v4036_v43 = vcombine.high %v4020_v3, %v4020_v3  ;;  %v4053_v6 = vcombine.high %v4045_v52, %v4045_v52 }
 0x165   : > { %v2342_v47 = vcombine.low %v2334_v24, %v2341_v17  ;;  %v3666_v4 = vrot.slane %v3638_v0, %v6960_v14  ;;  %v4061_v56 = vrot.slane %v4045_v52, %v6960_v14  ;;  %v4563_v55 = vcombine.high %v6892_v62, %v6892_v62 }
 0x166   : > { %v3675_v51 = vrot.slane %v3667_v46, %v6960_v14  ;;  %v4075_v11 = vrot.slane %v4053_v6, %v6960_v14  ;;  %v4330_v36 = vcombine.low %v4020_v3, %v4034_v15  ;;  %v4578_v30 = vcombine.high %v7120_v8, %v7120_v8 }
 0x167   : > { %2367 = vrot.lane.b32.xlu1 %v2342_v47, %s6908_s19  ;;  %v3668_v16 = vcombine.low %v3659_v45, %v3666_v4  ;;  %v4083_v63 = vcombine.high %v4061_v56, %v4061_v56  ;;  %v4331_v40 = vcombine.low %v4036_v43, %v4061_v56  ;;  %v4577_v18 = vrot.slane %v4563_v55, %v6960_v14  ;;  %v6893_v43 = vld [vmem:[#allocation3 + $0x11] ss:$2 sm:$0x7f] }
 0x168   : > { %v4085_v28 = vcombine.high %v4075_v11, %v4075_v11  ;;  %v4340_v53 = vrot.slane %v4330_v36, %v6960_v14  ;;  %v4600_v13 = vrot.slane %v4578_v30, %v6960_v14  ;;  %v4608_v42 = vcombine.high %v7132_v57, %v7132_v57 }
 0x169   : > { %v3682_v20 = vrot.slane %v3668_v16, %v6960_v14  ;;  %v4332_v8 = vcombine.low %v4075_v11, %v4083_v63  ;;  %v4347_v25 = vrot.slane %v4331_v40, %v6960_v14  ;;  %v4579_v38 = vcombine.high %v4577_v18, %v4577_v18  ;;  %v7987_v11 = vld [vmem:[#allocation3 + $0x21] ss:$2 sm:$0x7f] }
 0x16a   : > { %v4333_v39 = vcombine.low %v4085_v28, %v7609_v19  ;;  %v4593_v29 = vrot.slane %v4577_v18, %v6960_v14  ;;  %v4610_v52 = vcombine.high %v4600_v13, %v4600_v13  ;;  %v4618_v60 = vrot.slane %v7952_v21, %v6960_v14 }
 0x16b   : > { %v3683_v34 = vcombine.low %v3675_v51, %v3682_v20  ;;  %v4354_v48 = vrot.slane %v4332_v8, %v6960_v14  ;;  %v4362_v37 = vcombine.low %v4340_v53, %v4347_v25  ;;  %v4607_v57 = vrot.slane %v4579_v38, %v6960_v14 }
 0x16c   : > { %v4361_v54 = vrot.slane %v4333_v39, %v6960_v14  ;;  %v4609_v35 = vcombine.high %v4593_v29, %v4593_v29  ;;  %v4626_v5 = vcombine.high %v4618_v60, %v4618_v60  ;;  %v7969_v3 = vrot.slane %v4618_v60, %v6960_v14  ;;  %v8002_v39 = vld [vmem:[#allocation3 + $0x22] ss:$2 sm:$0x7f] }
 0x16d   : > { %3755 = vrot.lane.b32.xlu1 %v3683_v34, %s6909_s20  ;;  %v4370_v19 = vrot.slane %v4362_v37, %v6960_v14  ;;  %v4900_v24 = vcombine.low %v4600_v13, %v4608_v42  ;;  %v4901_v17 = vcombine.low %v4610_v52, %v4593_v29  ;;  %v6225_v0 = vcombine.high %v7777_v26, %v7777_v26  ;;  %v6894_v29 = vld [vmem:[#allocation3 + $0x12] ss:$2 sm:$0x7f] }
 0x16e   : > { %v4363_v45 = vcombine.low %v4354_v48, %v4361_v54  ;;  %v7976_v46 = vrot.slane %v4626_v5, %v6960_v14  ;;  %v4902_v15 = vcombine.low %v4607_v57, %v4609_v35  ;;  %v5251_v6 = vcombine.high %v6893_v43, %v6893_v43 }
 0x16f   : > { %v4910_v47 = vrot.slane %v4900_v24, %v6960_v14  ;;  %v4917_v4 = vrot.slane %v4901_v17, %v6960_v14  ;;  %v6527_v56 = vrot.slane %v6225_v0, %v6960_v14  ;;  %v5266_v62 = vcombine.high %v7123_v44, %v7123_v44  ;;  %v8794_v17 = vld [vmem:[#allocation6_spill] sm:$0xff] }
 0x170   : > { %v4377_v55 = vrot.slane %v4363_v45, %v6960_v14  ;;  %v4903_v26 = vcombine.low %v7969_v3, %v7976_v46  ;;  %v4924_v51 = vrot.slane %v4902_v15, %v6960_v14  ;;  %v5265_v36 = vrot.slane %v5251_v6, %v6960_v14  ;;  %v8020_v15 = vld [vmem:[#allocation3 + $0x70] ss:$2 sm:$0x7f] }
 0x171   : > { %v4932_v30 = vcombine.low %v4910_v47, %v4917_v4  ;;  %v6534_v16 = vrot.slane %v6527_v56, %v6960_v14  ;;  %v5288_v63 = vrot.slane %v5266_v62, %v6960_v14  ;;  %v5296_v40 = vcombine.high %v7136_v58, %v7136_v58 }
 0x172   : > { %v4378_v44 = vcombine.low %v4370_v19, %v4377_v55  ;;  %v4931_v18 = vrot.slane %v4903_v26, %v6960_v14  ;;  %v5267_v28 = vcombine.high %v5265_v36, %v5265_v36  ;;  %v5281_v53 = vrot.slane %v5265_v36, %v6960_v14 }
 0x173   : > { %v4940_v13 = vrot.slane %v4932_v30, %v6960_v14  ;;  %6547 = vrot.lane.b32.xlu0 %v6534_v16, %s6914_s25  ;;  %v5298_v42 = vcombine.high %v5288_v63, %v5288_v63  ;;  %v5306_v20 = vrot.slane %v7987_v11, %v6960_v14  ;;  %v5588_v8 = vcombine.low %v5288_v63, %v5296_v40 }
 0x174   : > { %4450 = vrot.lane.b32.xlu1 %v4378_v44, %s6911_s22  ;;  %v4933_v25 = vcombine.low %v4924_v51, %v4931_v18  ;;  %v5295_v58 = vrot.slane %v5267_v28, %v6960_v14  ;;  %v5297_v38 = vcombine.high %v5281_v53, %v5281_v53  ;;  %v5939_v52 = vcombine.high %v6894_v29, %v6894_v29 }
 0x175   : > { %v5314_v60 = vcombine.high %v5306_v20, %v5306_v20  ;;  %v8005_v34 = vrot.slane %v5306_v20, %v6960_v14  ;;  %v5589_v48 = vcombine.low %v5298_v42, %v5281_v53  ;;  %v5598_v37 = vrot.slane %v5588_v8, %v6960_v14 }
 0x176   : > { %v4947_v57 = vrot.slane %v4933_v25, %v6960_v14  ;;  %v5590_v54 = vcombine.low %v5295_v58, %v5297_v38  ;;  %v5953_v35 = vrot.slane %v5939_v52, %v6960_v14  ;;  %v5954_v5 = vcombine.high %v7128_v50, %v7128_v50  ;;  %v8796_v58 = vld [vmem:[#allocation19_spill] sm:$0xff] }
 0x177   : > { %v8013_v19 = vrot.slane %v5314_v60, %v6960_v14  ;;  %v5605_v24 = vrot.slane %v5589_v48, %v6960_v14  ;;  %v5984_v0 = vcombine.high %v8794_v17, %v8794_v17  ;;  %v5994_v45 = vrot.slane %v8002_v39, %v6960_v14 }
 0x178   : > { %v4948_v43 = vcombine.low %v4940_v13, %v4947_v57  ;;  %v5612_v6 = vrot.slane %v5590_v54, %v6960_v14  ;;  %v5955_v47 = vcombine.high %v5953_v35, %v5953_v35  ;;  %v5969_v4 = vrot.slane %v5953_v35, %v6960_v14  ;;  %v8795_v13 = vld [vmem:[#allocation11_spill] sm:$0xff] }
 0x179   : > { %v5591_v50 = vcombine.low %v8005_v34, %v8013_v19  ;;  %v5620_v56 = vcombine.low %v5598_v37, %v5605_v24  ;;  %v5976_v62 = vrot.slane %v5954_v5, %v6960_v14  ;;  %v6002_v55 = vcombine.high %v5994_v45, %v5994_v45 }
 0x17a   : > { %5161 = vrot.lane.b32.xlu1 %v4948_v43, %s6912_s23  ;;  %v5983_v26 = vrot.slane %v5955_v47, %v6960_v14  ;;  %v5985_v51 = vcombine.high %v5969_v4, %v5969_v4  ;;  %v8030_v36 = vrot.slane %v5994_v45, %v6960_v14  ;;  %v2696_v30 = vcombine.high %v8020_v15, %v8020_v15 }
 0x17b   : > { %v5619_v16 = vrot.slane %v5591_v50, %v6960_v14  ;;  %v5628_v63 = vrot.slane %v5620_v56, %v6960_v14  ;;  %v5986_v40 = vcombine.high %v5976_v62, %v5976_v62  ;;  %v8037_v44 = vrot.slane %v6002_v55, %v6960_v14 }
 0x17c   : > { %v6276_v18 = vcombine.low %v5976_v62, %v5984_v0  ;;  %v6278_v28 = vcombine.low %v5983_v26, %v5985_v51  ;;  %v8040_v53 = vrot.slane %v2696_v30, %v6960_v14  ;;  %v1114_v42 = vcombine.high %v8795_v13, %v8795_v13 }
 0x17d   : > { %v5621_v20 = vcombine.low %v5612_v6, %v5619_v16  ;;  %v6277_v8 = vcombine.low %v5986_v40, %v5969_v4  ;;  %v6279_v25 = vcombine.low %v8030_v36, %v8037_v44  ;;  %v1169_v38 = vrot.slane %v8796_v58, %v6960_v14  ;;  %v8797_v40 = vld [vmem:[#allocation7_spill] sm:$0xff] }
 0x17e   : > { %v6286_v29 = vrot.slane %v6276_v18, %v6960_v14  ;;  %v6300_v52 = vrot.slane %v6278_v28, %v6960_v14  ;;  %v8052_v60 = vrot.slane %v8040_v53, %v6960_v14  ;;  %v1128_v35 = vrot.slane %v1114_v42, %v6960_v14 }
 0x17f   : > { %v5635_v37 = vrot.slane %v5621_v20, %v6960_v14  ;;  %v6293_v57 = vrot.slane %v6277_v8, %v6960_v14  ;;  %v6307_v54 = vrot.slane %v6279_v25, %v6960_v14  ;;  %v1177_v24 = vcombine.high %v1169_v38, %v1169_v38  ;;  %v8798_v20 = vld [vmem:[#allocation10_spill] sm:$0xff]  ;;  %v8799_v25 = vld [vmem:[#allocation13_spill] sm:$0xff] }
 0x180   : > { %v2742_v5 = vcombine.high %v8052_v60, %v8052_v60  ;;  %v1185_v17 = vrot.slane %v1169_v38, %v6960_v14  ;;  %v6807_v0 = vcombine.high %v7786_v61, %v7792_v49  ;;  %v8065_v45 = vpop.permute.xlu1 %3058  ;;  %v1130_v4 = vcombine.high %v1128_v35, %v1128_v35 }
 0x181   : > { %v5636_v43 = vcombine.low %v5628_v63, %v5635_v37  ;;  %v6308_v6 = vcombine.low %v6286_v29, %v6293_v57  ;;  %v6309_v47 = vcombine.low %v6300_v52, %v6307_v54  ;;  %v1144_v56 = vrot.slane %v1128_v35, %v6960_v14  ;;  %v8800_v57 = vld [vmem:[#allocation21_spill] sm:$0xff] }
 0x182   : > { %v3044_v50 = vrot.slane %v2742_v5, %v6960_v14  ;;  %v8070_v62 = vrot.slane %v1177_v24, %v6960_v14  ;;  %v1207_v55 = vcombine.high %v1185_v17, %v1185_v17  ;;  %v1158_v49 = vrot.slane %v1130_v4, %v6960_v14 }
 0x183   : > { %5849 = vrot.lane.b32.xlu1 %v5636_v43, %s6913_s24  ;;  %v6316_v26 = vrot.slane %v6308_v6, %v6960_v14  ;;  %v6323_v61 = vrot.slane %v6309_v47, %v6960_v14  ;;  %v1462_v51 = vrot.slane %v6807_v0, %v6960_v14  ;;  %v1160_v16 = vcombine.high %v1144_v56, %v1144_v56  ;;  %v8801_v0 = vld [vmem:[#allocation20_spill] sm:$0xff] }
 0x184   : > { %v3051_v30 = vrot.slane %v3044_v50, %v6960_v14  ;;  %v1455_v63 = vcombine.low %v8070_v62, %v1207_v55  ;;  %v2456_v18 = vcombine.high %v8797_v40, %v8797_v40  ;;  %v8081_v28 = vpop.permute.xlu1 %3753  ;;  %v1453_v42 = vcombine.low %v1144_v56, %v1158_v49 }
 0x185   : > { %v6324_v13 = vcombine.low %v6316_v26, %v6323_v61  ;;  %v2471_v8 = vcombine.high %v8798_v20, %v8798_v20  ;;  %v2501_v38 = vcombine.high %v8799_v25, %v8799_v25  ;;  %v1454_v29 = vcombine.low %v1160_v16, %v1185_v17 }
 0x186   : > { %v1483_v52 = vrot.slane %v1455_v63, %v6960_v14  ;;  %v2470_v37 = vrot.slane %v2456_v18, %v6960_v14  ;;  %v2511_v54 = vrot.slane %v8800_v57, %v6960_v14  ;;  %v1469_v35 = vrot.slane %v1453_v42, %v6960_v14 }
 0x187   : > { %6537 = vrot.lane.b32.xlu1 %v6324_v13, %s6914_s25  ;;  %v2493_v5 = vrot.slane %v2471_v8, %v6960_v14  ;;  %v1809_v24 = vcombine.high %v7179_v31, %v7179_v31  ;;  %v1864_v43 = vrot.slane %v8801_v0, %v6960_v14  ;;  %v1476_v17 = vrot.slane %v1454_v29, %v6960_v14 }
 0x188   : > { %v2472_v6 = vcombine.high %v2470_v37, %v2470_v37  ;;  %v2486_v47 = vrot.slane %v2470_v37, %v6960_v14  ;;  %v2519_v4 = vcombine.high %v2511_v54, %v2511_v54  ;;  %v8100_v50 = vpop.permute.xlu1 %4448  ;;  %v1484_v56 = vcombine.low %v1462_v51, %v1469_v35 }
 0x189   : > { %8802 = vst [vmem:[#allocation6_spill] sm:$0xff] %v8100_v50  ;;  %v2503_v55 = vcombine.high %v2493_v5, %v2493_v5  ;;  %v8103_v26 = vrot.slane %v2511_v54, %v6960_v14  ;;  %v2793_v61 = vcombine.low %v2493_v5, %v2501_v38  ;;  %v1485_v49 = vcombine.low %v1476_v17, %v1483_v52 }
 0x18a   : > { %v2500_v31 = vrot.slane %v2472_v6, %v6960_v14  ;;  %v2502_v16 = vcombine.high %v2486_v47, %v2486_v47  ;;  %v8107_v63 = vrot.slane %v2519_v4, %v6960_v14  ;;  %v1492_v40 = vrot.slane %v1484_v56, %v6960_v14 }
 0x18b   : > { %3064 = vrot.lane.b32.xlu1 %v3051_v30, %s6910_s21  ;;  %v2794_v18 = vcombine.low %v2503_v55, %v2486_v47  ;;  %v2803_v13 = vrot.slane %v2793_v61, %v6960_v14  ;;  %v1823_v51 = vrot.slane %v1809_v24, %v6960_v14  ;;  %v1499_v42 = vrot.slane %v1485_v49, %v6960_v14  ;;  %v8804_v49 = vld [vmem:[#allocation14_spill] sm:$0xff] }
 0x18c   : > { %v2795_v20 = vcombine.low %v2500_v31, %v2502_v16  ;;  %v2796_v8 = vcombine.low %v8103_v26, %v8107_v63  ;;  %v1872_v25 = vcombine.high %v1864_v43, %v1864_v43  ;;  %v8116_v38 = vpop.permute.xlu1 %1670  ;;  %v1880_v37 = vrot.slane %v1864_v43, %v6960_v14  ;;  %v8803_v43 = vld [vmem:[#allocation8_spill] sm:$0xff] }
 0x18d   : > { %v2810_v29 = vrot.slane %v2794_v18, %v6960_v14  ;;  %v1825_v52 = vcombine.high %v1823_v51, %v1823_v51  ;;  %v1839_v30 = vrot.slane %v1823_v51, %v6960_v14  ;;  %v1500_v54 = vcombine.low %v1492_v40, %v1499_v42 }
 0x18e   : > { %v2817_v35 = vrot.slane %v2795_v20, %v6960_v14  ;;  %v2824_v5 = vrot.slane %v2796_v8, %v6960_v14  ;;  %v8124_v24 = vrot.slane %v1872_v25, %v6960_v14  ;;  %v1902_v4 = vcombine.high %v1880_v37, %v1880_v37 }
 0x18f   : > { %v2825_v17 = vcombine.low %v2803_v13, %v2810_v29  ;;  %v1853_v6 = vrot.slane %v1825_v52, %v6960_v14  ;;  %v1855_v47 = vcombine.high %v1839_v30, %v1839_v30  ;;  %1666 = vrot.lane.b32.xlu1 %v1500_v54, %s6907_s18  ;;  %v6811_v55 = vcombine.high %v7833_v32, %v7838_v59  ;;  %v8805_v52 = vld [vmem:[#allocation15_spill] sm:$0xff] }
 0x190   : > { %v2826_v56 = vcombine.low %v2817_v35, %v2824_v5  ;;  %v3151_v61 = vcombine.high %v8803_v43, %v8803_v43  ;;  %v3166_v31 = vcombine.high %v8804_v49, %v8804_v49  ;;  %v2150_v13 = vcombine.low %v8124_v24, %v1902_v4  ;;  %v8136_v51 = vpop.permute.xlu1 %2365  ;;  %v8806_v4 = vld [vmem:[#allocation24_spill] sm:$0xff] }
 0x191   : > { %v2833_v16 = vrot.slane %v2825_v17, %v6960_v14  ;;  %v2148_v40 = vcombine.low %v1839_v30, %v1853_v6  ;;  %v2149_v18 = vcombine.low %v1855_v47, %v1880_v37  ;;  %v2157_v20 = vrot.slane %v6811_v55, %v6960_v14 }
 0x192   : > { %v2840_v42 = vrot.slane %v2826_v56, %v6960_v14  ;;  %v3165_v32 = vrot.slane %v3151_v61, %v6960_v14  ;;  %v3188_v59 = vrot.slane %v3166_v31, %v6960_v14  ;;  %v2178_v29 = vrot.slane %v2150_v13, %v6960_v14  ;;  %v8807_v56 = vld [vmem:[#allocation23_spill] sm:$0xff] }
 0x193   : > { %v2164_v8 = vrot.slane %v2148_v40, %v6960_v14  ;;  %v2171_v25 = vrot.slane %v2149_v18, %v6960_v14  ;;  %v3196_v30 = vcombine.high %v8805_v52, %v8805_v52  ;;  %v3491_v55 = vcombine.low %v8807_v56, %v8806_v4  ;;  %v8808_v40 = vld [vmem:[#allocation9_spill] sm:$0xff] }
 0x194   : > { %v2841_v37 = vcombine.low %v2833_v16, %v2840_v42  ;;  %v3167_v54 = vcombine.high %v3165_v32, %v3165_v32  ;;  %v3181_v35 = vrot.slane %v3165_v32, %v6960_v14  ;;  %v3198_v5 = vcombine.high %v3188_v59, %v3188_v59  ;;  %v8150_v43 = vpop.permute.xlu1 %5159 }
 0x195   : > { %v2179_v17 = vcombine.low %v2157_v20, %v2164_v8  ;;  %v2180_v6 = vcombine.low %v2171_v25, %v2178_v29  ;;  %v3488_v47 = vcombine.low %v3188_v59, %v3196_v30  ;;  %v3846_v16 = vcombine.high %v8808_v40, %v8808_v40  ;;  %v8809_v25 = vld [vmem:[#allocation16_spill] sm:$0xff]  ;;  %v8810_v30 = vld [vmem:[#allocation18_spill] sm:$0xff] }
 0x196   : > { %3054 = vrot.lane.b32.xlu1 %v2841_v37, %s6910_s21  ;;  %v3195_v61 = vrot.slane %v3167_v54, %v6960_v14  ;;  %v3197_v49 = vcombine.high %v3181_v35, %v3181_v35  ;;  %v3489_v31 = vcombine.low %v3198_v5, %v3181_v35  ;;  %v3519_v20 = vrot.slane %v3491_v55, %v6960_v14  ;;  %v8811_v54 = vld [vmem:[#allocation22_spill] sm:$0xff] }
 0x197   : > { %v2187_v18 = vrot.slane %v2179_v17, %v6960_v14  ;;  %v2194_v13 = vrot.slane %v2180_v6, %v6960_v14  ;;  %v3498_v42 = vrot.slane %v3488_v47, %v6960_v14  ;;  %v3860_v8 = vrot.slane %v3846_v16, %v6960_v14 }
 0x198   : > { %v3490_v32 = vcombine.low %v3195_v61, %v3197_v49  ;;  %v3505_v59 = vrot.slane %v3489_v31, %v6960_v14  ;;  %v3861_v29 = vcombine.high %v8809_v25, %v8809_v25  ;;  %v3891_v37 = vcombine.high %v8810_v30, %v8810_v30  ;;  %v8170_v17 = vpop.permute.xlu1 %5847 }
 0x199   : > { %v2195_v52 = vcombine.low %v2187_v18, %v2194_v13  ;;  %v3901_v35 = vrot.slane %v8811_v54, %v6960_v14  ;;  %v1162_v5 = vcombine.high %v8796_v58, %v8796_v58  ;;  %v3862_v4 = vcombine.high %v3860_v8, %v3860_v8 }
 0x19a   : > { %v3512_v6 = vrot.slane %v3490_v32, %v6960_v14  ;;  %v3520_v47 = vcombine.low %v3498_v42, %v3505_v59  ;;  %v3876_v56 = vrot.slane %v3860_v8, %v6960_v14  ;;  %v3883_v55 = vrot.slane %v3861_v29, %v6960_v14 }
 0x19b   : > { %2361 = vrot.lane.b32.xlu1 %v2195_v52, %s6908_s19  ;;  %v3909_v61 = vcombine.high %v3901_v35, %v3901_v35  ;;  %v8177_v49 = vrot.slane %v3901_v35, %v6960_v14  ;;  %v1176_v31 = vrot.slane %v1162_v5, %v6960_v14  ;;  %v3890_v16 = vrot.slane %v3862_v4, %v6960_v14 }
 0x19c   : > { %v3521_v40 = vcombine.low %v3512_v6, %v3519_v20  ;;  %v3528_v58 = vrot.slane %v3520_v47, %v6960_v14  ;;  %v3892_v18 = vcombine.high %v3876_v56, %v3876_v56  ;;  %v3893_v13 = vcombine.high %v3883_v55, %v3883_v55  ;;  %v8185_v8 = vpop.permute.xlu1 %6535 }
 0x19d   : > { %v8183_v42 = vrot.slane %v3909_v61, %v6960_v14  ;;  %v4183_v32 = vcombine.low %v3883_v55, %v3891_v37  ;;  %v1178_v59 = vcombine.high %v1176_v31, %v1176_v31  ;;  %v1192_v52 = vrot.slane %v1176_v31, %v6960_v14  ;;  %v8812_v55 = vld [vmem:[#allocation31_spill] sm:$0xff] }
 0x19e   : > { %v3535_v25 = vrot.slane %v3521_v40, %v6960_v14  ;;  %v4185_v29 = vcombine.low %v3890_v16, %v3892_v18  ;;  %v1209_v20 = vcombine.high %v8070_v62, %v8070_v62  ;;  %v4184_v30 = vcombine.low %v3893_v13, %v3876_v56 }
 0x19f   : > { %v4186_v35 = vcombine.low %v8177_v49, %v8183_v42  ;;  %v4193_v5 = vrot.slane %v4183_v32, %v6960_v14  ;;  %v1206_v6 = vrot.slane %v1178_v59, %v6960_v14  ;;  %v1208_v4 = vcombine.high %v1192_v52, %v1192_v52  ;;  %v8813_v32 = vld [vmem:[#allocation29_spill] sm:$0xff] }
 0x1a0   : > { %v3536_v37 = vcombine.low %v3528_v58, %v3535_v25  ;;  %v4207_v47 = vrot.slane %v4185_v29, %v6960_v14  ;;  %v1217_v61 = vrot.slane %v8812_v55, %v6960_v14  ;;  %v4200_v31 = vrot.slane %v4184_v30, %v6960_v14  ;;  %v8202_v16 = vpop.permute.xlu1 %5167 }
 0x1a1   : > { %v4214_v40 = vrot.slane %v4186_v35, %v6960_v14  ;;  %v1501_v62 = vcombine.low %v1209_v20, %v1192_v52  ;;  %v2504_v56 = vcombine.high %v8800_v57, %v8800_v57  ;;  %v1502_v13 = vcombine.low %v1206_v6, %v1208_v4 }
 0x1a2   : > { %3749 = vrot.lane.b32.xlu1 %v3536_v37, %s6909_s20  ;;  %v1225_v18 = vcombine.high %v1217_v61, %v1217_v61  ;;  %v1233_v58 = vrot.slane %v1217_v61, %v6960_v14  ;;  %v2575_v59 = vrot.slane %v8813_v32, %v6960_v14  ;;  %v4215_v25 = vcombine.low %v4193_v5, %v4200_v31 }
 0x1a3   : > { %v4216_v29 = vcombine.low %v4207_v47, %v4214_v40  ;;  %v1511_v30 = vrot.slane %v1501_v62, %v6960_v14  ;;  %v2518_v52 = vrot.slane %v2504_v56, %v6960_v14  ;;  %v1518_v57 = vrot.slane %v1502_v13, %v6960_v14  ;;  %v8814_v62 = vld [vmem:[#allocation34_spill] sm:$0xff] }
 0x1a4   : > { %v1247_v20 = vrot.slane %v1225_v18, %v6960_v14  ;;  %v2597_v35 = vcombine.high %v2575_v59, %v2575_v59  ;;  %v6815_v37 = vcombine.high %v8103_v26, %v8107_v63  ;;  %v4223_v55 = vrot.slane %v4215_v25, %v6960_v14  ;;  %v8217_v47 = vpop.permute.xlu1 %3052 }
 0x1a5   : > { %v4230_v6 = vrot.slane %v4216_v29, %v6960_v14  ;;  %v2520_v4 = vcombine.high %v2518_v52, %v2518_v52  ;;  %v2534_v5 = vrot.slane %v2518_v52, %v6960_v14  ;;  %v1533_v40 = vcombine.low %v1511_v30, %v1518_v57  ;;  %3074 = vst.msk [vmem:[#allocation4] sm:$0xff] %vm3073_vm3, %v8217_v47 }
 0x1a6   : > { %v1503_v61 = vcombine.low %v1233_v58, %v1247_v20  ;;  %v6808_v31 = vcombine.high %v1233_v58, %v1247_v20  ;;  %v2845_v56 = vcombine.low %v8814_v62, %v2597_v35  ;;  %v2852_v26 = vrot.slane %v6815_v37, %v6960_v14  ;;  %v8815_v20 = vld [vmem:[#allocation32_spill] sm:$0xff] }
 0x1a7   : > { %v4231_v18 = vcombine.low %v4223_v55, %v4230_v6  ;;  %v2548_v13 = vrot.slane %v2520_v4, %v6960_v14  ;;  %v2550_v32 = vcombine.high %v2534_v5, %v2534_v5  ;;  %v1541_v29 = vrot.slane %v1533_v40, %v6960_v14  ;;  %v8816_v35 = vld [vmem:[#allocation36_spill] sm:$0xff] }
 0x1a8   : > { %v1525_v63 = vrot.slane %v1503_v61, %v6960_v14  ;;  %v1532_v25 = vrot.slane %v6808_v31, %v6960_v14  ;;  %v2873_v52 = vrot.slane %v2845_v56, %v6960_v14  ;;  %v530_v57 = vcombine.high %v8815_v20, %v8815_v20  ;;  %v8231_v6 = vpop.permute.xlu1 %3747 }
 0x1a9   : > { %4444 = vrot.lane.b32.xlu1 %v4231_v18, %s6911_s22  ;;  %v2843_v58 = vcombine.low %v2534_v5, %v2548_v13  ;;  %v2844_v30 = vcombine.low %v2550_v32, %v2575_v59  ;;  %v578_v55 = vcombine.high %v8816_v35, %v8816_v35  ;;  %v585_v4 = vrot.slane %v8816_v35, %v6960_v14 }
 0x1aa   : > { %v1534_v37 = vcombine.low %v1525_v63, %v1532_v25  ;;  %v1857_v61 = vcombine.high %v8801_v0, %v8801_v0  ;;  %v1904_v31 = vcombine.high %v8124_v24, %v8124_v24  ;;  %v544_v40 = vrot.slane %v530_v57, %v6960_v14  ;;  %3769 = vst.msk [vmem:[#allocation4] sm:$0xff] %vm3768_vm4, %v8231_v6 }
 0x1ab   : > { %v2859_v59 = vrot.slane %v2843_v58, %v6960_v14  ;;  %v2866_v5 = vrot.slane %v2844_v30, %v6960_v14  ;;  %v8243_v62 = vrot.slane %v578_v55, %v6960_v14  ;;  %v593_v18 = vcombine.high %v585_v4, %v585_v4 }
 0x1ac   : > { %v1548_v56 = vrot.slane %v1534_v37, %v6960_v14  ;;  %v601_v13 = vrot.slane %v585_v4, %v6960_v14  ;;  %v1871_v32 = vrot.slane %v1857_v61, %v6960_v14  ;;  %v546_v25 = vcombine.high %v544_v40, %v544_v40 }
 0x1ad   : > { %v2874_v0 = vcombine.low %v2852_v26, %v2859_v59  ;;  %v2875_v63 = vcombine.low %v2866_v5, %v2873_v52  ;;  %v560_v24 = vrot.slane %v544_v40, %v6960_v14  ;;  %v8251_v30 = vrot.slane %v8243_v62, %v6960_v14  ;;  %v8257_v26 = vpop.permute.xlu1 %4442 }
 0x1ae   : > { %v1549_v58 = vcombine.low %v1541_v29, %v1548_v56  ;;  %v615_v57 = vrot.slane %v593_v18, %v6960_v14  ;;  %v623_v35 = vcombine.high %v601_v13, %v601_v13  ;;  %v574_v4 = vrot.slane %v546_v25, %v6960_v14  ;;  %4464 = vst.msk [vmem:[#allocation4] sm:$0xff] %vm4463_vm5, %v8257_v26 }
 0x1af   : > { %v2882_v55 = vrot.slane %v2874_v0, %v6960_v14  ;;  %v2889_v37 = vrot.slane %v2875_v63, %v6960_v14  ;;  %v576_v61 = vcombine.high %v560_v24, %v560_v24  ;;  %v1873_v59 = vcombine.high %v1871_v32, %v1871_v32  ;;  %5181 = vst.msk [vmem:[#allocation4] sm:$0xff] %vm5180_vm6, %v8150_v43  ;;  %v5193_v43 = vld [vmem:[#allocation3 + $0x41] ss:$2 sm:$0x7f] }
 0x1b0   : > { %1668 = vrot.lane.b32.xlu1 %v1549_v58, %s6907_s18  ;;  %v625_v52 = vcombine.high %v615_v57, %v615_v57  ;;  %v872_v29 = vcombine.low %v615_v57, %v623_v35  ;;  %v1887_v5 = vrot.slane %v1871_v32, %v6960_v14  ;;  %v870_v56 = vcombine.low %v560_v24, %v574_v4 }
 0x1b1   : > { %v2890_v40 = vcombine.low %v2882_v55, %v2889_v37  ;;  %v871_v18 = vcombine.low %v576_v61, %v601_v13  ;;  %v1912_v0 = vrot.slane %v8817_v41, %v6960_v14  ;;  %v1901_v48 = vrot.slane %v1873_v59, %v6960_v14  ;;  %v8818_v61 = vld [vmem:[#allocation30_spill] sm:$0xff]  ;;  %v8278_v59 = vpop.permute.xlu1 %1674  ;;  %5869 = vst.msk [vmem:[#allocation4] sm:$0xff] %vm5868_vm7, %v8170_v17 }
 0x1b2   : > { %v873_v63 = vcombine.low %v625_v52, %v8251_v30  ;;  %v894_v25 = vrot.slane %v872_v29, %v6960_v14  ;;  %v1903_v50 = vcombine.high %v1887_v5, %v1887_v5  ;;  %v880_v58 = vrot.slane %v870_v56, %v6960_v14  ;;  %6557 = vst.msk [vmem:[#allocation4] sm:$0xff] %vm6556_vm8, %v8185_v8 }
 0x1b3   : > { %v887_v57 = vrot.slane %v871_v18, %v6960_v14  ;;  %v1920_v35 = vcombine.high %v1912_v0, %v1912_v0  ;;  %v1928_v32 = vrot.slane %v1912_v0, %v6960_v14  ;;  %v2196_v24 = vcombine.low %v1904_v31, %v1887_v5 }
 0x1b4   : > { %3056 = vrot.lane.b32.xlu1 %v2890_v40, %s6910_s21  ;;  %v901_v13 = vrot.slane %v873_v63, %v6960_v14  ;;  %v2197_v41 = vcombine.low %v1901_v48, %v1903_v50  ;;  %v3894_v55 = vcombine.high %v8811_v54, %v8811_v54  ;;  %v3965_v52 = vrot.slane %v8818_v61, %v6960_v14 }
 0x1b5   : > { %v902_v37 = vcombine.low %v880_v58, %v887_v57  ;;  %v1942_v4 = vrot.slane %v1920_v35, %v6960_v14  ;;  %v6823_v29 = vcombine.high %v8177_v49, %v8183_v42  ;;  %v2206_v40 = vrot.slane %v2196_v24, %v6960_v14  ;;  %v8819_v57 = vld [vmem:[#allocation35_spill] sm:$0xff] }
 0x1b6   : > { %v903_v56 = vcombine.low %v894_v25, %v901_v13  ;;  %v2213_v31 = vrot.slane %v2197_v41, %v6960_v14  ;;  %v3908_v48 = vrot.slane %v3894_v55, %v6960_v14  ;;  %v3987_v18 = vcombine.high %v3965_v52, %v3965_v52 }
 0x1b7   : > { %v910_v50 = vrot.slane %v902_v37, %v6960_v14  ;;  %v2198_v54 = vcombine.low %v1928_v32, %v1942_v4  ;;  %v6812_v5 = vcombine.high %v1928_v32, %v1942_v4  ;;  %v4242_v13 = vrot.slane %v6823_v29, %v6960_v14 }
 0x1b8   : > { %v917_v0 = vrot.slane %v903_v56, %v6960_v14  ;;  %v2228_v63 = vcombine.low %v2206_v40, %v2213_v31  ;;  %v3910_v58 = vcombine.high %v3908_v48, %v3908_v48  ;;  %v3924_v49 = vrot.slane %v3908_v48, %v6960_v14  ;;  %v8297_v40 = vpop.permute.xlu1 %2369 }
 0x1b9   : > { %v2220_v42 = vrot.slane %v2198_v54, %v6960_v14  ;;  %v2227_v25 = vrot.slane %v6812_v5, %v6960_v14  ;;  %v4235_v35 = vcombine.low %v8819_v57, %v3987_v18  ;;  %v2664_v61 = vcombine.high %v7869_v7, %v7869_v7 }
 0x1ba   : > { %v918_v24 = vcombine.low %v910_v50, %v917_v0  ;;  %v2236_v41 = vrot.slane %v2228_v63, %v6960_v14  ;;  %v3938_v32 = vrot.slane %v3910_v58, %v6960_v14  ;;  %v3940_v55 = vcombine.high %v3924_v49, %v3924_v49 }
 0x1bb   : > { %v2229_v37 = vcombine.low %v2220_v42, %v2227_v25  ;;  %v4263_v4 = vrot.slane %v4235_v35, %v6960_v14  ;;  %v2694_v56 = vcombine.high %v7879_v1, %v7879_v1  ;;  %v2703_v48 = vrot.slane %v8020_v15, %v6960_v14  ;;  %v6895_v25 = vld [vmem:[#allocation3 + $0x71] ss:$2 sm:$0x7f] }
 0x1bc   : > { %993 = vst.msk [vmem:[#allocation4 + $0x20] sm:$0xff] %vm253_vm0, %v918_v24  ;;  %v4233_v29 = vcombine.low %v3924_v49, %v3938_v32  ;;  %v4234_v31 = vcombine.low %v3940_v55, %v3965_v52  ;;  %v8820_v50 = vcombine.high %v8040_v53, %v8040_v53  ;;  %v2692_v1 = vrot.slane %v2664_v61, %v6960_v14  ;;  %v8334_v61 = vld [vmem:[#allocation3 + $0x30] ss:$2 sm:$0x7f] }
 0x1bd   : > { %1688 = vst.msk [vmem:[#allocation4 + $0x20] sm:$0xff] %vm1683_vm1, %v8116_v38  ;;  %v2243_v7 = vrot.slane %v2229_v37, %v6960_v14  ;;  %v3359_v5 = vcombine.high %v7922_v22, %v7922_v22  ;;  %v3389_v52 = vcombine.high %v7928_v27, %v7928_v27  ;;  %v2711_v18 = vcombine.high %v2703_v48, %v2703_v48  ;;  %v8330_v32 = vpop.permute.xlu1 %1664 }
 0x1be   : > { %v2740_v54 = vrot.slane %v8820_v50, %v6960_v14  ;;  %2383 = vst.msk [vmem:[#allocation4 + $0x20] sm:$0xff] %vm2378_vm2, %v8136_v51  ;;  %v4249_v15 = vrot.slane %v4233_v29, %v6960_v14  ;;  %v4256_v53 = vrot.slane %v4234_v31, %v6960_v14  ;;  %v2719_v38 = vrot.slane %v2703_v48, %v6960_v14 }
 0x1bf   : > { %v2244_v0 = vcombine.low %v2236_v41, %v2243_v7  ;;  %v2989_v63 = vcombine.low %v2692_v1, %v2694_v56  ;;  %v3387_v49 = vrot.slane %v3359_v5, %v6960_v14  ;;  %v2733_v27 = vrot.slane %v2711_v18, %v6960_v14 }
 0x1c0   : > { %v2992_v58 = vcombine.low %v8052_v60, %v2740_v54  ;;  %v4264_v22 = vcombine.low %v4242_v13, %v4249_v15  ;;  %v4265_v42 = vcombine.low %v4256_v53, %v4263_v4  ;;  %v3398_v51 = vrot.slane %v6895_v25, %v6960_v14 }
 0x1c1   : > { %2363 = vrot.lane.b32.xlu1 %v2244_v0, %s6908_s19  ;;  %v2999_v57 = vrot.slane %v2989_v63, %v6960_v14  ;;  %v8821_v24 = vcombine.high %v7639_v33, %v7639_v33  ;;  %v3684_v41 = vcombine.low %v3387_v49, %v3389_v52  ;;  %v2990_v37 = vcombine.low %v2719_v38, %v2733_v27 }
 0x1c2   : > { %v3020_v35 = vrot.slane %v2992_v58, %v6960_v14  ;;  %v4272_v13 = vrot.slane %v4264_v22, %v6960_v14  ;;  %v4279_v55 = vrot.slane %v4265_v42, %v6960_v14  ;;  %v6817_v4 = vcombine.high %v2719_v38, %v2733_v27 }
 0x1c3   : > { %v3435_v60 = vrot.slane %v8821_v24, %v6960_v14  ;;  %v3406_v56 = vcombine.high %v3398_v51, %v3398_v51  ;;  %v3414_v29 = vrot.slane %v3398_v51, %v6960_v14  ;;  %v3694_v48 = vrot.slane %v3684_v41, %v6960_v14 }
 0x1c4   : > { %v4280_v33 = vcombine.low %v4272_v13, %v4279_v55  ;;  %v3006_v50 = vrot.slane %v2990_v37, %v6960_v14  ;;  %v3013_v54 = vrot.slane %v6817_v4, %v6960_v14  ;;  %v4611_v7 = vcombine.high %v7952_v21, %v7952_v21 }
 0x1c5   : > { %v3687_v31 = vcombine.low %v7650_v10, %v3435_v60  ;;  %v3428_v1 = vrot.slane %v3406_v56, %v6960_v14  ;;  %v4666_v52 = vrot.slane %v8334_v61, %v6960_v14  ;;  %v6827_v10 = vcombine.high %v7969_v3, %v7976_v46 }
 0x1c6   : > { %4446 = vrot.lane.b32.xlu1 %v4280_v33, %s6911_s22  ;;  %v3021_v15 = vcombine.low %v2999_v57, %v3006_v50  ;;  %v3022_v53 = vcombine.low %v3013_v54, %v3020_v35  ;;  %v4625_v18 = vrot.slane %v4611_v7, %v6960_v14  ;;  %v5299_v38 = vcombine.high %v7987_v11, %v7987_v11  ;;  %v8364_v57 = vld [vmem:[#allocation3 + $0x31] ss:$2 sm:$0x7f] }
 0x1c7   : > { %v3715_v5 = vrot.slane %v3687_v31, %v6960_v14  ;;  %v3685_v21 = vcombine.low %v3414_v29, %v3428_v1  ;;  %v6821_v0 = vcombine.high %v3414_v29, %v3428_v1  ;;  %v4674_v63 = vcombine.high %v4666_v52, %v4666_v52  ;;  %v8354_v49 = vpop.permute.xlu1 %2359 }
 0x1c8   : > { %v4682_v58 = vrot.slane %v4666_v52, %v6960_v14  ;;  %v3029_v22 = vrot.slane %v3021_v15, %v6960_v14  ;;  %v3036_v3 = vrot.slane %v3022_v53, %v6960_v14  ;;  %v4627_v46 = vcombine.high %v4625_v18, %v4625_v18 }
 0x1c9   : > { %v4641_v42 = vrot.slane %v4625_v18, %v6960_v14  ;;  %v3701_v27 = vrot.slane %v3685_v21, %v6960_v14  ;;  %v3708_v25 = vrot.slane %v6821_v0, %v6960_v14  ;;  %v8362_v11 = vrot.slane %v4674_v63, %v6960_v14 }
 0x1ca   : > { %v4704_v51 = vcombine.high %v4682_v58, %v4682_v58  ;;  %v3037_v35 = vcombine.low %v3029_v22, %v3036_v3  ;;  %v4655_v24 = vrot.slane %v4627_v46, %v6960_v14  ;;  %v4959_v41 = vrot.slane %v6827_v10, %v6960_v14 }
 0x1cb   : > { %v4657_v60 = vcombine.high %v4641_v42, %v4641_v42  ;;  %v3716_v13 = vcombine.low %v3694_v48, %v3701_v27  ;;  %v3717_v55 = vcombine.low %v3708_v25, %v3715_v5  ;;  %v5313_v4 = vrot.slane %v5299_v38, %v6960_v14  ;;  %v8822_v25 = vld [vmem:[#allocation26_spill] sm:$0xff] }
 0x1cc   : > { %v4952_v37 = vcombine.low %v8362_v11, %v4704_v51  ;;  %3062 = vrot.lane.b32.xlu1 %v3037_v35, %s6910_s21  ;;  %v4950_v56 = vcombine.low %v4641_v42, %v4655_v24  ;;  %v5354_v31 = vrot.slane %v8364_v57, %v6960_v14  ;;  %v6831_v33 = vcombine.high %v8005_v34, %v8013_v19  ;;  %v8375_v50 = vpop.permute.xlu1 %1672 }
 0x1cd   : > { %v4951_v29 = vcombine.low %v4657_v60, %v4682_v58  ;;  %v3724_v54 = vrot.slane %v3716_v13, %v6960_v14  ;;  %v3731_v48 = vrot.slane %v3717_v55, %v6960_v14  ;;  %v5315_v1 = vcombine.high %v5313_v4, %v5313_v4 }
 0x1ce   : > { %v4980_v7 = vrot.slane %v4952_v37, %v6960_v14  ;;  %v4966_v5 = vrot.slane %v4950_v56, %v6960_v14  ;;  %v5329_v10 = vrot.slane %v5313_v4, %v6960_v14  ;;  %v5362_v15 = vcombine.high %v5354_v31, %v5354_v31 }
 0x1cf   : > { %v4973_v52 = vrot.slane %v4951_v29, %v6960_v14  ;;  %v3732_v53 = vcombine.low %v3724_v54, %v3731_v48  ;;  %v5343_v18 = vrot.slane %v5315_v1, %v6960_v14  ;;  %v5370_v34 = vrot.slane %v5354_v31, %v6960_v14  ;;  %v8823_v31 = vld [vmem:[#allocation28_spill] sm:$0xff] }
 0x1d0   : > { %v5647_v19 = vrot.slane %v6831_v33, %v6960_v14  ;;  %v4981_v38 = vcombine.low %v4959_v41, %v4966_v5  ;;  %v5345_v0 = vcombine.high %v5329_v10, %v5329_v10  ;;  %v8387_v63 = vrot.slane %v5362_v15, %v6960_v14 }
 0x1d1   : > { %v4982_v21 = vcombine.low %v4973_v52, %v4980_v7  ;;  %3757 = vrot.lane.b32.xlu1 %v3732_v53, %s6909_s20  ;;  %v5392_v58 = vcombine.high %v5370_v34, %v5370_v34  ;;  %v5638_v22 = vcombine.low %v5329_v10, %v5343_v18  ;;  %v5987_v3 = vcombine.high %v8002_v39, %v8002_v39  ;;  %v6896_v10 = vld [vmem:[#allocation3 + $0x40] ss:$2 sm:$0x7f] }
 0x1d2   : > { %v4989_v46 = vrot.slane %v4981_v38, %v6960_v14  ;;  %v5639_v27 = vcombine.low %v5345_v0, %v5370_v34  ;;  %v6058_v51 = vrot.slane %v8822_v25, %v6960_v14  ;;  %v3061_v35 = vpop.permute.xlu1 %3060  ;;  %v6835_v39 = vcombine.high %v8030_v36, %v8037_v44 }
 0x1d3   : > { %v4996_v42 = vrot.slane %v4982_v21, %v6960_v14  ;;  %v5640_v24 = vcombine.low %v8387_v63, %v5392_v58  ;;  %v5654_v60 = vrot.slane %v5638_v22, %v6960_v14  ;;  %v6001_v41 = vrot.slane %v5987_v3, %v6960_v14  ;;  %3078 = vst.msk [vmem:[#allocation4 + $0x20] sm:$0xff] %vm3073_vm3, %v3061_v35 }
 0x1d4   : > { %v5661_v55 = vrot.slane %v5639_v27, %v6960_v14  ;;  %v6080_v37 = vcombine.high %v6058_v51, %v6058_v51  ;;  %v6335_v44 = vrot.slane %v6835_v39, %v6960_v14  ;;  %v4659_v33 = vcombine.high %v8334_v61, %v8334_v61 }
 0x1d5   : > { %v4997_v13 = vcombine.low %v4989_v46, %v4996_v42  ;;  %v5668_v47 = vrot.slane %v5640_v24, %v6960_v14  ;;  %v5669_v4 = vcombine.low %v5647_v19, %v5654_v60  ;;  %v6003_v56 = vcombine.high %v6001_v41, %v6001_v41 }
 0x1d6   : > { %v6017_v29 = vrot.slane %v6001_v41, %v6960_v14  ;;  %v6328_v36 = vcombine.low %v8823_v31, %v6080_v37  ;;  %v4706_v54 = vcombine.high %v8362_v11, %v8362_v11  ;;  %v4673_v52 = vrot.slane %v4659_v33, %v6960_v14 }
 0x1d7   : > { %5163 = vrot.lane.b32.xlu1 %v4997_v13, %s6912_s23  ;;  %v5670_v48 = vcombine.low %v5661_v55, %v5668_v47  ;;  %v5677_v7 = vrot.slane %v5669_v4, %v6960_v14  ;;  %v6031_v1 = vrot.slane %v6003_v56, %v6960_v14  ;;  %v4714_v15 = vrot.slane %v6896_v10, %v6960_v14 }
 0x1d8   : > { %v6033_v5 = vcombine.high %v6017_v29, %v6017_v29  ;;  %v6356_v6 = vrot.slane %v6328_v36, %v6960_v14  ;;  %v4675_v34 = vcombine.high %v4673_v52, %v4673_v52  ;;  %v4689_v19 = vrot.slane %v4673_v52, %v6960_v14  ;;  %v8824_v52 = vld [vmem:[#allocation37_spill] sm:$0xff] }
 0x1d9   : > { %v5684_v53 = vrot.slane %v5670_v48, %v6960_v14  ;;  %v6326_v61 = vcombine.low %v6017_v29, %v6031_v1  ;;  %v8424_v11 = vpop.permute.xlu1 %2367  ;;  %v4722_v38 = vcombine.high %v4714_v15, %v4714_v15  ;;  %v4730_v21 = vrot.slane %v4714_v15, %v6960_v14 }
 0x1da   : > { %v6327_v18 = vcombine.low %v6033_v5, %v6058_v51  ;;  %v4703_v3 = vrot.slane %v4675_v34, %v6960_v14  ;;  %v4705_v26 = vcombine.high %v4689_v19, %v4689_v19  ;;  %v4998_v42 = vcombine.low %v4706_v54, %v4689_v19 }
 0x1db   : > { %v5685_v0 = vcombine.low %v5677_v7, %v5684_v53  ;;  %v6342_v58 = vrot.slane %v6326_v61, %v6960_v14  ;;  %v4744_v46 = vrot.slane %v4722_v38, %v6960_v14  ;;  %v5347_v51 = vcombine.high %v8364_v57, %v8364_v57 }
 0x1dc   : > { %v6349_v22 = vrot.slane %v6327_v18, %v6960_v14  ;;  %v4999_v35 = vcombine.low %v4703_v3, %v4705_v26  ;;  %v5008_v41 = vrot.slane %v4998_v42, %v6960_v14  ;;  %v5394_v55 = vcombine.high %v8387_v63, %v8387_v63  ;;  %v6897_v18 = vld [vmem:[#allocation3 + $0x51] ss:$2 sm:$0x7f] }
 0x1dd   : > { %5851 = vrot.lane.b32.xlu1 %v5685_v0, %s6913_s24  ;;  %v6357_v27 = vcombine.low %v6335_v44, %v6342_v58  ;;  %v5000_v24 = vcombine.low %v4730_v21, %v4744_v46  ;;  %v6828_v60 = vcombine.high %v4730_v21, %v4744_v46  ;;  %v5361_v13 = vrot.slane %v5347_v51, %v6960_v14 }
 0x1de   : > { %v6358_v25 = vcombine.low %v6349_v22, %v6356_v6  ;;  %v5015_v57 = vrot.slane %v4999_v35, %v6960_v14  ;;  %v5402_v56 = vrot.slane %v5193_v43, %v6960_v14  ;;  %v626_v10 = vcombine.high %v8824_v52, %v8824_v52 }
 0x1df   : > { %v6365_v39 = vrot.slane %v6357_v27, %v6960_v14  ;;  %v3756_v37 = vpop.permute.xlu1 %3755  ;;  %v5022_v47 = vrot.slane %v5000_v24, %v6960_v14  ;;  %v5029_v4 = vrot.slane %v6828_v60, %v6960_v14  ;;  %v5363_v29 = vcombine.high %v5361_v13, %v5361_v13 }
 0x1e0   : > { %v6372_v17 = vrot.slane %v6358_v25, %v6960_v14  ;;  %3773 = vst.msk [vmem:[#allocation4 + $0x20] sm:$0xff] %vm3768_vm4, %v3756_v37  ;;  %v5377_v31 = vrot.slane %v5361_v13, %v6960_v14  ;;  %v5030_v36 = vcombine.low %v5008_v41, %v5015_v57  ;;  %v5410_v33 = vcombine.high %v5402_v56, %v5402_v56 }
 0x1e1   : > { %v5031_v44 = vcombine.low %v5022_v47, %v5029_v4  ;;  %v5391_v63 = vrot.slane %v5363_v29, %v6960_v14  ;;  %v5418_v48 = vrot.slane %v5402_v56, %v6960_v14  ;;  %v5395_v61 = vcombine.high %v5193_v43, %v5193_v43  ;;  %v4507_v56 = vld [vmem:[#allocation3 + $0x60] ss:$2 sm:$0x7f] }
 0x1e2   : > { %v6373_v8 = vcombine.low %v6365_v39, %v6372_v17  ;;  %v5393_v54 = vcombine.high %v5377_v31, %v5377_v31  ;;  %v5686_v7 = vcombine.low %v5394_v55, %v5377_v31  ;;  %v5038_v1 = vrot.slane %v5030_v36, %v6960_v14 }
 0x1e3   : > { %v5045_v5 = vrot.slane %v5031_v44, %v6960_v14  ;;  %v5432_v6 = vrot.slane %v5410_v33, %v6960_v14  ;;  %v5450_v34 = vrot.slane %v6897_v18, %v6960_v14  ;;  %v8464_v0 = vrot.slane %v626_v10, %v6960_v14  ;;  %v8827_v18 = vld [vmem:[#allocation25_spill] sm:$0xff] }
 0x1e4   : > { %6539 = vrot.lane.b32.xlu1 %v6373_v8, %s6914_s25  ;;  %v5687_v15 = vcombine.low %v5391_v63, %v5393_v54  ;;  %v5696_v53 = vrot.slane %v5686_v7, %v6960_v14  ;;  %v5409_v3 = vrot.slane %v5395_v61, %v6960_v14  ;;  %v8825_v8 = vld [vmem:[#allocation38_spill] sm:$0xff]  ;;  %v4801_v33 = vcombine.high %v7595_v9, %v7595_v9 }
 0x1e5   : > { %v5046_v19 = vcombine.low %v5038_v1, %v5045_v5  ;;  %v5688_v38 = vcombine.low %v5418_v48, %v5432_v6  ;;  %v6832_v21 = vcombine.high %v5418_v48, %v5432_v6  ;;  %v5458_v26 = vcombine.high %v5450_v34, %v5450_v34 }
 0x1e6   : > { %v4451_v58 = vpop.permute.xlu1 %4450  ;;  %v5703_v22 = vrot.slane %v5687_v15, %v6960_v14  ;;  %v5466_v46 = vrot.slane %v5450_v34, %v6960_v14  ;;  %v642_v25 = vcombine.high %v8464_v0, %v8464_v0  ;;  %v8477_v43 = vrot.slane %v8464_v0, %v6960_v14 }
 0x1e7   : > { %4468 = vst.msk [vmem:[#allocation4 + $0x20] sm:$0xff] %vm4463_vm5, %v4451_v58  ;;  %v5710_v42 = vrot.slane %v5688_v38, %v6960_v14  ;;  %v5717_v27 = vrot.slane %v6832_v21, %v6960_v14  ;;  %v5411_v35 = vcombine.high %v5409_v3, %v5409_v3  ;;  %v5425_v24 = vrot.slane %v5409_v3, %v6960_v14  ;;  %v8828_v58 = vld [vmem:[#allocation27_spill] sm:$0xff] }
 0x1e8   : > { %5165 = vrot.lane.b32.xlu1 %v5046_v19, %s6912_s23  ;;  %5185 = vst.msk [vmem:[#allocation4 + $0x20] sm:$0xff] %vm5180_vm6, %v8202_v16  ;;  %v5718_v51 = vcombine.low %v5696_v53, %v5703_v22  ;;  %v5480_v60 = vrot.slane %v5458_v26, %v6960_v14  ;;  %v672_v39 = vcombine.high %v8477_v43, %v8477_v43  ;;  %v8826_v53 = vld [vmem:[#allocation5_spill] sm:$0xff] }
 0x1e9   : > { %v5719_v41 = vcombine.low %v5710_v42, %v5717_v27  ;;  %v5488_v17 = vcombine.high %v5466_v46, %v5466_v46  ;;  %v5439_v55 = vrot.slane %v5411_v35, %v6960_v14  ;;  %v5441_v37 = vcombine.high %v5425_v24, %v5425_v24 }
 0x1ea   : > { %v5726_v13 = vrot.slane %v5718_v51, %v6960_v14  ;;  %v5490_v57 = vcombine.high %v5480_v60, %v5480_v60  ;;  %v974_v47 = vrot.slane %v672_v39, %v6960_v14  ;;  %v4771_v29 = vcombine.high %v8825_v8, %v8825_v8 }
 0x1eb   : > { %v5733_v16 = vrot.slane %v5719_v41, %v6960_v14  ;;  %v5737_v4 = vcombine.low %v5480_v60, %v5488_v17  ;;  %v5735_v31 = vcombine.low %v5425_v24, %v5439_v55  ;;  %v5736_v36 = vcombine.low %v5441_v37, %v5466_v46 }
 0x1ec   : > { %v5738_v44 = vcombine.low %v5490_v57, %v7713_v2  ;;  %v981_v54 = vrot.slane %v974_v47, %v6960_v14  ;;  %v4799_v7 = vrot.slane %v4771_v29, %v6960_v14  ;;  %v4803_v10 = vcombine.high %v4507_v56, %v4507_v56  ;;  %v8500_v15 = vpop.permute.xlu1 %5161 }
 0x1ed   : > { %v5734_v63 = vcombine.low %v5726_v13, %v5733_v16  ;;  %v5759_v48 = vrot.slane %v5737_v4, %v6960_v14  ;;  %v5745_v1 = vrot.slane %v5735_v31, %v6960_v14  ;;  %v5752_v5 = vrot.slane %v5736_v36, %v6960_v14  ;;  %v8829_v13 = vld [vmem:[#allocation12_spill] sm:$0xff] }
 0x1ee   : > { %v5766_v6 = vrot.slane %v5738_v44, %v6960_v14  ;;  %996 = vst.msk [vmem:[#allocation4 + $0x30] sm:$0x1] %vm995_vm9, %v981_v54  ;;  %v4810_v9 = vrot.slane %v4507_v56, %v6960_v14  ;;  %v5096_v2 = vcombine.low %v4799_v7, %v4801_v33  ;;  %v386_v61 = vcombine.high %v8826_v53, %v8826_v53 }
 0x1ef   : > { %5853 = vrot.lane.b32.xlu1 %v5734_v63, %s6913_s24  ;;  %v401_v34 = vcombine.high %v8827_v18, %v8827_v18  ;;  %1691 = vst.msk [vmem:[#allocation4 + $0x30] sm:$0x1] %vm1690_vm10, %v8278_v59  ;;  %v5767_v19 = vcombine.low %v5745_v1, %v5752_v5  ;;  %v4817_v21 = vrot.slane %v4803_v10, %v6960_v14 }
 0x1f0   : > { %v5768_v38 = vcombine.low %v5759_v48, %v5766_v6  ;;  %v431_v22 = vcombine.high %v8828_v58, %v8828_v58  ;;  %2386 = vst.msk [vmem:[#allocation4 + $0x30] sm:$0x1] %vm2385_vm11, %v8297_v40  ;;  %v4818_v3 = vcombine.high %v4810_v9, %v4810_v9  ;;  %v4826_v26 = vrot.slane %v4810_v9, %v6960_v14 }
 0x1f1   : > { %v5106_v46 = vrot.slane %v5096_v2, %v6960_v14  ;;  %v400_v42 = vrot.slane %v386_v61, %v6960_v14  ;;  %v5775_v27 = vrot.slane %v5767_v19, %v6960_v14  ;;  %v4819_v51 = vcombine.high %v4817_v21, %v4817_v21  ;;  %v8552_v19 = vpop.permute.xlu0 %3751 }
 0x1f2   : > { %v5782_v59 = vrot.slane %v5768_v38, %v6960_v14  ;;  %v4833_v35 = vrot.slane %v4817_v21, %v6960_v14  ;;  %v4840_v24 = vrot.slane %v4818_v3, %v6960_v14  ;;  %v423_v40 = vrot.slane %v401_v34, %v6960_v14 }
 0x1f3   : > { %v402_v60 = vcombine.high %v400_v42, %v400_v42  ;;  %v416_v41 = vrot.slane %v400_v42, %v6960_v14  ;;  %v4847_v17 = vrot.slane %v4819_v51, %v6960_v14  ;;  %v441_v55 = vrot.slane %v8829_v13, %v6960_v14 }
 0x1f4   : > { %v5783_v39 = vcombine.low %v5775_v27, %v5782_v59  ;;  %v4132_v37 = vcombine.high %v7642_v12, %v7642_v12  ;;  %v5097_v16 = vcombine.low %v4826_v26, %v4840_v24  ;;  %v6829_v47 = vcombine.high %v4826_v26, %v4840_v24 }
 0x1f5   : > { %v8530_v57 = vpop.permute.xlu1 %5849  ;;  %v430_v4 = vrot.slane %v402_v60, %v6960_v14  ;;  %v432_v56 = vcombine.high %v416_v41, %v416_v41  ;;  %v5099_v8 = vcombine.low %v4833_v35, %v4847_v17  ;;  %v433_v29 = vcombine.high %v423_v40, %v423_v40 }
 0x1f6   : > { %5855 = vrot.lane.b32.xlu1 %v5783_v39, %s6913_s24  ;;  %v449_v31 = vcombine.high %v441_v55, %v441_v55  ;;  %v8535_v36 = vrot.slane %v441_v55, %v6960_v14  ;;  %v5113_v44 = vrot.slane %v5097_v16, %v6960_v14  ;;  %v5120_v33 = vrot.slane %v6829_v47, %v6960_v14 }
 0x1f7   : > { %v723_v12 = vcombine.low %v423_v40, %v431_v22  ;;  %v725_v63 = vcombine.low %v430_v4, %v432_v56  ;;  %v5127_v54 = vrot.slane %v5099_v8, %v6960_v14  ;;  %v724_v7 = vcombine.low %v433_v29, %v416_v41  ;;  %v8573_v40 = vpop.permute.xlu0 %4452 }
 0x1f8   : > { %v8541_v48 = vrot.slane %v449_v31, %v6960_v14  ;;  %v4434_v1 = vrot.slane %v4132_v37, %v6960_v14  ;;  %v5128_v6 = vcombine.low %v5106_v46, %v5113_v44  ;;  %v4849_v2 = vcombine.high %v4833_v35, %v4833_v35 }
 0x1f9   : > { %v8544_v5 = vpop.permute.xlu1 %6537  ;;  %v733_v10 = vrot.slane %v723_v12, %v6960_v14  ;;  %v747_v9 = vrot.slane %v725_v63, %v6960_v14  ;;  %v5129_v53 = vcombine.low %v5120_v33, %v5127_v54  ;;  %v740_v18 = vrot.slane %v724_v7, %v6960_v14 }
 0x1fa   : > { %v726_v61 = vcombine.low %v8535_v36, %v8541_v48  ;;  %v4441_v34 = vrot.slane %v4434_v1, %v6960_v14  ;;  %v5136_v38 = vrot.slane %v5128_v6, %v6960_v14  ;;  %v5151_v21 = vrot.slane %v4849_v2, %v6960_v14 }
 0x1fb   : > { %v594_v58 = vcombine.high %v8243_v62, %v8243_v62  ;;  %v624_v22 = vcombine.high %v8251_v30, %v8251_v30  ;;  %v5143_v3 = vrot.slane %v5129_v53, %v6960_v14  ;;  %v755_v46 = vcombine.low %v733_v10, %v740_v18  ;;  %v8601_v10 = vpop.permute.xlu0 %6541 }
 0x1fc   : > { %v754_v26 = vrot.slane %v726_v61, %v6960_v14  ;;  %v633_v42 = vrot.slane %v8824_v52, %v6960_v14  ;;  %v5158_v59 = vrot.slane %v5151_v21, %v6960_v14  ;;  %v670_v62 = vrot.slane %v642_v25, %v6960_v14 }
 0x1fd   : > { %v3065_v27 = vpop.permute.xlu1 %3064  ;;  %v622_v51 = vrot.slane %v594_v58, %v6960_v14  ;;  %v5537_v30 = vcombine.high %v7726_v23, %v7726_v23  ;;  %v5144_v35 = vcombine.low %v5136_v38, %v5143_v3  ;;  %v763_v60 = vrot.slane %v755_v46, %v6960_v14 }
 0x1fe   : > { %v756_v24 = vcombine.low %v747_v9, %v754_v26  ;;  %v641_v41 = vcombine.high %v633_v42, %v633_v42  ;;  %v649_v39 = vrot.slane %v633_v42, %v6960_v14  ;;  %v922_v17 = vcombine.low %v8477_v43, %v670_v62  ;;  %3081 = vst.msk [vmem:[#allocation4 + $0x30] sm:$0x1] %vm3080_vm12, %v3065_v27  ;;  %v8830_v43 = vld [vmem:[#allocation17_spill] sm:$0xff] }
 0x1ff   : > { %v919_v52 = vcombine.low %v622_v51, %v624_v22  ;;  %v5839_v55 = vrot.slane %v5537_v30, %v6960_v14  ;;  %5169 = vrot.lane.b32.xlu1 %v5144_v35, %s6912_s23  ;;  %v434_v25 = vcombine.high %v8829_v13, %v8829_v13  ;;  %v489_v4 = vrot.slane %v8830_v43, %v6960_v14 }
 0x200   : > { %v770_v0 = vrot.slane %v756_v24, %v6960_v14  ;;  %v663_v23 = vrot.slane %v641_v41, %v6960_v14  ;;  %v950_v16 = vrot.slane %v922_v17, %v6960_v14  ;;  %v6803_v12 = vcombine.high %v8535_v36, %v8541_v48 }
 0x201   : > { %v929_v37 = vrot.slane %v919_v52, %v6960_v14  ;;  %v5846_v47 = vrot.slane %v5839_v55, %v6960_v14  ;;  %v8588_v56 = vpop.permute.xlu1 %1666  ;;  %v448_v44 = vrot.slane %v434_v25, %v6960_v14  ;;  %v497_v33 = vcombine.high %v489_v4, %v489_v4 }
 0x202   : > { %v771_v8 = vcombine.low %v763_v60, %v770_v0  ;;  %v920_v29 = vcombine.low %v649_v39, %v663_v23  ;;  %v6805_v31 = vcombine.high %v649_v39, %v663_v23  ;;  %v505_v13 = vrot.slane %v489_v4, %v6960_v14  ;;  %v3760_v60 = vpop.permute.xlu0 %3759 }
 0x203   : > { %v482_v63 = vcombine.high %v8830_v43, %v8830_v43  ;;  %4454 = vrot.lane.b32.xlu1 %v4441_v34, %s6911_s22  ;;  %v450_v1 = vcombine.high %v448_v44, %v448_v44  ;;  %v464_v6 = vrot.slane %v448_v44, %v6960_v14  ;;  %v519_v36 = vrot.slane %v497_v33, %v6960_v14 }
 0x204   : > { %990 = vst.msk [vmem:[#allocation4 + $0x8] sm:$0xff] %vm253_vm0, %v771_v8  ;;  %v936_v54 = vrot.slane %v920_v29, %v6960_v14  ;;  %v943_v7 = vrot.slane %v6805_v31, %v6960_v14  ;;  %v527_v48 = vcombine.high %v505_v13, %v505_v13  ;;  %v782_v9 = vrot.slane %v6803_v12, %v6960_v14 }
 0x205   : > { %1685 = vst.msk [vmem:[#allocation4 + $0x8] sm:$0xff] %vm1683_vm1, %v8330_v32  ;;  %v496_v2 = vrot.slane %v482_v63, %v6960_v14  ;;  %v478_v18 = vrot.slane %v450_v1, %v6960_v14  ;;  %v480_v34 = vcombine.high %v464_v6, %v464_v6  ;;  %v529_v22 = vcombine.high %v519_v36, %v519_v36 }
 0x206   : > { %2380 = vst.msk [vmem:[#allocation4 + $0x8] sm:$0xff] %vm2378_vm2, %v8354_v49  ;;  %v951_v53 = vcombine.low %v929_v37, %v936_v54  ;;  %v952_v61 = vcombine.low %v943_v7, %v950_v16  ;;  %v775_v38 = vcombine.low %v519_v36, %v527_v48  ;;  %v537_v62 = vrot.slane %v8815_v20, %v6960_v14 }
 0x207   : > { %v498_v58 = vcombine.high %v496_v2, %v496_v2  ;;  %v512_v32 = vrot.slane %v496_v2, %v6960_v14  ;;  %5171 = vrot.lane.b32.xlu1 %v5158_v59, %s6912_s23  ;;  %v773_v46 = vcombine.low %v464_v6, %v478_v18  ;;  %v774_v42 = vcombine.low %v480_v34, %v505_v13 }
 0x208   : > { %v3055_v21 = vpop.permute.xlu1 %3054  ;;  %v959_v3 = vrot.slane %v951_v53, %v6960_v14  ;;  %v966_v26 = vrot.slane %v952_v61, %v6960_v14  ;;  %v803_v49 = vrot.slane %v775_v38, %v6960_v14  ;;  %v545_v41 = vcombine.high %v537_v62, %v537_v62  ;;  %3776 = vst.msk [vmem:[#allocation4 + $0x30] sm:$0x1] %vm3775_vm13, %v3760_v60 }
 0x209   : > { %3075 = vst.msk [vmem:[#allocation4 + $0x8] sm:$0xff] %vm3073_vm3, %v3055_v21  ;;  %v526_v27 = vrot.slane %v498_v58, %v6960_v14  ;;  %v528_v51 = vcombine.high %v512_v32, %v512_v32  ;;  %v789_v35 = vrot.slane %v773_v46, %v6960_v14  ;;  %v796_v59 = vrot.slane %v774_v42, %v6960_v14 }
 0x20a   : > { %v967_v30 = vcombine.low %v959_v3, %v966_v26  ;;  %v821_v24 = vcombine.low %v529_v22, %v512_v32  ;;  %v553_v55 = vrot.slane %v537_v62, %v6960_v14  ;;  %v567_v0 = vrot.slane %v545_v41, %v6960_v14  ;;  %v184_v26 = vld [vmem:[%s8716_s2] sm:$0xff] }
 0x20b   : > { %v822_v52 = vcombine.low %v526_v27, %v528_v51  ;;  %5859 = vrot.lane.b32.xlu1 %v5846_v47, %s6913_s24  ;;  %v804_v39 = vcombine.low %v782_v9, %v789_v35  ;;  %v805_v17 = vcombine.low %v796_v59, %v803_v49  ;;  %v6915_v4 = vmov 0.0  }
 0x20c   : > { %994 = vst.msk [vmem:[#allocation4 + $0x28] sm:$0xff] %vm253_vm0, %v967_v30  ;;  %v831_v23 = vrot.slane %v821_v24, %v6960_v14  ;;  %v823_v47 = vcombine.low %v553_v55, %v567_v0  ;;  %v6804_v43 = vcombine.high %v553_v55, %v567_v0  ;;  %v6916_v21 = vmov 0.0|0.0  }
 0x20d   : > { %1689 = vst.msk [vmem:[#allocation4 + $0x28] sm:$0xff] %vm1683_vm1, %v8375_v50  ;;  %v2362_v20 = vpop.permute.xlu1 %2361  ;;  %v838_v25 = vrot.slane %v822_v52, %v6960_v14  ;;  %v812_v37 = vrot.slane %v804_v39, %v6960_v14  ;;  %v819_v16 = vrot.slane %v805_v17, %v6960_v14  ;;  %6863 = vmatprep.subr.bf16.mxu0 %v6916_v21  ;;  %v6918_v46 = vmov 0  }
 0x20e   : > { %2384 = vst.msk [vmem:[#allocation4 + $0x28] sm:$0xff] %vm2378_vm2, %v8424_v11  ;;  %v845_v11 = vrot.slane %v823_v47, %v6960_v14  ;;  %v852_v8 = vrot.slane %v6804_v43, %v6960_v14  ;;  %6890 = vset.pattern.permute.xlu0 %v6918_v46 }
 0x20f   : > { %v820_v50 = vcombine.low %v812_v37, %v819_v16  ;;  %172 = vst.msk [vmem:[#allocation4 + $0x31] sm:$0xff] %vm171_vm14, %v6915_v4  ;;  %173 = vst.msk [vmem:[#allocation4 + $0x39] sm:$0xff] %vm171_vm14, %v6915_v4  ;;  %v853_v29 = vcombine.low %v831_v23, %v838_v25  ;;  %6615 = vperm.xlu0 %6890, %v184_v26  }
 0x210   : > { %174 = vst.msk [vmem:[#allocation4 + $0x41] sm:$0xff] %vm171_vm14, %v6915_v4  ;;  %175 = vst.msk [vmem:[#allocation4 + $0x49] sm:$0xff] %vm171_vm14, %v6915_v4  ;;  %v854_v44 = vcombine.low %v845_v11, %v852_v8 }
 0x211   : > { %176 = vst.msk [vmem:[#allocation4 + $0x51] sm:$0xff] %vm171_vm14, %v6915_v4  ;;  %177 = vst.msk [vmem:[#allocation4 + $0x59] sm:$0xff] %vm171_vm14, %v6915_v4  ;;  %v861_v33 = vrot.slane %v853_v29, %v6960_v14 }
 0x212   : > { %178 = vst.msk [vmem:[#allocation4 + $0x61] sm:$0xff] %vm171_vm14, %v6915_v4  ;;  %179 = vst.msk [vmem:[#allocation4 + $0x69] sm:$0xff] %vm171_vm14, %v6915_v4  ;;  %v868_v13 = vrot.slane %v854_v44, %v6960_v14 }
 0x213   : > { %180 = vst.msk [vmem:[#allocation4 + $0x71] sm:$0xff] %vm171_vm14, %v6915_v4 }
 0x214   : > { %991 = vst.msk [vmem:[#allocation4 + $0x10] sm:$0xff] %vm253_vm0, %v820_v50  ;;  %v3750_v31 = vpop.permute.xlu1 %3749  ;;  %v869_v12 = vcombine.low %v861_v33, %v868_v13  ;;  %v183_v33 = vld [vmem:[%s8715_s1] sm:$0xff] }
 0x215   : > { %1686 = vst.msk [vmem:[#allocation4 + $0x10] sm:$0xff] %vm1683_vm1, %v8588_v56 }
 0x216   : > { %2381 = vst.msk [vmem:[#allocation4 + $0x10] sm:$0xff] %vm2378_vm2, %v2362_v20  ;;  %v6572_v49 = vld [vmem:[#allocation4 + $0x38] sm:$0xff] }
 0x217   : > { %3770 = vst.msk [vmem:[#allocation4 + $0x8] sm:$0xff] %vm3768_vm4, %v3750_v31  ;;  %v6573_v27 = vld [vmem:[#allocation4 + $0x40] sm:$0xff]  ;;  %v6574_v51 = vld [vmem:[#allocation4 + $0x48] sm:$0xff] }
 0x218   : > { %992 = vst.msk [vmem:[#allocation4 + $0x18] sm:$0xff] %vm253_vm0, %v869_v12  ;;  %vm4470_vm0 = vcmask 286976   ;;  %v6575_v62 = vld [vmem:[#allocation4 + $0x50] sm:$0xff]  ;;  %v6576_v30 = vld [vmem:[#allocation4 + $0x58] sm:$0xff] }
 0x219   : > { %182 = vst.msk [vmem:[#allocation4 + $0x79] sm:$0x7f] %vm181_vm15, %v6915_v4  ;;  %v6577_v35 = vld [vmem:[#allocation4 + $0x60] sm:$0xff]  ;;  %v6578_v59 = vld [vmem:[#allocation4 + $0x68] sm:$0xff] }
 0x21a   : > { %v6579_v24 = vld [vmem:[#allocation4 + $0x70] sm:$0xff] }
 0x21b   : > { %v4445_v63 = vpop.permute.xlu1 %4444 }
 0x21c   : > { %4465 = vst.msk [vmem:[#allocation4 + $0x8] sm:$0xff] %vm4463_vm5, %v4445_v63 }
 0x21d   : > { %5182 = vst.msk [vmem:[#allocation4 + $0x8] sm:$0xff] %vm5180_vm6, %v8500_v15  ;;  %v6565_v15 = vld [vmem:[#allocation4] sm:$0xff] }
 0x21e   : > { %5870 = vst.msk [vmem:[#allocation4 + $0x8] sm:$0xff] %vm5868_vm7, %v8530_v57 }
 0x21f   : > { %6558 = vst.msk [vmem:[#allocation4 + $0x8] sm:$0xff] %vm6556_vm8, %v8544_v5  ;;  %v8831_v5 = vld [vmem:[#allocation6_spill] sm:$0xff] }
 0x220   : > { %v6580_v60 = vld [vmem:[#allocation4 + $0x78] sm:$0xff] }
 0x222   : > { %v1669_v56 = vpop.permute.xlu1 %1668 }
 0x223   : > { %1687 = vst.msk [vmem:[#allocation4 + $0x18] sm:$0xff] %vm1683_vm1, %v1669_v56  ;;  %vm5187_vm1 = vcmask 122976  }
 0x226   : > { %v3057_v54 = vpop.permute.xlu1 %3056  ;;  %v6566_v57 = vld [vmem:[#allocation4 + $0x8] sm:$0xff] }
 0x227   : > { %3076 = vst.msk [vmem:[#allocation4 + $0x10] sm:$0xff] %vm3073_vm3, %v3057_v54 }
 0x228   : > { %3771 = vst.msk [vmem:[#allocation4 + $0x10] sm:$0xff] %vm3768_vm4, %v8552_v19 }
 0x233   : > { %v2364_v14 = vpop.permute.xlu1 %2363 }
 0x234   : > { %2382 = vst.msk [vmem:[#allocation4 + $0x18] sm:$0xff] %vm2378_vm2, %v2364_v14  ;;  %6581 = vxpose.xlu1.b32.start [1/16] (narrow) %v6565_v15, 40  ;;  %vm5875_vm2 = vcmask 155776  }
 0x235   : > { %3077 = vst.msk [vmem:[#allocation4 + $0x18] sm:$0xff] %vm3073_vm3, %v8065_v45 }
 0x236   : > { %3772 = vst.msk [vmem:[#allocation4 + $0x18] sm:$0xff] %vm3768_vm4, %v8081_v28 }
 0x237   : > { %4467 = vst.msk [vmem:[#allocation4 + $0x18] sm:$0xff] %vm4463_vm5, %v8831_v5 }
 0x238   : > { %v4447_v7 = vpop.permute.xlu1 %4446  ;;  %6582 = vxpose.xlu1.b32.cont [2/16] (narrow) %v6566_v57, 40 }
 0x239   : > { %4466 = vst.msk [vmem:[#allocation4 + $0x10] sm:$0xff] %vm4463_vm5, %v4447_v7 }
 0x23e   : > { %v3063_v19 = vpop.permute.xlu1 %3062 }
 0x23f   : > { %3079 = vst.msk [vmem:[#allocation4 + $0x28] sm:$0xff] %vm3073_vm3, %v3063_v19  ;;  %vm6563_vm3 = vcmask 188576  }
 0x243   : > { %v3758_v1 = vpop.permute.xlu1 %3757 }
 0x244   : > { %3774 = vst.msk [vmem:[#allocation4 + $0x28] sm:$0xff] %vm3768_vm4, %v3758_v1  ;;  %vm6917_vm4 = vmmov 0  }
 0x245   : > { %4469 = vst.msk [vmem:[#allocation4 + $0x28] sm:$0xff] %vm4463_vm5, %v8573_v40  ;;  %v6544_v40 = vpop.permute.xlu0 %6543  ;;  %6860 = vmatprep.mubr.msk.f32.mxu0 %vm6917_vm4, %v6915_v4  ;;  %vm6621_vm5 = vcmask 1043456  }
 0x249   : > { %v5164_v45 = vpop.permute.xlu1 %5163  ;;  %v5858_v61 = vpop.permute.xlu0 %5857 }
 0x24a   : > { %5183 = vst.msk [vmem:[#allocation4 + $0x10] sm:$0xff] %vm5180_vm6, %v5164_v45 }
 0x24d   : > { %v6546_v38 = vpop.permute.xlu0 %6545 }
 0x24f   : > { %v5852_v28 = vpop.permute.xlu1 %5851 }
 0x250   : > { %5871 = vst.msk [vmem:[#allocation4 + $0x10] sm:$0xff] %vm5868_vm7, %v5852_v28 }
 0x251   : > { %v6548_v3 = vpop.permute.xlu0 %6547 }
 0x256   : > { %v6540_v6 = vpop.permute.xlu1 %6539 }
 0x257   : > { %6559 = vst.msk [vmem:[#allocation4 + $0x10] sm:$0xff] %vm6556_vm8, %v6540_v6 }
 0x25a   : > { %v5166_v36 = vpop.permute.xlu1 %5165 }
 0x25b   : > { %5184 = vst.msk [vmem:[#allocation4 + $0x18] sm:$0xff] %vm5180_vm6, %v5166_v36 }
 0x25e   : > { %v6567_v48 = vld [vmem:[#allocation4 + $0x10] sm:$0xff] }
 0x25f   : > { %6583 = vxpose.xlu1.b32.cont [3/16] (narrow) %v6567_v48, 40 }
 0x261   : > { %v5854_v9 = vpop.permute.xlu1 %5853 }
 0x262   : > { %5872 = vst.msk [vmem:[#allocation4 + $0x18] sm:$0xff] %vm5868_vm7, %v5854_v9 }
 0x263   : > { %6560 = vst.msk [vmem:[#allocation4 + $0x18] sm:$0xff] %vm6556_vm8, %v8601_v10 }
 0x268   : > { %v5856_v2 = vpop.permute.xlu1 %5855 }
 0x269   : > { %5873 = vst.msk [vmem:[#allocation4 + $0x20] sm:$0xff] %vm5868_vm7, %v5856_v2 }
 0x26a   : > { %6561 = vst.msk [vmem:[#allocation4 + $0x20] sm:$0xff] %vm6556_vm8, %v6544_v40  ;;  %v6568_v53 = vld [vmem:[#allocation4 + $0x18] sm:$0xff] }
 0x26b   : > { %6584 = vxpose.xlu1.b32.cont [4/16] (narrow) %v6568_v53, 40 }
 0x271   : > { %v6569_v18 = vld [vmem:[#allocation4 + $0x20] sm:$0xff]  ;;  %v5170_v34 = vpop.permute.xlu1 %5169 }
 0x272   : > { %6585 = vxpose.xlu1.b32.cont [5/16] (narrow) %v6569_v18, 40  ;;  %5186 = vst.msk [vmem:[#allocation4 + $0x28] sm:$0xff] %vm5180_vm6, %v5170_v34 }
 0x273   : > { %5874 = vst.msk [vmem:[#allocation4 + $0x28] sm:$0xff] %vm5868_vm7, %v5858_v61 }
 0x274   : > { %6562 = vst.msk [vmem:[#allocation4 + $0x28] sm:$0xff] %vm6556_vm8, %v6546_v38 }
 0x275   : > { %v4455_v10 = vpop.permute.xlu1 %4454 }
 0x276   : > { %4471 = vst.msk [vmem:[#allocation4 + $0x30] sm:$0x1] %vm4470_vm0, %v4455_v10 }
 0x279   : > { %v5172_v58 = vpop.permute.xlu1 %5171 }
 0x27a   : > { %5188 = vst.msk [vmem:[#allocation4 + $0x30] sm:$0x1] %vm5187_vm1, %v5172_v58 }
 0x27b   : > { %v6570_v32 = vld [vmem:[#allocation4 + $0x28] sm:$0xff] }
 0x27c   : > { %6586 = vxpose.xlu1.b32.cont [6/16] (narrow) %v6570_v32, 40 }
 0x27d   : > { %v5860_v22 = vpop.permute.xlu1 %5859 }
 0x27e   : > { %5876 = vst.msk [vmem:[#allocation4 + $0x30] sm:$0x1] %vm5875_vm2, %v5860_v22 }
 0x27f   : > { %6564 = vst.msk [vmem:[#allocation4 + $0x30] sm:$0x1] %vm6563_vm3, %v6548_v3 }
 0x286   : > { %v6571_v42 = vld [vmem:[#allocation4 + $0x30] sm:$0xff] }
 0x287   : > { %6587 = vxpose.xlu1.b32.cont [7/16] (narrow) %v6571_v42, 40 }
 0x28b   : > { %6588 = vxpose.xlu1.b32.cont [8/16] (narrow) %v6572_v49, 40 }
 0x28e   : > { %v6616_v13 = vpop.permute.xlu0 %6615 }
 0x28f   : > { %6589 = vxpose.xlu1.b32.cont [9/16] (narrow) %v6573_v27, 40 }
 0x293   : > { %6590 = vxpose.xlu1.b32.cont [10/16] (narrow) %v6574_v51, 40 }
 0x297   : > { %6591 = vxpose.xlu1.b32.cont [11/16] (narrow) %v6575_v62, 40 }
 0x29b   : > { %6592 = vxpose.xlu1.b32.cont [12/16] (narrow) %v6576_v30, 40 }
 0x29f   : > { %6593 = vxpose.xlu1.b32.cont [13/16] (narrow) %v6577_v35, 40 }
 0x2a3   : > { %6594 = vxpose.xlu1.b32.cont [14/16] (narrow) %v6578_v59, 40 }
 0x2a7   : > { %6595 = vxpose.xlu1.b32.cont [15/16] (narrow) %v6579_v24, 40 }
 0x2ab   : > { %6596 = vxpose.xlu1.b32.end [16/16] (narrow) %v6580_v60, 40 }
 0x2ef   : > { %v6597_v41 = vpop.trf.xlu1 }
 0x2f0   : > { %v6698_v52 = vrot.slane %v6597_v41, 4 }
 0x2f2   : > { %v6700_v39 = vmax.f32 %v6597_v41, %v6698_v52 }
 0x2f3   : > { %v6598_v17 = vpop.trf.xlu1 }
 0x2f4   : > { %v6701_v20 = vmax.f32 %v6700_v39, %v6598_v17  ;;  %v6703_v55 = vrot.slane %v6598_v17, 4  ;;  %v6864_v0 = vpack.c.bf16 %v6598_v17, %v6597_v41 }
 0x2f6   : > { %6865 = vmatpush3.bf16.msra.mxu0 %v6864_v0  ;;  %v6705_v23 = vmax.f32 %v6701_v20, %v6703_v55 }
 0x2f7   : > { %v6599_v25 = vpop.trf.xlu1  ;;  %6866 = vmatprep.subr.bf16.mxu0 %v6916_v21 }
 0x2f8   : > { %v6706_v37 = vmax.f32 %v6705_v23, %v6599_v25  ;;  %v6708_v16 = vrot.slane %v6599_v25, 4 }
 0x2fa   : > { %v6710_v47 = vmax.f32 %v6706_v37, %v6708_v16 }
 0x2fb   : > { %v6600_v43 = vpop.trf.xlu1 }
 0x2fc   : > { %v6867_v50 = vpack.c.bf16 %v6600_v43, %v6599_v25  ;;  %v6711_v11 = vmax.f32 %v6710_v47, %v6600_v43  ;;  %v6713_v8 = vrot.slane %v6600_v43, 4 }
 0x2fe   : > { %6868 = vmatpush3.bf16.msra.mxu0 %v6867_v50  ;;  %v6715_v29 = vmax.f32 %v6711_v11, %v6713_v8 }
 0x2ff   : > { %v6601_v31 = vpop.trf.xlu1  ;;  %6858 = vmatprep.subr.mxu0 %v6915_v4 }
 0x300   : > { %v6716_v44 = vmax.f32 %v6715_v29, %v6601_v31 }
 0x302   : > { %6717 = vst [vmem:[%s170_s4 + $0x8] sm:$0xf] %v6716_v44  ;;  %6859 = vmatpush3.msk.msra.mxu0 %vm6621_vm5, %v6601_v31 }
 0x303   : > { %6861 = vmatmul.mubr.msk.f32.vlgmr.msra.gmra.mrb[0].mxu0 %vm171_vm14, %v183_v33 }
 0x3d6   : > { %v6691_v12 = vpop.f32.mrb[0].mxu0 }
 0x3d7   : > { %v6692_v63 = vadd.f32 %v6691_v12, %v6616_v13  ;;  %v6862_v56 = vpop.f32.mrb[1].mxu0 }
 0x3d9   : > { %v6695_v54 = vmax.f32 %v6692_v63, 0.0 }
 0x3db   : > { %6696 = vst [vmem:[%s170_s4] sm:$0xff] %v6695_v54 }
 0x3dc PF: > { %s13_s12 = sadd.s32 1, %s6904_s12  }
 0x3dd   : > { %p10_p4 = scmp.ge.s32.totalorder %s13_s12, 4  }
 0x3df   :  { %12 = sbr.rel (!%p10_p4) target bundleno = 1 (0x1), region = 104 }

</bundles_post_ra>
